<compile_context>
chip_gen: v7x
topology: tpu7x:2x2x1
jax: 0.10.0
libtpu: 0.0.40
codegen_flags: <defaults>
</compile_context>

<pallas_src>
import functools

import jax
import jax.numpy as jnp
from jax import lax
from jax.experimental import pallas as pl
from jax.experimental.pallas import tpu as pltpu


def _upsample_conv_kernel(x_ref, umap_ref, w_ref, tmask_ref, b_ref, o_ref, *,
                          C, Wo):
    """One grid step = a block of nblk = R // C frames.

    x_ref    : (R, H*W)   f32   rows = (frame, cin), flat original spatial
    umap_ref : (H*W, P)   bf16  constant 0/1 nearest-2x map (fetched once)
    w_ref    : (9, C, C)  bf16  shared per-tap conv weights (no block-diag)
    tmask_ref: (9, P)     f32   per-tap boundary masks on upsampled lanes
    b_ref    : (R, 1)     f32   bias tiled over the frames of a block
    o_ref    : (R, P)     f32   rows = (frame, cout), flat upsampled spatial
    """
    f32 = jnp.float32
    R = x_ref.shape[0]
    P = o_ref.shape[1]
    nblk = R // C

    # Nearest 2x upsample: one MXU matmul against the hoisted constant map.
    up = jnp.dot(x_ref[...].astype(jnp.bfloat16), umap_ref[...],
                 preferred_element_type=f32)                        # (R, P) f32

    # 3x3 SAME conv: 9 rolled + masked taps, each consumed immediately by
    # per-frame shared-weight matmuls accumulated in f32.
    accs = [None] * nblk
    k = 0
    for dy in (-1, 0, 1):
        for dx in (-1, 0, 1):
            shift = (-(dy * Wo + dx)) % P
            tap = up if shift == 0 else pltpu.roll(up, shift=shift, axis=1)
            if dy != 0 or dx != 0:
                tap = tap * tmask_ref[k:k + 1, :]    # zero the wrapped lanes
            tap = tap.astype(jnp.bfloat16)
            wk = w_ref[k]                                           # (C, C)
            for nn in range(nblk):
                part = jnp.dot(wk, tap[nn * C:(nn + 1) * C, :],
                               preferred_element_type=f32)          # (C, P)
                accs[nn] = part if accs[nn] is None else accs[nn] + part
            k += 1

    rows = [accs[nn] + b_ref[nn * C:(nn + 1) * C, :] for nn in range(nblk)]
    o_ref[...] = jnp.concatenate(rows, axis=0).astype(o_ref.dtype)


def _vmem_capacity_bytes(default=64 * 1024 * 1024):
    """Physical VMEM per core; conservative 64 MiB (v7x) fallback."""
    try:
        info = pltpu.get_tpu_info()
        cap = getattr(info, "vmem_capacity_bytes", None)
        if cap:
            return int(cap)
    except Exception:
        pass
    return default


def _pick_frames_per_block(N, C, HW, P, budget_bytes):
    """Frame batch per grid step: keep R = nblk*C sublane aligned (or full),
    prefer >= 2 grid steps (pipelining + v7x megacore), and fit a budget that
    counts double buffers for every BlockSpec operand plus in-kernel values."""
    cands = [d for d in range(N, 0, -1)
             if N % d == 0 and ((d * C) % 8 == 0 or d == N)]
    preferred = [d for d in cands if N // d >= 2] or cands

    def est_bytes(nb):
        R = nb * C
        db = 2  # Pallas double-buffers every BlockSpec operand
        operands = db * (R * HW * 4           # x block
                         + R * P * 4          # out block
                         + HW * P * 2         # upsample map (bf16)
                         + 16 * P * 4         # tap masks (sublane padded)
                         + 9 * 8 * 128 * 2    # weights (padded (8,128) tiles)
                         + R * 128 * 4)       # bias (lane padded)
        interm = (R * P * 4) * 4 + R * P * 2 + R * HW * 2
        return operands + interm

    for nb in preferred:
        if est_bytes(nb) <= budget_bytes:
            return nb
    return min(cands)


def upsample_forward(x, w_oihw, bias, temb=None, *, frames_per_block=None):
    """x: (B, T, C, H, W) f32 -> (B, T, C, 2H, 2W) f32 (nearest 2x + 3x3 conv)."""
    # TODO(synk): the module's `idem` flag and `temb` argument are no-ops in
    # the reference forward (idem=False), so they are not modeled here.
    B, T, C, H, W = x.shape
    N = B * T
    Ho, Wo = 2 * H, 2 * W
    HW, P = H * W, Ho * Wo

    cap = _vmem_capacity_bytes()
    budget = max(8 * 1024 * 1024, int(0.40 * cap))          # ~26 MiB on v7x
    vmem_limit = int(min(int(0.75 * cap), 96 * 1024 * 1024))

    nblk = (_pick_frames_per_block(N, C, HW, P, budget)
            if frames_per_block is None else frames_per_block)
    assert N % nblk == 0
    R = nblk * C

    # Free reshape only: no repeat / pad / transpose passes over HBM.
    x2 = x.reshape(N * C, HW)

    # Constant operands, hoisted out of the kernel (constant index_map =>
    # DMA'd once and kept resident; XLA constant-folds their construction).
    pin = jnp.arange(P, dtype=jnp.int32)
    X, Y = pin % Wo, pin // Wo
    src = (Y // 2) * W + X // 2
    umap = (jnp.arange(HW, dtype=jnp.int32)[:, None]
            == src[None, :]).astype(jnp.bfloat16)               # (HW, P)

    ones_p = jnp.ones((P,), jnp.bool_)
    col_ok = {-1: X != 0, 0: ones_p, 1: X != Wo - 1}
    row_ok = {-1: Y != 0, 0: ones_p, 1: Y != Ho - 1}
    tmask = jnp.stack([(row_ok[dy] & col_ok[dx]).astype(jnp.float32)
                       for dy in (-1, 0, 1) for dx in (-1, 0, 1)], axis=0)

    # Shared per-tap (Cout, Cin) weights, k = ky*3 + kx (cross-correlation).
    wk = jnp.transpose(w_oihw, (2, 3, 0, 1)).reshape(9, C, C).astype(jnp.bfloat16)
    b_rows = jnp.tile(bias.astype(jnp.float32), nblk).reshape(R, 1)

    kernel = functools.partial(_upsample_conv_kernel, C=C, Wo=Wo)
    out2 = pl.pallas_call(
        kernel,
        out_shape=jax.ShapeDtypeStruct((N * C, P), x.dtype),
        grid=(N // nblk,),
        in_specs=[
            pl.BlockSpec((R, HW), lambda i: (i, 0)),
            pl.BlockSpec((HW, P), lambda i: (0, 0)),
            pl.BlockSpec((9, C, C), lambda i: (0, 0, 0)),
            pl.BlockSpec((9, P), lambda i: (0, 0)),
            pl.BlockSpec((R, 1), lambda i: (0, 0)),
        ],
        out_specs=pl.BlockSpec((R, P), lambda i: (i, 0)),
        compiler_params=pltpu.CompilerParams(
            dimension_semantics=("parallel",),
            vmem_limit_bytes=vmem_limit),
    )(x2, umap, wk, tmask, b_rows)

    # Free reshape back to the module's output layout.
    return out2.reshape(B, T, C, Ho, Wo)


if __name__ == "__main__":
    B, T, C, H, W = 2, 3, 4, 16, 16

    key = jax.random.PRNGKey(0)
    kx, kw, kb = jax.random.split(key, 3)
    x = jax.random.normal(kx, (B, T, C, H, W), dtype=jnp.float32)

    # xavier_uniform_ on Conv2d(C, C, 3, 3): bound = sqrt(6 / (fan_in + fan_out)).
    # (The module zero-inits the bias; a small nonzero bias is used here so the
    #  bias path is actually exercised.)
    fan = C * 3 * 3
    bound = (6.0 / (fan + fan)) ** 0.5
    w = jax.random.uniform(kw, (C, C, 3, 3), jnp.float32, -bound, bound)
    b = 0.1 * jax.random.normal(kb, (C,), jnp.float32)

    out = jax.jit(upsample_forward)(x, w, b)
    out = jax.block_until_ready(out)
    assert out.shape == (B, T, C, 2 * H, 2 * W) and out.dtype == jnp.float32

    def reference(xq, wq):
        xf = jnp.repeat(jnp.repeat(xq.reshape(B * T, C, H, W), 2, axis=2),
                        2, axis=3)
        r = lax.conv_general_dilated(
            jnp.transpose(xf, (0, 2, 3, 1)),
            jnp.transpose(wq, (2, 3, 1, 0)),
            window_strides=(1, 1), padding="SAME",
            dimension_numbers=("NHWC", "HWIO", "NHWC"),
            precision=lax.Precision.HIGHEST) + b
        return jnp.transpose(r, (0, 3, 1, 2)).reshape(B, T, C, 2 * H, 2 * W)

    # The kernel feeds the MXU bf16 operands (f32 accumulation), so the tight
    # check compares against an f32 reference on bf16-rounded inputs/weights.
    xq = x.astype(jnp.bfloat16).astype(jnp.float32)
    wq = w.astype(jnp.bfloat16).astype(jnp.float32)
    err = float(jnp.max(jnp.abs(out - reference(xq, wq))))
    assert err < 1e-3, f"mismatch vs bf16-matched reference: {err}"

    # Distance to the full-f32 reference is purely bf16 operand quantisation.
    err_f32 = float(jnp.max(jnp.abs(out - reference(x, w))))
    assert err_f32 < 5e-2, f"mismatch vs f32 reference: {err_f32}"

    print("KERNEL_OK")
</pallas_src>

<mosaic_0001>
module attributes {stable_mosaic.version = 11 : i64} {
  func.func @_upsample_conv_kernel(%arg0: i32, %arg1: memref<8x256xf32, #tpu.memory_space<vmem>>, %arg2: memref<256x1024xbf16, #tpu.memory_space<vmem>>, %arg3: memref<9x4x4xbf16, #tpu.memory_space<vmem>>, %arg4: memref<9x1024xf32, #tpu.memory_space<vmem>>, %arg5: memref<8x1xf32, #tpu.memory_space<vmem>>, %arg6: memref<8x1024xf32, #tpu.memory_space<vmem>>) attributes {dimension_semantics = [#tpu.dimension_semantics<parallel>], iteration_bounds = array<i64: 3>, scalar_prefetch = 0 : i64, scratch_operands = 0 : i64, tpu.core_type = #tpu.core_type<tc>, window_params = [{transform_indices = @transform_0, window_bounds = array<i64: 8, 256>}, {pipeline_mode = #tpu.pipeline_mode<synchronous>, transform_indices = @transform_1, window_bounds = array<i64: 256, 1024>}, {pipeline_mode = #tpu.pipeline_mode<synchronous>, transform_indices = @transform_2, window_bounds = array<i64: 9, 4, 4>}, {pipeline_mode = #tpu.pipeline_mode<synchronous>, transform_indices = @transform_3, window_bounds = array<i64: 9, 1024>}, {pipeline_mode = #tpu.pipeline_mode<synchronous>, transform_indices = @transform_4, window_bounds = array<i64: 8, 1>}, {transform_indices = @transform_5, window_bounds = array<i64: 8, 1024>}]} {
    %c0 = arith.constant 0 : index
    %c0_0 = arith.constant 0 : index
    %0 = vector.load %arg1[%c0, %c0_0] : memref<8x256xf32, #tpu.memory_space<vmem>>, vector<8x256xf32>
    %1 = arith.truncf %0 : vector<8x256xf32> to vector<8x256xbf16>
    %c0_1 = arith.constant 0 : index
    %c0_2 = arith.constant 0 : index
    %2 = vector.load %arg2[%c0_1, %c0_2] : memref<256x1024xbf16, #tpu.memory_space<vmem>>, vector<256x1024xbf16>
    %cst = arith.constant dense<0.000000e+00> : vector<8x1024xf32>
    %3 = tpu.matmul %1, %2, %cst {dimension_numbers = #tpu.dot_dimension_numbers<[1], [0], [0], [1], [0, 0, 1, 1], [], []>} : vector<8x256xbf16>, vector<256x1024xbf16>, vector<8x1024xf32> -> vector<8x1024xf32>
    %c33_i32 = arith.constant 33 : i32
    %4 = tpu.dynamic_rotate %3 by %c33_i32 dim 1 : vector<8x1024xf32>, i32 -> vector<8x1024xf32>
    %c0_3 = arith.constant 0 : index
    %c0_4 = arith.constant 0 : index
    %5 = vector.load %arg4[%c0_3, %c0_4] : memref<9x1024xf32, #tpu.memory_space<vmem>>, vector<1x1024xf32>
    %6 = vector.broadcast %5 : vector<1x1024xf32> to vector<8x1024xf32>
    %7 = arith.mulf %4, %6 : vector<8x1024xf32>
    %8 = arith.truncf %7 : vector<8x1024xf32> to vector<8x1024xbf16>
    %c0_5 = arith.constant 0 : index
    %c0_6 = arith.constant 0 : index
    %c0_7 = arith.constant 0 : index
    %9 = vector.load %arg3[%c0_5, %c0_6, %c0_7] : memref<9x4x4xbf16, #tpu.memory_space<vmem>>, vector<1x4x4xbf16>
    %10 = vector.shape_cast %9 : vector<1x4x4xbf16> to vector<4x4xbf16>
    %11 = vector.extract_strided_slice %8 {offsets = [0, 0], sizes = [4, 1024], strides = [1, 1]} : vector<8x1024xbf16> to vector<4x1024xbf16>
    %cst_8 = arith.constant dense<0.000000e+00> : vector<4x1024xf32>
    %12 = tpu.matmul %10, %11, %cst_8 {dimension_numbers = #tpu.dot_dimension_numbers<[1], [0], [0], [1], [0, 0, 1, 1], [], []>} : vector<4x4xbf16>, vector<4x1024xbf16>, vector<4x1024xf32> -> vector<4x1024xf32>
    %13 = vector.extract_strided_slice %8 {offsets = [4, 0], sizes = [4, 1024], strides = [1, 1]} : vector<8x1024xbf16> to vector<4x1024xbf16>
    %cst_9 = arith.constant dense<0.000000e+00> : vector<4x1024xf32>
    %14 = tpu.matmul %10, %13, %cst_9 {dimension_numbers = #tpu.dot_dimension_numbers<[1], [0], [0], [1], [0, 0, 1, 1], [], []>} : vector<4x4xbf16>, vector<4x1024xbf16>, vector<4x1024xf32> -> vector<4x1024xf32>
    %c32_i32 = arith.constant 32 : i32
    %15 = tpu.dynamic_rotate %3 by %c32_i32 dim 1 : vector<8x1024xf32>, i32 -> vector<8x1024xf32>
    %c1 = arith.constant 1 : index
    %c0_10 = arith.constant 0 : index
    %16 = vector.load %arg4[%c1, %c0_10] : memref<9x1024xf32, #tpu.memory_space<vmem>>, vector<1x1024xf32>
    %17 = vector.broadcast %16 : vector<1x1024xf32> to vector<8x1024xf32>
    %18 = arith.mulf %15, %17 : vector<8x1024xf32>
    %19 = arith.truncf %18 : vector<8x1024xf32> to vector<8x1024xbf16>
    %c1_11 = arith.constant 1 : index
    %c0_12 = arith.constant 0 : index
    %c0_13 = arith.constant 0 : index
    %20 = vector.load %arg3[%c1_11, %c0_12, %c0_13] : memref<9x4x4xbf16, #tpu.memory_space<vmem>>, vector<1x4x4xbf16>
    %21 = vector.shape_cast %20 : vector<1x4x4xbf16> to vector<4x4xbf16>
    %22 = vector.extract_strided_slice %19 {offsets = [0, 0], sizes = [4, 1024], strides = [1, 1]} : vector<8x1024xbf16> to vector<4x1024xbf16>
    %cst_14 = arith.constant dense<0.000000e+00> : vector<4x1024xf32>
    %23 = tpu.matmul %21, %22, %cst_14 {dimension_numbers = #tpu.dot_dimension_numbers<[1], [0], [0], [1], [0, 0, 1, 1], [], []>} : vector<4x4xbf16>, vector<4x1024xbf16>, vector<4x1024xf32> -> vector<4x1024xf32>
    %24 = arith.addf %12, %23 : vector<4x1024xf32>
    %25 = vector.extract_strided_slice %19 {offsets = [4, 0], sizes = [4, 1024], strides = [1, 1]} : vector<8x1024xbf16> to vector<4x1024xbf16>
    %cst_15 = arith.constant dense<0.000000e+00> : vector<4x1024xf32>
    %26 = tpu.matmul %21, %25, %cst_15 {dimension_numbers = #tpu.dot_dimension_numbers<[1], [0], [0], [1], [0, 0, 1, 1], [], []>} : vector<4x4xbf16>, vector<4x1024xbf16>, vector<4x1024xf32> -> vector<4x1024xf32>
    %27 = arith.addf %14, %26 : vector<4x1024xf32>
    %c31_i32 = arith.constant 31 : i32
    %28 = tpu.dynamic_rotate %3 by %c31_i32 dim 1 : vector<8x1024xf32>, i32 -> vector<8x1024xf32>
    %c2 = arith.constant 2 : index
    %c0_16 = arith.constant 0 : index
    %29 = vector.load %arg4[%c2, %c0_16] : memref<9x1024xf32, #tpu.memory_space<vmem>>, vector<1x1024xf32>
    %30 = vector.broadcast %29 : vector<1x1024xf32> to vector<8x1024xf32>
    %31 = arith.mulf %28, %30 : vector<8x1024xf32>
    %32 = arith.truncf %31 : vector<8x1024xf32> to vector<8x1024xbf16>
    %c2_17 = arith.constant 2 : index
    %c0_18 = arith.constant 0 : index
    %c0_19 = arith.constant 0 : index
    %33 = vector.load %arg3[%c2_17, %c0_18, %c0_19] : memref<9x4x4xbf16, #tpu.memory_space<vmem>>, vector<1x4x4xbf16>
    %34 = vector.shape_cast %33 : vector<1x4x4xbf16> to vector<4x4xbf16>
    %35 = vector.extract_strided_slice %32 {offsets = [0, 0], sizes = [4, 1024], strides = [1, 1]} : vector<8x1024xbf16> to vector<4x1024xbf16>
    %cst_20 = arith.constant dense<0.000000e+00> : vector<4x1024xf32>
    %36 = tpu.matmul %34, %35, %cst_20 {dimension_numbers = #tpu.dot_dimension_numbers<[1], [0], [0], [1], [0, 0, 1, 1], [], []>} : vector<4x4xbf16>, vector<4x1024xbf16>, vector<4x1024xf32> -> vector<4x1024xf32>
    %37 = arith.addf %24, %36 : vector<4x1024xf32>
    %38 = vector.extract_strided_slice %32 {offsets = [4, 0], sizes = [4, 1024], strides = [1, 1]} : vector<8x1024xbf16> to vector<4x1024xbf16>
    %cst_21 = arith.constant dense<0.000000e+00> : vector<4x1024xf32>
    %39 = tpu.matmul %34, %38, %cst_21 {dimension_numbers = #tpu.dot_dimension_numbers<[1], [0], [0], [1], [0, 0, 1, 1], [], []>} : vector<4x4xbf16>, vector<4x1024xbf16>, vector<4x1024xf32> -> vector<4x1024xf32>
    %40 = arith.addf %27, %39 : vector<4x1024xf32>
    %c1_i32 = arith.constant 1 : i32
    %41 = tpu.dynamic_rotate %3 by %c1_i32 dim 1 : vector<8x1024xf32>, i32 -> vector<8x1024xf32>
    %c3 = arith.constant 3 : index
    %c0_22 = arith.constant 0 : index
    %42 = vector.load %arg4[%c3, %c0_22] : memref<9x1024xf32, #tpu.memory_space<vmem>>, vector<1x1024xf32>
    %43 = vector.broadcast %42 : vector<1x1024xf32> to vector<8x1024xf32>
    %44 = arith.mulf %41, %43 : vector<8x1024xf32>
    %45 = arith.truncf %44 : vector<8x1024xf32> to vector<8x1024xbf16>
    %c3_23 = arith.constant 3 : index
    %c0_24 = arith.constant 0 : index
    %c0_25 = arith.constant 0 : index
    %46 = vector.load %arg3[%c3_23, %c0_24, %c0_25] : memref<9x4x4xbf16, #tpu.memory_space<vmem>>, vector<1x4x4xbf16>
    %47 = vector.shape_cast %46 : vector<1x4x4xbf16> to vector<4x4xbf16>
    %48 = vector.extract_strided_slice %45 {offsets = [0, 0], sizes = [4, 1024], strides = [1, 1]} : vector<8x1024xbf16> to vector<4x1024xbf16>
    %cst_26 = arith.constant dense<0.000000e+00> : vector<4x1024xf32>
    %49 = tpu.matmul %47, %48, %cst_26 {dimension_numbers = #tpu.dot_dimension_numbers<[1], [0], [0], [1], [0, 0, 1, 1], [], []>} : vector<4x4xbf16>, vector<4x1024xbf16>, vector<4x1024xf32> -> vector<4x1024xf32>
    %50 = arith.addf %37, %49 : vector<4x1024xf32>
    %51 = vector.extract_strided_slice %45 {offsets = [4, 0], sizes = [4, 1024], strides = [1, 1]} : vector<8x1024xbf16> to vector<4x1024xbf16>
    %cst_27 = arith.constant dense<0.000000e+00> : vector<4x1024xf32>
    %52 = tpu.matmul %47, %51, %cst_27 {dimension_numbers = #tpu.dot_dimension_numbers<[1], [0], [0], [1], [0, 0, 1, 1], [], []>} : vector<4x4xbf16>, vector<4x1024xbf16>, vector<4x1024xf32> -> vector<4x1024xf32>
    %53 = arith.addf %40, %52 : vector<4x1024xf32>
    %54 = arith.truncf %3 : vector<8x1024xf32> to vector<8x1024xbf16>
    %c4 = arith.constant 4 : index
    %c0_28 = arith.constant 0 : index
    %c0_29 = arith.constant 0 : index
    %55 = vector.load %arg3[%c4, %c0_28, %c0_29] : memref<9x4x4xbf16, #tpu.memory_space<vmem>>, vector<1x4x4xbf16>
    %56 = vector.shape_cast %55 : vector<1x4x4xbf16> to vector<4x4xbf16>
    %57 = vector.extract_strided_slice %54 {offsets = [0, 0], sizes = [4, 1024], strides = [1, 1]} : vector<8x1024xbf16> to vector<4x1024xbf16>
    %cst_30 = arith.constant dense<0.000000e+00> : vector<4x1024xf32>
    %58 = tpu.matmul %56, %57, %cst_30 {dimension_numbers = #tpu.dot_dimension_numbers<[1], [0], [0], [1], [0, 0, 1, 1], [], []>} : vector<4x4xbf16>, vector<4x1024xbf16>, vector<4x1024xf32> -> vector<4x1024xf32>
    %59 = arith.addf %50, %58 : vector<4x1024xf32>
    %60 = vector.extract_strided_slice %54 {offsets = [4, 0], sizes = [4, 1024], strides = [1, 1]} : vector<8x1024xbf16> to vector<4x1024xbf16>
    %cst_31 = arith.constant dense<0.000000e+00> : vector<4x1024xf32>
    %61 = tpu.matmul %56, %60, %cst_31 {dimension_numbers = #tpu.dot_dimension_numbers<[1], [0], [0], [1], [0, 0, 1, 1], [], []>} : vector<4x4xbf16>, vector<4x1024xbf16>, vector<4x1024xf32> -> vector<4x1024xf32>
    %62 = arith.addf %53, %61 : vector<4x1024xf32>
    %c1023_i32 = arith.constant 1023 : i32
    %63 = tpu.dynamic_rotate %3 by %c1023_i32 dim 1 : vector<8x1024xf32>, i32 -> vector<8x1024xf32>
    %c5 = arith.constant 5 : index
    %c0_32 = arith.constant 0 : index
    %64 = vector.load %arg4[%c5, %c0_32] : memref<9x1024xf32, #tpu.memory_space<vmem>>, vector<1x1024xf32>
    %65 = vector.broadcast %64 : vector<1x1024xf32> to vector<8x1024xf32>
    %66 = arith.mulf %63, %65 : vector<8x1024xf32>
    %67 = arith.truncf %66 : vector<8x1024xf32> to vector<8x1024xbf16>
    %c5_33 = arith.constant 5 : index
    %c0_34 = arith.constant 0 : index
    %c0_35 = arith.constant 0 : index
    %68 = vector.load %arg3[%c5_33, %c0_34, %c0_35] : memref<9x4x4xbf16, #tpu.memory_space<vmem>>, vector<1x4x4xbf16>
    %69 = vector.shape_cast %68 : vector<1x4x4xbf16> to vector<4x4xbf16>
    %70 = vector.extract_strided_slice %67 {offsets = [0, 0], sizes = [4, 1024], strides = [1, 1]} : vector<8x1024xbf16> to vector<4x1024xbf16>
    %cst_36 = arith.constant dense<0.000000e+00> : vector<4x1024xf32>
    %71 = tpu.matmul %69, %70, %cst_36 {dimension_numbers = #tpu.dot_dimension_numbers<[1], [0], [0], [1], [0, 0, 1, 1], [], []>} : vector<4x4xbf16>, vector<4x1024xbf16>, vector<4x1024xf32> -> vector<4x1024xf32>
    %72 = arith.addf %59, %71 : vector<4x1024xf32>
    %73 = vector.extract_strided_slice %67 {offsets = [4, 0], sizes = [4, 1024], strides = [1, 1]} : vector<8x1024xbf16> to vector<4x1024xbf16>
    %cst_37 = arith.constant dense<0.000000e+00> : vector<4x1024xf32>
    %74 = tpu.matmul %69, %73, %cst_37 {dimension_numbers = #tpu.dot_dimension_numbers<[1], [0], [0], [1], [0, 0, 1, 1], [], []>} : vector<4x4xbf16>, vector<4x1024xbf16>, vector<4x1024xf32> -> vector<4x1024xf32>
    %75 = arith.addf %62, %74 : vector<4x1024xf32>
    %c993_i32 = arith.constant 993 : i32
    %76 = tpu.dynamic_rotate %3 by %c993_i32 dim 1 : vector<8x1024xf32>, i32 -> vector<8x1024xf32>
    %c6 = arith.constant 6 : index
    %c0_38 = arith.constant 0 : index
    %77 = vector.load %arg4[%c6, %c0_38] : memref<9x1024xf32, #tpu.memory_space<vmem>>, vector<1x1024xf32>
    %78 = vector.broadcast %77 : vector<1x1024xf32> to vector<8x1024xf32>
    %79 = arith.mulf %76, %78 : vector<8x1024xf32>
    %80 = arith.truncf %79 : vector<8x1024xf32> to vector<8x1024xbf16>
    %c6_39 = arith.constant 6 : index
    %c0_40 = arith.constant 0 : index
    %c0_41 = arith.constant 0 : index
    %81 = vector.load %arg3[%c6_39, %c0_40, %c0_41] : memref<9x4x4xbf16, #tpu.memory_space<vmem>>, vector<1x4x4xbf16>
    %82 = vector.shape_cast %81 : vector<1x4x4xbf16> to vector<4x4xbf16>
    %83 = vector.extract_strided_slice %80 {offsets = [0, 0], sizes = [4, 1024], strides = [1, 1]} : vector<8x1024xbf16> to vector<4x1024xbf16>
    %cst_42 = arith.constant dense<0.000000e+00> : vector<4x1024xf32>
    %84 = tpu.matmul %82, %83, %cst_42 {dimension_numbers = #tpu.dot_dimension_numbers<[1], [0], [0], [1], [0, 0, 1, 1], [], []>} : vector<4x4xbf16>, vector<4x1024xbf16>, vector<4x1024xf32> -> vector<4x1024xf32>
    %85 = arith.addf %72, %84 : vector<4x1024xf32>
    %86 = vector.extract_strided_slice %80 {offsets = [4, 0], sizes = [4, 1024], strides = [1, 1]} : vector<8x1024xbf16> to vector<4x1024xbf16>
    %cst_43 = arith.constant dense<0.000000e+00> : vector<4x1024xf32>
    %87 = tpu.matmul %82, %86, %cst_43 {dimension_numbers = #tpu.dot_dimension_numbers<[1], [0], [0], [1], [0, 0, 1, 1], [], []>} : vector<4x4xbf16>, vector<4x1024xbf16>, vector<4x1024xf32> -> vector<4x1024xf32>
    %88 = arith.addf %75, %87 : vector<4x1024xf32>
    %c992_i32 = arith.constant 992 : i32
    %89 = tpu.dynamic_rotate %3 by %c992_i32 dim 1 : vector<8x1024xf32>, i32 -> vector<8x1024xf32>
    %c7 = arith.constant 7 : index
    %c0_44 = arith.constant 0 : index
    %90 = vector.load %arg4[%c7, %c0_44] : memref<9x1024xf32, #tpu.memory_space<vmem>>, vector<1x1024xf32>
    %91 = vector.broadcast %90 : vector<1x1024xf32> to vector<8x1024xf32>
    %92 = arith.mulf %89, %91 : vector<8x1024xf32>
    %93 = arith.truncf %92 : vector<8x1024xf32> to vector<8x1024xbf16>
    %c7_45 = arith.constant 7 : index
    %c0_46 = arith.constant 0 : index
    %c0_47 = arith.constant 0 : index
    %94 = vector.load %arg3[%c7_45, %c0_46, %c0_47] : memref<9x4x4xbf16, #tpu.memory_space<vmem>>, vector<1x4x4xbf16>
    %95 = vector.shape_cast %94 : vector<1x4x4xbf16> to vector<4x4xbf16>
    %96 = vector.extract_strided_slice %93 {offsets = [0, 0], sizes = [4, 1024], strides = [1, 1]} : vector<8x1024xbf16> to vector<4x1024xbf16>
    %cst_48 = arith.constant dense<0.000000e+00> : vector<4x1024xf32>
    %97 = tpu.matmul %95, %96, %cst_48 {dimension_numbers = #tpu.dot_dimension_numbers<[1], [0], [0], [1], [0, 0, 1, 1], [], []>} : vector<4x4xbf16>, vector<4x1024xbf16>, vector<4x1024xf32> -> vector<4x1024xf32>
    %98 = arith.addf %85, %97 : vector<4x1024xf32>
    %99 = vector.extract_strided_slice %93 {offsets = [4, 0], sizes = [4, 1024], strides = [1, 1]} : vector<8x1024xbf16> to vector<4x1024xbf16>
    %cst_49 = arith.constant dense<0.000000e+00> : vector<4x1024xf32>
    %100 = tpu.matmul %95, %99, %cst_49 {dimension_numbers = #tpu.dot_dimension_numbers<[1], [0], [0], [1], [0, 0, 1, 1], [], []>} : vector<4x4xbf16>, vector<4x1024xbf16>, vector<4x1024xf32> -> vector<4x1024xf32>
    %101 = arith.addf %88, %100 : vector<4x1024xf32>
    %c991_i32 = arith.constant 991 : i32
    %102 = tpu.dynamic_rotate %3 by %c991_i32 dim 1 : vector<8x1024xf32>, i32 -> vector<8x1024xf32>
    %c8 = arith.constant 8 : index
    %c0_50 = arith.constant 0 : index
    %103 = vector.load %arg4[%c8, %c0_50] : memref<9x1024xf32, #tpu.memory_space<vmem>>, vector<1x1024xf32>
    %104 = vector.broadcast %103 : vector<1x1024xf32> to vector<8x1024xf32>
    %105 = arith.mulf %102, %104 : vector<8x1024xf32>
    %106 = arith.truncf %105 : vector<8x1024xf32> to vector<8x1024xbf16>
    %c8_51 = arith.constant 8 : index
    %c0_52 = arith.constant 0 : index
    %c0_53 = arith.constant 0 : index
    %107 = vector.load %arg3[%c8_51, %c0_52, %c0_53] : memref<9x4x4xbf16, #tpu.memory_space<vmem>>, vector<1x4x4xbf16>
    %108 = vector.shape_cast %107 : vector<1x4x4xbf16> to vector<4x4xbf16>
    %109 = vector.extract_strided_slice %106 {offsets = [0, 0], sizes = [4, 1024], strides = [1, 1]} : vector<8x1024xbf16> to vector<4x1024xbf16>
    %cst_54 = arith.constant dense<0.000000e+00> : vector<4x1024xf32>
    %110 = tpu.matmul %108, %109, %cst_54 {dimension_numbers = #tpu.dot_dimension_numbers<[1], [0], [0], [1], [0, 0, 1, 1], [], []>} : vector<4x4xbf16>, vector<4x1024xbf16>, vector<4x1024xf32> -> vector<4x1024xf32>
    %111 = arith.addf %98, %110 : vector<4x1024xf32>
    %112 = vector.extract_strided_slice %106 {offsets = [4, 0], sizes = [4, 1024], strides = [1, 1]} : vector<8x1024xbf16> to vector<4x1024xbf16>
    %cst_55 = arith.constant dense<0.000000e+00> : vector<4x1024xf32>
    %113 = tpu.matmul %108, %112, %cst_55 {dimension_numbers = #tpu.dot_dimension_numbers<[1], [0], [0], [1], [0, 0, 1, 1], [], []>} : vector<4x4xbf16>, vector<4x1024xbf16>, vector<4x1024xf32> -> vector<4x1024xf32>
    %114 = arith.addf %101, %113 : vector<4x1024xf32>
    %c0_56 = arith.constant 0 : index
    %c0_57 = arith.constant 0 : index
    %115 = vector.load %arg5[%c0_56, %c0_57] : memref<8x1xf32, #tpu.memory_space<vmem>>, vector<4x1xf32>
    %116 = vector.broadcast %115 : vector<4x1xf32> to vector<4x1024xf32>
    %117 = arith.addf %111, %116 : vector<4x1024xf32>
    %c4_58 = arith.constant 4 : index
    %c0_59 = arith.constant 0 : index
    %118 = vector.load %arg5[%c4_58, %c0_59] : memref<8x1xf32, #tpu.memory_space<vmem>>, vector<4x1xf32>
    %119 = vector.broadcast %118 : vector<4x1xf32> to vector<4x1024xf32>
    %120 = arith.addf %114, %119 : vector<4x1024xf32>
    %121 = tpu.concatenate %117, %120 in 0 : vector<4x1024xf32>, vector<4x1024xf32> -> vector<8x1024xf32>
    %c0_60 = arith.constant 0 : index
    %c0_61 = arith.constant 0 : index
    %122 = vector.load %arg6[%c0_60, %c0_61] : memref<8x1024xf32, #tpu.memory_space<vmem>>, vector<8x1024xf32>
    tpu.vector_store %arg6[%c0_60, %c0_61], %121 {strides = array<i32>} : memref<8x1024xf32, #tpu.memory_space<vmem>>, vector<8x1024xf32>,
    return
  }
  func.func @transform_0(%arg0: i32) -> (i32, i32) {
    %c0_i32 = arith.constant 0 : i32
    %c0_i32_0 = arith.constant 0 : i32
    return %arg0, %c0_i32 : i32, i32
  }
  func.func @transform_1(%arg0: i32) -> (i32, i32) {
    %c0_i32 = arith.constant 0 : i32
    %c0_i32_0 = arith.constant 0 : i32
    %c0_i32_1 = arith.constant 0 : i32
    return %c0_i32, %c0_i32_0 : i32, i32
  }
  func.func @transform_2(%arg0: i32) -> (i32, i32, i32) {
    %c0_i32 = arith.constant 0 : i32
    %c0_i32_0 = arith.constant 0 : i32
    %c0_i32_1 = arith.constant 0 : i32
    %c0_i32_2 = arith.constant 0 : i32
    return %c0_i32, %c0_i32_0, %c0_i32_1 : i32, i32, i32
  }
  func.func @transform_3(%arg0: i32) -> (i32, i32) {
    %c0_i32 = arith.constant 0 : i32
    %c0_i32_0 = arith.constant 0 : i32
    %c0_i32_1 = arith.constant 0 : i32
    return %c0_i32, %c0_i32_0 : i32, i32
  }
  func.func @transform_4(%arg0: i32) -> (i32, i32) {
    %c0_i32 = arith.constant 0 : i32
    %c0_i32_0 = arith.constant 0 : i32
    %c0_i32_1 = arith.constant 0 : i32
    return %c0_i32, %c0_i32_0 : i32, i32
  }
  func.func @transform_5(%arg0: i32) -> (i32, i32) {
    %c0_i32 = arith.constant 0 : i32
    %c0_i32_0 = arith.constant 0 : i32
    return %arg0, %c0_i32 : i32, i32
  }
}

</mosaic_0001>

<bundles_post_ra>
// kernel: tile.8
= control target key start
LH: loop header
LB: loop body
LE: loop exit
PB: predicated region body
PF: predicated region fallthrough
CT: control target
= control target key end

     0   :  { %s22_s0 = inlined_call_operand.vmem [shape: f32[4], index: 0, kind: input, shape index: {}]   ;;  %s23_s1 = inlined_call_operand.vmem [shape: f32[2,4], index: 1, kind: output, shape index: {}]  }
   0x1   :  { %v4_v0 = vld [vmem:[%s22_s0] ss:$0 sm:$0xff] }
   0x2   :  { %5 = vst [vmem:[%s23_s1] sm:$0x3] %v4_v0 }

// kernel: tile.0
= control target key start
LH: loop header
LB: loop body
LE: loop exit
PB: predicated region body
PF: predicated region fallthrough
CT: control target
= control target key end

     0   :  { %s34_s8 = smov 125   ;;  %vm7_vm0 = vcmask 7168   ;;  %s35_s11 = smov 126   ;;  %s61_s0 = inlined_call_operand.vmem [shape: f32[2,4], index: 0, kind: input, shape index: {}]   ;;  %s62_s1 = inlined_call_operand.vmem [shape: f32[8,1], index: 1, kind: output, shape index: {}]  }
   0x1   :  { %v4_v0 = vld [vmem:[%s61_s0] sm:$0x3]  ;;  %s33_s0 = smov 127  }
   0x2   :  { %5 = vst [vmem:[#allocation0] sm:$0x3] %v4_v0 }
   0x9   :  { %v9_v1 = vld [vmem:[#allocation0] sm:$0x3]  }
   0xa   :  { %v21_v2 = vld [vmem:[#allocation0] sm:$0x3]   ;;  %10 = vrot.lane.b32.xlu0 %v9_v1, %s33_s0 }
   0xb   :  { %22 = vrot.lane.b32.xlu1 %v21_v2, %s34_s8  ;;  %v6_v3 = vld [vmem:[#allocation0] sm:$0x3]  }
   0xc   :  { %v15_v4 = vld [vmem:[#allocation0] sm:$0x3]   ;;  %8 = vst.msk [vmem:[%s62_s1] ss:$4 sm:$0x3] %vm7_vm0, %v6_v3  }
   0xe   :  { %16 = vrot.lane.b32.xlu0 %v15_v4, %s35_s11 }
  0x7c   :  { %v11_v5 = vpop.permute.xlu0 %10  }
  0x7d   :  { %v23_v6 = vpop.permute.xlu1 %22   ;;  %27 = vst.msk [vmem:[%s62_s1 + $0x1] ss:$4 sm:$0x3] %vm7_vm0, %v11_v5  }
  0x7e   :  { %29 = vst.msk [vmem:[%s62_s1 + $0x3] ss:$4 sm:$0x3] %vm7_vm0, %v23_v6  }
  0x80   :  { %v17_v7 = vpop.permute.xlu0 %16  }
  0x81   :  { %28 = vst.msk [vmem:[%s62_s1 + $0x2] ss:$4 sm:$0x3] %vm7_vm0, %v17_v7  }

// kernel: upsample_forward.1
= control target key start
LH: loop header
LB: loop body
LE: loop exit
PB: predicated region body
PF: predicated region fallthrough
CT: control target
= control target key end

     0   :  { %s6042_s18 = smov 0   ;;  %s7586_s0 = inlined_call_operand.vmem [shape: f32[24,256], index: 0, kind: input, shape index: {}]   ;;  %s7587_s1 = inlined_call_operand.vmem [shape: bf16[256,1024], index: 1, kind: input, shape index: {}]   ;;  %s7588_s2 = inlined_call_operand.vmem [shape: bf16[9,4,4], index: 2, kind: input, shape index: {}]   ;;  %s7589_s3 = inlined_call_operand.vmem [shape: f32[9,1024], index: 3, kind: input, shape index: {}]   ;;  %s7590_s4 = inlined_call_operand.vmem [shape: f32[8,1], index: 4, kind: input, shape index: {}]   ;;  %s7591_s5 = inlined_call_operand.vmem [shape: f32[24,1024], index: 5, kind: output, shape index: {}]  }
   0x1 LB: > { %s5669_s19 = sadd.s32 4294967295, %s6001_s18   ;;  %p5673_p0 = scmp.ge.s32.totalorder %s6001_s18, 1  ;;  %s6001_s18 = sphi %s6042_s18, %s15_s18  }
   0x2   : > { %p187_p1 = scmp.lt.s32.totalorder %s6001_s18, 4 }
   0x4   : > { %p188_p2 = pnand %p5673_p0, %p187_p1 }
   0x5   : > { %v230_v0 = vld [vmem:[%s7587_s1] sm:$0xff] (!%p188_p2)  ;;  %v231_v2 = vld [vmem:[%s7587_s1 + $0x8] sm:$0xff] (!%p188_p2)  ;;  %p215_p3 = scmp.lt.s32.totalorder (!%p188_p2), %s5669_s19, 2  ;;  %s6003_s6 = smov (!%p188_p2), 32   ;;  %vm1342_vm1 = vcmask (!%p188_p2), 1041408   ;;  %vm1338_vm2 = vcmask (!%p188_p2), 31744  }
   0x6   : > { %191 = sbr.rel (%p188_p2) target bundleno = 976 (0x3d0), region = 40  ;;  %v234_v1 = vld [vmem:[%s7587_s1 + $0x20] sm:$0xff] (!%p188_p2)  ;;  %v235_v4 = vld [vmem:[%s7587_s1 + $0x28] sm:$0xff] (!%p188_p2)  ;;  %s6006_s7 = smov (!%p188_p2), 31   ;;  %vm5597_vm10 = vcmask (!%p188_p2), 1043456  }
   0x7   : > { %v5679_v3 = vcombine.high (!%p188_p2), %v230_v0, %v234_v1  ;;  %v5678_v5 = vcombine.low (!%p188_p2), %v230_v0, %v234_v1  ;;  %v238_v6 = vld [vmem:[%s7587_s1 + $0x40] sm:$0xff] (!%p188_p2)  ;;  %v5681_v8 = vcombine.high (!%p188_p2), %v231_v2, %v235_v4  ;;  %v5680_v9 = vcombine.low (!%p188_p2), %v231_v2, %v235_v4  ;;  %v239_v11 = vld [vmem:[%s7587_s1 + $0x48] sm:$0xff] (!%p188_p2)  ;;  %s6007_s8 = smov (!%p188_p2), 1   ;;  %s6008_s13 = smov (!%p188_p2), 127  }
   0x8   : > { %v242_v7 = vld [vmem:[%s7587_s1 + $0x60] sm:$0xff] (!%p188_p2)  ;;  %v243_v12 = vld [vmem:[%s7587_s1 + $0x68] sm:$0xff] (!%p188_p2)  ;;  %s6009_s16 = smov (!%p188_p2), 97   ;;  %s6010_s17 = smov (!%p188_p2), 96  }
   0x9   : > { %v5687_v10 = vcombine.high (!%p188_p2), %v238_v6, %v242_v7  ;;  %v246_v13 = vld [vmem:[%s7587_s1 + $0x80] sm:$0xff] (!%p188_p2)  ;;  %998 = vmatprep.subr.bf16.mxu0 (!%p188_p2), %v5679_v3  ;;  %v5689_v14 = vcombine.high (!%p188_p2), %v239_v11, %v243_v12  ;;  %v247_v16 = vld [vmem:[%s7587_s1 + $0x88] sm:$0xff] (!%p188_p2)  ;;  %1039 = vmatprep.subr.bf16.mxu1 (!%p188_p2), %v5681_v8  ;;  %v5686_v18 = vcombine.low (!%p188_p2), %v238_v6, %v242_v7  ;;  %s6011_s20 = smov (!%p188_p2), 95  }
   0xa   : > { %v250_v15 = vld [vmem:[%s7587_s1 + $0xa0] sm:$0xff] (!%p188_p2)  ;;  %v251_v17 = vld [vmem:[%s7587_s1 + $0xa8] sm:$0xff] (!%p188_p2)  ;;  %999 = vmatpush1.bf16.msra.mxu0 (!%p188_p2), %v5678_v5  ;;  %1040 = vmatpush1.bf16.msra.mxu1 (!%p188_p2), %v5680_v9  ;;  %v5688_v19 = vcombine.low (!%p188_p2), %v239_v11, %v243_v12 }
   0xb   : > { %1000 = vmatprep.subr.bf16.mxu0 (!%p188_p2), %v5687_v10  ;;  %v5695_v20 = vcombine.high (!%p188_p2), %v246_v13, %v250_v15  ;;  %1041 = vmatprep.subr.bf16.mxu1 (!%p188_p2), %v5689_v14  ;;  %v5697_v21 = vcombine.high (!%p188_p2), %v247_v16, %v251_v17  ;;  %v254_v22 = vld [vmem:[%s7587_s1 + $0xc0] sm:$0xff] (!%p188_p2)  ;;  %v255_v24 = vld [vmem:[%s7587_s1 + $0xc8] sm:$0xff] (!%p188_p2)  ;;  %v5694_v26 = vcombine.low (!%p188_p2), %v246_v13, %v250_v15 }
   0xc   : > { %v258_v23 = vld [vmem:[%s7587_s1 + $0xe0] sm:$0xff] (!%p188_p2)  ;;  %v259_v25 = vld [vmem:[%s7587_s1 + $0xe8] sm:$0xff] (!%p188_p2)  ;;  %v5696_v27 = vcombine.low (!%p188_p2), %v247_v16, %v251_v17 }
   0xd   : > { %v5703_v28 = vcombine.high %v254_v22, %v258_v23  ;;  %v5705_v29 = vcombine.high %v255_v24, %v259_v25  ;;  %v262_v30 = vld [vmem:[%s7587_s1 + $0x100] sm:$0xff]  ;;  %v263_v32 = vld [vmem:[%s7587_s1 + $0x108] sm:$0xff]  ;;  %s7593_s19 = smov (!%p215_p3, %s5669_s19), 2  ;;  %v5702_v34 = vcombine.low %v254_v22, %v258_v23  ;;  %v5704_v35 = vcombine.low %v255_v24, %v259_v25 }
   0xe   : > { %1001 = vmatpush1.bf16.msra.mxu0 %v5686_v18  ;;  %1042 = vmatpush1.bf16.msra.mxu1 %v5688_v19  ;;  %v266_v31 = vld [vmem:[%s7587_s1 + $0x120] sm:$0xff]  ;;  %v267_v33 = vld [vmem:[%s7587_s1 + $0x128] sm:$0xff]  ;;  %s5974_s22 = sshll.u32 %s7593_s19, 4  ;;  %s5975_s23 = sshll.u32 %s7593_s19, 6 }
   0xf   : > { %1002 = vmatprep.subr.bf16.mxu0 %v5695_v20  ;;  %1043 = vmatprep.subr.bf16.mxu1 %v5697_v21  ;;  %v5711_v36 = vcombine.high %v262_v30, %v266_v31  ;;  %v5713_v37 = vcombine.high %v263_v32, %v267_v33  ;;  %v270_v38 = vld [vmem:[%s7587_s1 + $0x140] sm:$0xff]  ;;  %v271_v40 = vld [vmem:[%s7587_s1 + $0x148] sm:$0xff]  ;;  %v5710_v42 = vcombine.low %v262_v30, %v266_v31  ;;  %s6138_s29 = scalar_lea.vmem %s7586_s0, %s5974_s22  ;;  %s7557_s26 = scalar_lea.vmem %s7591_s5, %s5975_s23 }
  0x10   : > { %v274_v39 = vld [vmem:[%s7587_s1 + $0x160] sm:$0xff]  ;;  %v275_v41 = vld [vmem:[%s7587_s1 + $0x168] sm:$0xff]  ;;  %v5712_v43 = vcombine.low %v263_v32, %v267_v33 }
  0x11   : > { %v5719_v44 = vcombine.high %v270_v38, %v274_v39  ;;  %v5721_v45 = vcombine.high %v271_v40, %v275_v41  ;;  %v278_v46 = vld [vmem:[%s7587_s1 + $0x180] sm:$0xff]  ;;  %v279_v48 = vld [vmem:[%s7587_s1 + $0x188] sm:$0xff]  ;;  %v5718_v50 = vcombine.low %v270_v38, %v274_v39  ;;  %v5720_v51 = vcombine.low %v271_v40, %v275_v41 }
  0x12   : > { %1003 = vmatpush1.bf16.msra.mxu0 %v5694_v26  ;;  %1044 = vmatpush1.bf16.msra.mxu1 %v5696_v27  ;;  %v282_v47 = vld [vmem:[%s7587_s1 + $0x1a0] sm:$0xff]  ;;  %v283_v49 = vld [vmem:[%s7587_s1 + $0x1a8] sm:$0xff] }
  0x13   : > { %1004 = vmatprep.subr.bf16.mxu0 %v5703_v28  ;;  %1045 = vmatprep.subr.bf16.mxu1 %v5705_v29  ;;  %v5727_v52 = vcombine.high %v278_v46, %v282_v47  ;;  %v227_v53 = vld [vmem:[%s6138_s29 + $0x8] sm:$0xff]  ;;  %v5729_v54 = vcombine.high %v279_v48, %v283_v49  ;;  %v286_v55 = vld [vmem:[%s7587_s1 + $0x1c0] sm:$0xff]  ;;  %v5726_v60 = vcombine.low %v278_v46, %v282_v47 }
  0x14   : > { %v290_v56 = vld [vmem:[%s7587_s1 + $0x1e0] sm:$0xff]  ;;  %v6153_v57 = vpack.c.bf16 %v227_v53, %v227_v53  ;;  %v287_v58 = vld [vmem:[%s7587_s1 + $0x1c8] sm:$0xff]  ;;  %v5728_v61 = vcombine.low %v279_v48, %v283_v49 }
  0x15   : > { %v291_v59 = vld [vmem:[%s7587_s1 + $0x1e8] sm:$0xff]  ;;  %v5735_v62 = vcombine.high %v286_v55, %v290_v56  ;;  %v294_v0 = vld [vmem:[%s7587_s1 + $0x200] sm:$0xff]  ;;  %v5734_v4 = vcombine.low %v286_v55, %v290_v56 }
  0x16   : > { %1005 = vmatpush1.bf16.msra.mxu0 %v5702_v34  ;;  %1046 = vmatpush1.bf16.msra.mxu1 %v5704_v35  ;;  %v5737_v63 = vcombine.high %v287_v58, %v291_v59  ;;  %v298_v1 = vld [vmem:[%s7587_s1 + $0x220] sm:$0xff]  ;;  %v295_v2 = vld [vmem:[%s7587_s1 + $0x208] sm:$0xff]  ;;  %v5736_v5 = vcombine.low %v287_v58, %v291_v59 }
  0x17   : > { %1006 = vmatprep.subr.bf16.mxu0 %v5711_v36  ;;  %1047 = vmatprep.subr.bf16.mxu1 %v5713_v37  ;;  %v299_v3 = vld [vmem:[%s7587_s1 + $0x228] sm:$0xff]  ;;  %v5743_v6 = vcombine.high %v294_v0, %v298_v1  ;;  %v302_v8 = vld [vmem:[%s7587_s1 + $0x240] sm:$0xff]  ;;  %v5742_v12 = vcombine.low %v294_v0, %v298_v1  ;;  %v232_v1 = vld [vmem:[%s7587_s1 + $0x10] sm:$0xff] }
  0x18   : > { %1030 = vmatprep.mubr.bf16.mxu0 %v6153_v57  ;;  %1071 = vmatprep.mubr.bf16.mxu1 %v6153_v57  ;;  %v5745_v7 = vcombine.high %v295_v2, %v299_v3  ;;  %v306_v9 = vld [vmem:[%s7587_s1 + $0x260] sm:$0xff]  ;;  %v303_v10 = vld [vmem:[%s7587_s1 + $0x248] sm:$0xff]  ;;  %v5744_v13 = vcombine.low %v295_v2, %v299_v3  ;;  %v236_v2 = vld [vmem:[%s7587_s1 + $0x30] sm:$0xff] }
  0x19   : > { %v307_v11 = vld [vmem:[%s7587_s1 + $0x268] sm:$0xff]  ;;  %v5751_v14 = vcombine.high %v302_v8, %v306_v9  ;;  %v310_v16 = vld [vmem:[%s7587_s1 + $0x280] sm:$0xff]  ;;  %v5750_v20 = vcombine.low %v302_v8, %v306_v9  ;;  %v233_v3 = vld [vmem:[%s7587_s1 + $0x18] sm:$0xff]  ;;  %v5683_v8 = vcombine.high %v232_v1, %v236_v2 }
  0x1a   : > { %1007 = vmatpush1.bf16.msra.mxu0 %v5710_v42  ;;  %1048 = vmatpush1.bf16.msra.mxu1 %v5712_v43  ;;  %v5753_v15 = vcombine.high %v303_v10, %v307_v11  ;;  %v314_v17 = vld [vmem:[%s7587_s1 + $0x2a0] sm:$0xff]  ;;  %v311_v18 = vld [vmem:[%s7587_s1 + $0x288] sm:$0xff]  ;;  %v5752_v21 = vcombine.low %v303_v10, %v307_v11  ;;  %v240_v10 = vld [vmem:[%s7587_s1 + $0x50] sm:$0xff] }
  0x1b   : > { %1008 = vmatprep.subr.bf16.mxu0 %v5719_v44  ;;  %1049 = vmatprep.subr.bf16.mxu1 %v5721_v45  ;;  %v315_v19 = vld [vmem:[%s7587_s1 + $0x2a8] sm:$0xff]  ;;  %v5759_v22 = vcombine.high %v310_v16, %v314_v17  ;;  %v318_v24 = vld [vmem:[%s7587_s1 + $0x2c0] sm:$0xff]  ;;  %v5758_v28 = vcombine.low %v310_v16, %v314_v17  ;;  %v244_v11 = vld [vmem:[%s7587_s1 + $0x70] sm:$0xff] }
  0x1c   : > { %v5761_v23 = vcombine.high %v311_v18, %v315_v19  ;;  %v322_v25 = vld [vmem:[%s7587_s1 + $0x2e0] sm:$0xff]  ;;  %v319_v26 = vld [vmem:[%s7587_s1 + $0x2c8] sm:$0xff]  ;;  %v5760_v29 = vcombine.low %v311_v18, %v315_v19  ;;  %v5691_v17 = vcombine.high %v240_v10, %v244_v11  ;;  %v248_v19 = vld [vmem:[%s7587_s1 + $0x90] sm:$0xff] }
  0x1d   : > { %v323_v27 = vld [vmem:[%s7587_s1 + $0x2e8] sm:$0xff]  ;;  %v5767_v30 = vcombine.high %v318_v24, %v322_v25  ;;  %v326_v32 = vld [vmem:[%s7587_s1 + $0x300] sm:$0xff]  ;;  %v5766_v36 = vcombine.low %v318_v24, %v322_v25 }
  0x1e   : > { %1009 = vmatpush1.bf16.msra.mxu0 %v5718_v50  ;;  %1050 = vmatpush1.bf16.msra.mxu1 %v5720_v51  ;;  %v5769_v31 = vcombine.high %v319_v26, %v323_v27  ;;  %v330_v33 = vld [vmem:[%s7587_s1 + $0x320] sm:$0xff]  ;;  %v327_v34 = vld [vmem:[%s7587_s1 + $0x308] sm:$0xff]  ;;  %v5768_v37 = vcombine.low %v319_v26, %v323_v27  ;;  %v256_v27 = vld [vmem:[%s7587_s1 + $0xd0] sm:$0xff] }
  0x1f   : > { %1010 = vmatprep.subr.bf16.mxu0 %v5727_v52  ;;  %1051 = vmatprep.subr.bf16.mxu1 %v5729_v54  ;;  %v331_v35 = vld [vmem:[%s7587_s1 + $0x328] sm:$0xff]  ;;  %v5775_v38 = vcombine.high %v326_v32, %v330_v33  ;;  %v334_v40 = vld [vmem:[%s7587_s1 + $0x340] sm:$0xff]  ;;  %v5774_v44 = vcombine.low %v326_v32, %v330_v33 }
  0x20   : > { %v5777_v39 = vcombine.high %v327_v34, %v331_v35  ;;  %v338_v41 = vld [vmem:[%s7587_s1 + $0x360] sm:$0xff]  ;;  %v335_v42 = vld [vmem:[%s7587_s1 + $0x348] sm:$0xff]  ;;  %v5776_v45 = vcombine.low %v327_v34, %v331_v35  ;;  %v264_v35 = vld [vmem:[%s7587_s1 + $0x110] sm:$0xff] }
  0x21   : > { %v339_v43 = vld [vmem:[%s7587_s1 + $0x368] sm:$0xff]  ;;  %v5783_v46 = vcombine.high %v334_v40, %v338_v41  ;;  %v342_v48 = vld [vmem:[%s7587_s1 + $0x380] sm:$0xff]  ;;  %v5782_v52 = vcombine.low %v334_v40, %v338_v41 }
  0x22   : > { %1011 = vmatpush1.bf16.msra.mxu0 %v5726_v60  ;;  %1052 = vmatpush1.bf16.msra.mxu1 %v5728_v61  ;;  %v5785_v47 = vcombine.high %v335_v42, %v339_v43  ;;  %v346_v49 = vld [vmem:[%s7587_s1 + $0x3a0] sm:$0xff]  ;;  %v343_v50 = vld [vmem:[%s7587_s1 + $0x388] sm:$0xff]  ;;  %v5784_v53 = vcombine.low %v335_v42, %v339_v43  ;;  %v272_v42 = vld [vmem:[%s7587_s1 + $0x150] sm:$0xff] }
  0x23   : > { %1012 = vmatprep.subr.bf16.mxu0 %v5735_v62  ;;  %1053 = vmatprep.subr.bf16.mxu1 %v5737_v63  ;;  %v347_v51 = vld [vmem:[%s7587_s1 + $0x3a8] sm:$0xff]  ;;  %v5791_v54 = vcombine.high %v342_v48, %v346_v49  ;;  %v350_v56 = vld [vmem:[%s7587_s1 + $0x3c0] sm:$0xff]  ;;  %v5790_v61 = vcombine.low %v342_v48, %v346_v49  ;;  %v276_v43 = vld [vmem:[%s7587_s1 + $0x170] sm:$0xff] }
  0x24   : > { %v5793_v55 = vcombine.high %v343_v50, %v347_v51  ;;  %v354_v58 = vld [vmem:[%s7587_s1 + $0x3e0] sm:$0xff]  ;;  %v351_v59 = vld [vmem:[%s7587_s1 + $0x3c8] sm:$0xff]  ;;  %v5792_v62 = vcombine.low %v343_v50, %v347_v51  ;;  %v5723_v48 = vcombine.high %v272_v42, %v276_v43  ;;  %v280_v50 = vld [vmem:[%s7587_s1 + $0x190] sm:$0xff] }
  0x25   : > { %v355_v60 = vld [vmem:[%s7587_s1 + $0x3e8] sm:$0xff]  ;;  %v5799_v63 = vcombine.high %v350_v56, %v354_v58  ;;  %v284_v51 = vld [vmem:[%s7587_s1 + $0x1b0] sm:$0xff] }
  0x26   : > { %1013 = vmatpush1.bf16.msra.mxu0 %v5734_v4  ;;  %1054 = vmatpush1.bf16.msra.mxu1 %v5736_v5  ;;  %v5801_v0 = vcombine.high %v351_v59, %v355_v60  ;;  %v237_v4 = vld [vmem:[%s7587_s1 + $0x38] sm:$0xff]  ;;  %v5798_v5 = vcombine.low %v350_v56, %v354_v58  ;;  %v5731_v56 = vcombine.high %v280_v50, %v284_v51 }
  0x27   : > { %1014 = vmatprep.subr.bf16.mxu0 %v5743_v6  ;;  %1055 = vmatprep.subr.bf16.mxu1 %v5745_v7  ;;  %v226_v6 = vld [vmem:[%s6138_s29] sm:$0xff]  ;;  %v5800_v7 = vcombine.low %v351_v59, %v355_v60  ;;  %v5685_v9 = vcombine.high %v233_v3, %v237_v4  ;;  %v5684_v16 = vcombine.low %v233_v3, %v237_v4  ;;  %v288_v59 = vld [vmem:[%s7587_s1 + $0x1d0] sm:$0xff]  ;;  %s6005_s29 = smov 33  }
  0x28   : > { %v292_v60 = vld [vmem:[%s7587_s1 + $0x1f0] sm:$0xff] }
  0x29   : > { %v296_v3 = vld [vmem:[%s7587_s1 + $0x210] sm:$0xff] }
  0x2a   : > { %1015 = vmatpush1.bf16.msra.mxu0 %v5742_v12  ;;  %1056 = vmatpush1.bf16.msra.mxu1 %v5744_v13  ;;  %v6278_v12 = vpack.c.bf16 %v226_v6, %v226_v6  ;;  %v241_v13 = vld [vmem:[%s7587_s1 + $0x58] sm:$0xff]  ;;  %v300_v4 = vld [vmem:[%s7587_s1 + $0x230] sm:$0xff] }
  0x2b   : > { %1016 = vmatprep.subr.bf16.mxu0 %v5751_v14  ;;  %1057 = vmatprep.subr.bf16.mxu1 %v5753_v15  ;;  %v245_v14 = vld [vmem:[%s7587_s1 + $0x78] sm:$0xff]  ;;  %v5682_v15 = vcombine.low %v232_v1, %v236_v2  ;;  %v5739_v1 = vcombine.high %v288_v59, %v292_v60 }
  0x2c   : > { %v5693_v18 = vcombine.high %v241_v13, %v245_v14  ;;  %v5692_v24 = vcombine.low %v241_v13, %v245_v14  ;;  %v301_v6 = vld [vmem:[%s7587_s1 + $0x238] sm:$0xff]  ;;  %v308_v13 = vld [vmem:[%s7587_s1 + $0x270] sm:$0xff] }
  0x2d   : > { %v305_v14 = vld [vmem:[%s7587_s1 + $0x258] sm:$0xff] }
  0x2e   : > { %1017 = vmatpush1.bf16.msra.mxu0 %v5750_v20  ;;  %1058 = vmatpush1.bf16.msra.mxu1 %v5752_v21  ;;  %v252_v20 = vld [vmem:[%s7587_s1 + $0xb0] sm:$0xff]  ;;  %v249_v21 = vld [vmem:[%s7587_s1 + $0x98] sm:$0xff] }
  0x2f   : > { %1018 = vmatprep.subr.bf16.mxu0 %v5759_v22  ;;  %1059 = vmatprep.subr.bf16.mxu1 %v5761_v23  ;;  %v253_v22 = vld [vmem:[%s7587_s1 + $0xb8] sm:$0xff]  ;;  %v5690_v23 = vcombine.low %v240_v10, %v244_v11  ;;  %v5699_v25 = vcombine.high %v248_v19, %v252_v20  ;;  %v304_v11 = vld [vmem:[%s7587_s1 + $0x250] sm:$0xff] }
  0x30   : > { %v5701_v26 = vcombine.high %v249_v21, %v253_v22  ;;  %v5700_v32 = vcombine.low %v249_v21, %v253_v22  ;;  %v316_v21 = vld [vmem:[%s7587_s1 + $0x2b0] sm:$0xff]  ;;  %v313_v22 = vld [vmem:[%s7587_s1 + $0x298] sm:$0xff] }
  0x32   : > { %1019 = vmatpush1.bf16.msra.mxu0 %v5758_v28  ;;  %1060 = vmatpush1.bf16.msra.mxu1 %v5760_v29  ;;  %v260_v28 = vld [vmem:[%s7587_s1 + $0xf0] sm:$0xff]  ;;  %v257_v29 = vld [vmem:[%s7587_s1 + $0xd8] sm:$0xff] }
  0x33   : > { %1020 = vmatprep.subr.bf16.mxu0 %v5767_v30  ;;  %1061 = vmatprep.subr.bf16.mxu1 %v5769_v31  ;;  %v261_v30 = vld [vmem:[%s7587_s1 + $0xf8] sm:$0xff]  ;;  %v5698_v31 = vcombine.low %v248_v19, %v252_v20  ;;  %v5707_v33 = vcombine.high %v256_v27, %v260_v28  ;;  %v312_v20 = vld [vmem:[%s7587_s1 + $0x290] sm:$0xff] }
  0x34   : > { %v5709_v34 = vcombine.high %v257_v29, %v261_v30 }
  0x36   : > { %1021 = vmatpush1.bf16.msra.mxu0 %v5766_v36  ;;  %1062 = vmatpush1.bf16.msra.mxu1 %v5768_v37  ;;  %v268_v36 = vld [vmem:[%s7587_s1 + $0x130] sm:$0xff]  ;;  %v269_v37 = vld [vmem:[%s7587_s1 + $0x138] sm:$0xff] }
  0x37   : > { %1022 = vmatprep.subr.bf16.mxu0 %v5775_v38  ;;  %1063 = vmatprep.subr.bf16.mxu1 %v5777_v39  ;;  %v5706_v38 = vcombine.low %v256_v27, %v260_v28  ;;  %v5708_v39 = vcombine.low %v257_v29, %v261_v30  ;;  %v5715_v40 = vcombine.high %v264_v35, %v268_v36  ;;  %v320_v28 = vld [vmem:[%s7587_s1 + $0x2d0] sm:$0xff]  ;;  %v321_v30 = vld [vmem:[%s7587_s1 + $0x2d8] sm:$0xff] }
  0x38   : > { %v324_v29 = vld [vmem:[%s7587_s1 + $0x2f0] sm:$0xff] }
  0x3a   : > { %1023 = vmatpush1.bf16.msra.mxu0 %v5774_v44  ;;  %1064 = vmatpush1.bf16.msra.mxu1 %v5776_v45  ;;  %v273_v44 = vld [vmem:[%s7587_s1 + $0x158] sm:$0xff] }
  0x3b   : > { %1024 = vmatprep.subr.bf16.mxu0 %v5783_v46  ;;  %1065 = vmatprep.subr.bf16.mxu1 %v5785_v47  ;;  %v277_v45 = vld [vmem:[%s7587_s1 + $0x178] sm:$0xff]  ;;  %v5714_v46 = vcombine.low %v264_v35, %v268_v36  ;;  %v328_v36 = vld [vmem:[%s7587_s1 + $0x310] sm:$0xff] }
  0x3c   : > { %v5725_v49 = vcombine.high %v273_v44, %v277_v45 }
  0x3e   : > { %1025 = vmatpush1.bf16.msra.mxu0 %v5782_v52  ;;  %1066 = vmatpush1.bf16.msra.mxu1 %v5784_v53  ;;  %v281_v52 = vld [vmem:[%s7587_s1 + $0x198] sm:$0xff] }
  0x3f   : > { %1026 = vmatprep.subr.bf16.mxu0 %v5791_v54  ;;  %1067 = vmatprep.subr.bf16.mxu1 %v5793_v55  ;;  %v285_v53 = vld [vmem:[%s7587_s1 + $0x1b8] sm:$0xff]  ;;  %v5722_v54 = vcombine.low %v272_v42, %v276_v43  ;;  %v5724_v55 = vcombine.low %v273_v44, %v277_v45  ;;  %v336_v43 = vld [vmem:[%s7587_s1 + $0x350] sm:$0xff] }
  0x40   : > { %v5733_v58 = vcombine.high %v281_v52, %v285_v53  ;;  %v340_v44 = vld [vmem:[%s7587_s1 + $0x370] sm:$0xff]  ;;  %v337_v45 = vld [vmem:[%s7587_s1 + $0x358] sm:$0xff] }
  0x42   : > { %1027 = vmatpush1.bf16.msra.mxu0 %v5790_v61  ;;  %1068 = vmatpush1.bf16.msra.mxu1 %v5792_v62  ;;  %v289_v61 = vld [vmem:[%s7587_s1 + $0x1d8] sm:$0xff] }
  0x43   : > { %1028 = vmatprep.subr.bf16.mxu0 %v5799_v63  ;;  %1069 = vmatprep.subr.bf16.mxu1 %v5801_v0  ;;  %v293_v62 = vld [vmem:[%s7587_s1 + $0x1f8] sm:$0xff]  ;;  %v5730_v63 = vcombine.low %v280_v50, %v284_v51  ;;  %v5732_v0 = vcombine.low %v281_v52, %v285_v53  ;;  %v344_v51 = vld [vmem:[%s7587_s1 + $0x390] sm:$0xff] }
  0x44   : > { %v5741_v2 = vcombine.high %v289_v61, %v293_v62  ;;  %v348_v52 = vld [vmem:[%s7587_s1 + $0x3b0] sm:$0xff]  ;;  %v345_v53 = vld [vmem:[%s7587_s1 + $0x398] sm:$0xff] }
  0x46   : > { %1029 = vmatpush1.bf16.msra.mxu0 %v5798_v5  ;;  %1070 = vmatpush1.bf16.msra.mxu1 %v5800_v7  ;;  %v297_v5 = vld [vmem:[%s7587_s1 + $0x218] sm:$0xff]  ;;  %v5738_v7 = vcombine.low %v288_v59, %v292_v60  ;;  %v352_v60 = vld [vmem:[%s7587_s1 + $0x3d0] sm:$0xff] }
  0x47   : > { %1080 = vmatprep.subr.bf16.mxu0 %v5683_v8  ;;  %1121 = vmatprep.subr.bf16.mxu1 %v5685_v9  ;;  %v5740_v8 = vcombine.low %v289_v61, %v293_v62  ;;  %v5747_v9 = vcombine.high %v296_v3, %v300_v4  ;;  %v5749_v10 = vcombine.high %v297_v5, %v301_v6  ;;  %v356_v61 = vld [vmem:[%s7587_s1 + $0x3f0] sm:$0xff]  ;;  %v353_v62 = vld [vmem:[%s7587_s1 + $0x3d8] sm:$0xff] }
  0x49   : > { %1031 = vmatmul.mubr.bf16.vlgmr.msra.gmra.mrb[0].mxu0 %v6278_v12  ;;  %1072 = vmatmul.mubr.bf16.vlgmr.msra.gmra.mrb[0].mxu1 %v6278_v12 }
  0x4a   : > { %1081 = vmatpush1.bf16.msra.mxu0 %v5682_v15  ;;  %1122 = vmatpush1.bf16.msra.mxu1 %v5684_v16  ;;  %v309_v15 = vld [vmem:[%s7587_s1 + $0x278] sm:$0xff]  ;;  %v5746_v16 = vcombine.low %v296_v3, %v300_v4  ;;  %v5802_v4 = vcombine.low %v352_v60, %v356_v61 }
  0x4b   : > { %1082 = vmatprep.subr.bf16.mxu0 %v5691_v17  ;;  %1123 = vmatprep.subr.bf16.mxu1 %v5693_v18  ;;  %v5748_v17 = vcombine.low %v297_v5, %v301_v6  ;;  %v5755_v18 = vcombine.high %v304_v11, %v308_v13  ;;  %v5757_v19 = vcombine.high %v305_v14, %v309_v15 }
  0x4c   : > { %1112 = vmatprep.mubr.bf16.mxu0 %v6153_v57  ;;  %1153 = vmatprep.mubr.bf16.mxu1 %v6153_v57  ;;  %v265_v57 = vld [vmem:[%s7587_s1 + $0x118] sm:$0xff] }
  0x4d   : > { %v5717_v41 = vcombine.high %v265_v57, %v269_v37  ;;  %v5716_v47 = vcombine.low %v265_v57, %v269_v37  ;;  %v332_v57 = vld [vmem:[%s7587_s1 + $0x330] sm:$0xff]  ;;  %v329_v37 = vld [vmem:[%s7587_s1 + $0x318] sm:$0xff] }
  0x4e   : > { %1083 = vmatpush1.bf16.msra.mxu0 %v5690_v23  ;;  %1124 = vmatpush1.bf16.msra.mxu1 %v5692_v24  ;;  %v317_v23 = vld [vmem:[%s7587_s1 + $0x2b8] sm:$0xff]  ;;  %v5754_v24 = vcombine.low %v304_v11, %v308_v13 }
  0x4f   : > { %1084 = vmatprep.subr.bf16.mxu0 %v5699_v25  ;;  %1125 = vmatprep.subr.bf16.mxu1 %v5701_v26  ;;  %v5756_v25 = vcombine.low %v305_v14, %v309_v15  ;;  %v5763_v26 = vcombine.high %v312_v20, %v316_v21  ;;  %v5765_v27 = vcombine.high %v313_v22, %v317_v23 }
  0x52   : > { %1085 = vmatpush1.bf16.msra.mxu0 %v5698_v31  ;;  %1126 = vmatpush1.bf16.msra.mxu1 %v5700_v32  ;;  %v325_v31 = vld [vmem:[%s7587_s1 + $0x2f8] sm:$0xff]  ;;  %v5762_v32 = vcombine.low %v312_v20, %v316_v21 }
  0x53   : > { %1086 = vmatprep.subr.bf16.mxu0 %v5707_v33  ;;  %1127 = vmatprep.subr.bf16.mxu1 %v5709_v34  ;;  %v5764_v33 = vcombine.low %v313_v22, %v317_v23  ;;  %v5771_v34 = vcombine.high %v320_v28, %v324_v29  ;;  %v5773_v35 = vcombine.high %v321_v30, %v325_v31  ;;  %v1178_v23 = vlaneseq }
  0x56   : > { %1087 = vmatpush1.bf16.msra.mxu0 %v5706_v38  ;;  %1128 = vmatpush1.bf16.msra.mxu1 %v5708_v39  ;;  %v333_v38 = vld [vmem:[%s7587_s1 + $0x338] sm:$0xff]  ;;  %v5770_v39 = vcombine.low %v320_v28, %v324_v29 }
  0x57   : > { %1088 = vmatprep.subr.bf16.mxu0 %v5715_v40  ;;  %1129 = vmatprep.subr.bf16.mxu1 %v5717_v41  ;;  %v5772_v40 = vcombine.low %v321_v30, %v325_v31  ;;  %v5779_v41 = vcombine.high %v328_v36, %v332_v57  ;;  %v5781_v42 = vcombine.high %v329_v37, %v333_v38 }
  0x5a   : > { %1089 = vmatpush1.bf16.msra.mxu0 %v5714_v46  ;;  %1130 = vmatpush1.bf16.msra.mxu1 %v5716_v47  ;;  %v341_v46 = vld [vmem:[%s7587_s1 + $0x378] sm:$0xff]  ;;  %v5778_v47 = vcombine.low %v328_v36, %v332_v57 }
  0x5b   : > { %1090 = vmatprep.subr.bf16.mxu0 %v5723_v48  ;;  %1131 = vmatprep.subr.bf16.mxu1 %v5725_v49  ;;  %v5780_v48 = vcombine.low %v329_v37, %v333_v38  ;;  %v5787_v49 = vcombine.high %v336_v43, %v340_v44  ;;  %v5789_v50 = vcombine.high %v337_v45, %v341_v46 }
  0x5e   : > { %1091 = vmatpush1.bf16.msra.mxu0 %v5722_v54  ;;  %1132 = vmatpush1.bf16.msra.mxu1 %v5724_v55  ;;  %v349_v54 = vld [vmem:[%s7587_s1 + $0x3b8] sm:$0xff]  ;;  %v5786_v55 = vcombine.low %v336_v43, %v340_v44 }
  0x5f   : > { %1092 = vmatprep.subr.bf16.mxu0 %v5731_v56  ;;  %1133 = vmatprep.subr.bf16.mxu1 %v5733_v58  ;;  %v5788_v56 = vcombine.low %v337_v45, %v341_v46  ;;  %v5795_v58 = vcombine.high %v344_v51, %v348_v52  ;;  %v5797_v59 = vcombine.high %v345_v53, %v349_v54 }
  0x62   : > { %1093 = vmatpush1.bf16.msra.mxu0 %v5730_v63  ;;  %1134 = vmatpush1.bf16.msra.mxu1 %v5732_v0  ;;  %v357_v63 = vld [vmem:[%s7587_s1 + $0x3f8] sm:$0xff]  ;;  %v5794_v0 = vcombine.low %v344_v51, %v348_v52 }
  0x63   : > { %1094 = vmatprep.subr.bf16.mxu0 %v5739_v1  ;;  %1135 = vmatprep.subr.bf16.mxu1 %v5741_v2  ;;  %v5796_v1 = vcombine.low %v345_v53, %v349_v54  ;;  %v5803_v2 = vcombine.high %v352_v60, %v356_v61  ;;  %v5805_v3 = vcombine.high %v353_v62, %v357_v63  ;;  %v1189_v54 = vld [vmem:[%s7589_s3] ss:$8 sm:$0xf] }
  0x64   : > { %v5804_v5 = vcombine.low %v353_v62, %v357_v63 }
  0x66   : > { %1095 = vmatpush1.bf16.msra.mxu0 %v5738_v7  ;;  %1136 = vmatpush1.bf16.msra.mxu1 %v5740_v8 }
  0x67   : > { %1096 = vmatprep.subr.bf16.mxu0 %v5747_v9  ;;  %1137 = vmatprep.subr.bf16.mxu1 %v5749_v10 }
  0x6a   : > { %1097 = vmatpush1.bf16.msra.mxu0 %v5746_v16  ;;  %1138 = vmatpush1.bf16.msra.mxu1 %v5748_v17 }
  0x6b   : > { %1098 = vmatprep.subr.bf16.mxu0 %v5755_v18  ;;  %1139 = vmatprep.subr.bf16.mxu1 %v5757_v19 }
  0x6e   : > { %1099 = vmatpush1.bf16.msra.mxu0 %v5754_v24  ;;  %1140 = vmatpush1.bf16.msra.mxu1 %v5756_v25  ;;  %v6515_v24 = vshrl.u32 %v1178_v23, 7  ;;  %v5806_v25 = vld [vmem:[%s7589_s3 + $0x1] ss:$8 sm:$0xf] }
  0x6f   : > { %1100 = vmatprep.subr.bf16.mxu0 %v5763_v26  ;;  %1141 = vmatprep.subr.bf16.mxu1 %v5765_v27  ;;  %v5807_v26 = vld [vmem:[%s7589_s3 + $0x1] ss:$8 sm:$0xf0]  ;;  %v6525_v27 = vand.u32 127, %v1178_v23 }
  0x70   : > { %v6527_v28 = vor.u32 %v5807_v26, %v5806_v25  ;;  %v6530_v29 = vsub.s32 1, %v6515_v24  ;;  %v6533_v30 = vsub.s32 2, %v6515_v24  ;;  %v6536_v31 = vsub.s32 3, %v6515_v24 }
  0x71   : > { %vm1266_vm0 = vcmp.lt.s32.totalorder %v6525_v27, 32  ;;  %v6616_v51 = vsub.s32 4, %v6515_v24  ;;  %v6636_v61 = vsub.s32 5, %v6515_v24  ;;  %vm1180_vm3 = vcmp.lt.s32.totalorder %v6525_v27, 33 }
  0x72   : > { %1101 = vmatpush1.bf16.msra.mxu0 %v5762_v32  ;;  %1142 = vmatpush1.bf16.msra.mxu1 %v5764_v33  ;;  %v1295_v36 = vrot.slane %v6527_v28, %v6536_v31  ;;  %vm2146_vm4 = vcmp.lt.s32.totalorder %v6525_v27, 31  ;;  %vm2645_vm5 = vcmp.lt.s32.totalorder %v6525_v27, 1  ;;  %vm3565_vm6 = vcmp.lt.s32.totalorder %v6525_v27, 127 }
  0x73   : > { %1102 = vmatprep.subr.bf16.mxu0 %v5771_v34  ;;  %1143 = vmatprep.subr.bf16.mxu1 %v5773_v35  ;;  %v1287_v34 = vrot.slane %v6527_v28, %v6530_v29  ;;  %v1291_v35 = vrot.slane %v6527_v28, %v6533_v30  ;;  %v1299_v62 = vrot.slane %v6527_v28, %v6616_v51  ;;  %vm4064_vm7 = vcmp.lt.s32.totalorder %v6525_v27, 97 }
  0x74   : > { %vm4563_vm8 = vcmp.lt.s32.totalorder %v6525_v27, 96  ;;  %vm5062_vm9 = vcmp.lt.s32.totalorder %v6525_v27, 95 }
  0x76   : > { %1103 = vmatpush1.bf16.msra.mxu0 %v5770_v39  ;;  %1144 = vmatpush1.bf16.msra.mxu1 %v5772_v40 }
  0x77   : > { %1104 = vmatprep.subr.bf16.mxu0 %v5779_v41  ;;  %1145 = vmatprep.subr.bf16.mxu1 %v5781_v42 }
  0x7a   : > { %1105 = vmatpush1.bf16.msra.mxu0 %v5778_v47  ;;  %1146 = vmatpush1.bf16.msra.mxu1 %v5780_v48  ;;  %v6579_v48 = vld [vmem:[%s7588_s2 + $0x2] sm:$0x3] }
  0x7b   : > { %1106 = vmatprep.subr.bf16.mxu0 %v5787_v49  ;;  %1147 = vmatprep.subr.bf16.mxu1 %v5789_v50  ;;  %v6609_v49 = vsub.s32 0, %v6515_v24  ;;  %v6613_v50 = vsub.s32 7, %v6515_v24 }
  0x7d   : > { %v1283_v53 = vrot.slane %v6527_v28, %v6609_v49 }
  0x7e   : > { %1107 = vmatpush1.bf16.msra.mxu0 %v5786_v55  ;;  %1148 = vmatpush1.bf16.msra.mxu1 %v5788_v56  ;;  %v1190_v55 = vld [vmem:[%s7589_s3] ss:$8 sm:$0xf0] }
  0x7f   : > { %1108 = vmatprep.subr.bf16.mxu0 %v5795_v58  ;;  %1149 = vmatprep.subr.bf16.mxu1 %v5797_v59  ;;  %v1311_v58 = vrot.slane %v6527_v28, %v6613_v50  ;;  %v6633_v60 = vor.u32 %v1190_v55, %v1189_v54 }
  0x81   : > { %v1212_v55 = vrot.slane %v6633_v60, %v6616_v51 }
  0x82   : > { %1109 = vmatpush1.bf16.msra.mxu0 %v5794_v0  ;;  %1150 = vmatpush1.bf16.msra.mxu1 %v5796_v1  ;;  %v6642_v1 = vsub.s32 6, %v6515_v24 }
  0x83   : > { %1110 = vmatprep.subr.bf16.mxu0 %v5803_v2  ;;  %1151 = vmatprep.subr.bf16.mxu1 %v5805_v3 }
  0x86   : > { %1111 = vmatpush1.bf16.msra.mxu0 %v5802_v4  ;;  %1152 = vmatpush1.bf16.msra.mxu1 %v5804_v5 }
  0x89   : > { %1113 = vmatmul.mubr.bf16.vlgmr.msra.gmra.mrb[4].mxu0 %v6278_v12  ;;  %1154 = vmatmul.mubr.bf16.vlgmr.msra.gmra.mrb[4].mxu1 %v6278_v12  ;;  %v6004_v12 = vmov 0  }
  0x8a   : > { %1399 = vmatprep.mubr.bf16.mxu0 %v6004_v12  ;;  %1440 = vmatprep.mubr.bf16.mxu1 %v6004_v12 }
  0x8b   : > { %5994 = vset.pattern.permute.xlu1 %v6004_v12  ;;  %5993 = vset.pattern.permute.xlu0 %v6004_v12 }
 0x11c   : > { %v6460_v6 = vpop.f32.mrb[0].mxu0  ;;  %v6462_v7 = vpop.f32.mrb[0].mxu1 }
 0x11d   : > { %1250 = vrot.lane.b32.xlu0 %v6460_v6, %s6003_s6  ;;  %v6466_v8 = vpop.f32.mrb[1].mxu0  ;;  %1254 = vrot.lane.b32.xlu1 %v6462_v7, %s6003_s6  ;;  %v6470_v9 = vpop.f32.mrb[1].mxu1 }
 0x11e   : > { %v1036_v10 = vpop.f32.mrb[2].mxu0  ;;  %v1077_v11 = vpop.f32.mrb[2].mxu1 }
 0x11f   : > { %v1037_v13 = vpop.f32.mrb[3].mxu0  ;;  %v1078_v14 = vpop.f32.mrb[3].mxu1  ;;  %v1200_v11 = vrot.slane %v6633_v60, %v6530_v29 }
 0x120   : > { %v1303_v13 = vrot.slane %v6527_v28, %v6636_v61 }
 0x121   : > { %1252 = vrot.lane.b32.xlu0 %v6466_v8, %s6003_s6  ;;  %1256 = vrot.lane.b32.xlu1 %v6470_v9, %s6003_s6 }
 0x15c   : > { %v6480_v15 = vpop.f32.mrb[4].mxu0  ;;  %v6482_v16 = vpop.f32.mrb[4].mxu1 }
 0x15d   : > { %1258 = vrot.lane.b32.xlu1 %v6480_v15, %s6003_s6  ;;  %v6486_v17 = vpop.f32.mrb[5].mxu0  ;;  %v6488_v18 = vpop.f32.mrb[5].mxu1 }
 0x15e   : > { %v1118_v19 = vpop.f32.mrb[6].mxu0  ;;  %v1159_v20 = vpop.f32.mrb[6].mxu1  ;;  %1264 = vrot.lane.b32.xlu0 %v6488_v18, %s6003_s6 }
 0x15f   : > { %v1119_v21 = vpop.f32.mrb[7].mxu0  ;;  %v1160_v22 = vpop.f32.mrb[7].mxu1 }
 0x160   : > { %v1307_v22 = vrot.slane %v6527_v28, %v6642_v1  ;;  %v1208_v28 = vrot.slane %v6633_v60, %v6536_v31 }
 0x161   : > { %1262 = vrot.lane.b32.xlu1 %v6482_v16, %s6003_s6 }
 0x162   : > { %1162 = vrot.lane.b32.xlu0 %v6460_v6, %s6005_s29 }
 0x165   : > { %1164 = vrot.lane.b32.xlu1 %v6466_v8, %s6005_s29 }
 0x166   : > { %1260 = vrot.lane.b32.xlu0 %v6486_v17, %s6003_s6 }
 0x169   : > { %1168 = vrot.lane.b32.xlu1 %v6470_v9, %s6005_s29 }
 0x16a   : > { %1166 = vrot.lane.b32.xlu0 %v6462_v7, %s6005_s29 }
 0x16d   : > { %1170 = vrot.lane.b32.xlu1 %v6480_v15, %s6005_s29 }
 0x16e   : > { %1176 = vrot.lane.b32.xlu0 %v6488_v18, %s6005_s29 }
 0x171   : > { %1174 = vrot.lane.b32.xlu1 %v6482_v16, %s6005_s29 }
 0x172   : > { %1172 = vrot.lane.b32.xlu0 %v6486_v17, %s6005_s29 }
 0x175   : > { %2132 = vrot.lane.b32.xlu1 %v6466_v8, %s6006_s7 }
 0x176   : > { %2130 = vrot.lane.b32.xlu0 %v6460_v6, %s6006_s7 }
 0x179   : > { %2136 = vrot.lane.b32.xlu1 %v6470_v9, %s6006_s7 }
 0x17a   : > { %2134 = vrot.lane.b32.xlu0 %v6462_v7, %s6006_s7 }
 0x17d   : > { %2138 = vrot.lane.b32.xlu1 %v6480_v15, %s6006_s7 }
 0x17e   : > { %2144 = vrot.lane.b32.xlu0 %v6488_v18, %s6006_s7 }
 0x181   : > { %2142 = vrot.lane.b32.xlu1 %v6482_v16, %s6006_s7 }
 0x182   : > { %2140 = vrot.lane.b32.xlu0 %v6486_v17, %s6006_s7 }
 0x185   : > { %2631 = vrot.lane.b32.xlu1 %v6466_v8, %s6007_s8 }
 0x186   : > { %2629 = vrot.lane.b32.xlu0 %v6460_v6, %s6007_s8 }
 0x189   : > { %2635 = vrot.lane.b32.xlu1 %v6470_v9, %s6007_s8 }
 0x18a   : > { %2633 = vrot.lane.b32.xlu0 %v6462_v7, %s6007_s8 }
 0x18d   : > { %2637 = vrot.lane.b32.xlu1 %v6480_v15, %s6007_s8 }
 0x18e   : > { %2643 = vrot.lane.b32.xlu0 %v6488_v18, %s6007_s8 }
 0x18f   : > { %v6539_v32 = vpop.permute.xlu0 %1250  ;;  %v1255_v33 = vpop.permute.xlu1 %1254 }
 0x191   : > { %2641 = vrot.lane.b32.xlu1 %v6482_v16, %s6007_s8 }
 0x192   : > { %2639 = vrot.lane.b32.xlu0 %v6486_v17, %s6007_s8 }
 0x193   : > { %v1253_v57 = vpop.permute.xlu0 %1252  ;;  %v6550_v37 = vpop.permute.xlu1 %1256 }
 0x194   : > { %v1272_v38 = vsel %vm1266_vm0, %v1253_v57, %v1255_v33  ;;  %v1273_v39 = vsel %vm1266_vm0, %v6539_v32, %v1253_v57  ;;  %v1271_v40 = vsel %vm1266_vm0, %v1255_v33, %v6550_v37 }
 0x195   : > { %v1321_v41 = vmul.f32 %v1287_v34, %v1273_v39  ;;  %v1322_v42 = vmul.f32 %v1291_v35, %v1272_v38  ;;  %3551 = vrot.lane.b32.xlu1 %v6466_v8, %s6008_s13  ;;  %v1323_v43 = vmul.f32 %v1295_v36, %v1271_v40 }
 0x196   : > { %3549 = vrot.lane.b32.xlu0 %v6460_v6, %s6008_s13 }
 0x197   : > { %v6561_v44 = vpack.c.bf16 %v1321_v41, %v1321_v41  ;;  %v6563_v45 = vpack.c.bf16 %v1322_v42, %v1322_v42  ;;  %v6566_v46 = vpack.c.bf16 %v1323_v43, %v1323_v43  ;;  %v1196_v42 = vrot.slane %v6633_v60, %v6609_v49 }
 0x199   : > { %3555 = vrot.lane.b32.xlu1 %v6470_v9, %s6008_s13  ;;  %v1350_v47 = vsel %vm1342_vm1, %v6563_v45, 0  ;;  %5809 = vmatprep.subr.msk.bf16.mxu0 %vm1342_vm1, %v6561_v44 }
 0x19a   : > { %5811 = vmatprep.subr.msk.bf16.mxu1 %vm1342_vm1, %v6566_v46  ;;  %3553 = vrot.lane.b32.xlu0 %v6462_v7, %s6008_s13 }
 0x19b   : > { %1409 = vmatpush1.bf16.msra.mxu1 %v1350_v47 }
 0x19d   : > { %3559 = vrot.lane.b32.xlu1 %v6486_v17, %s6008_s13 }
 0x19e   : > { %5812 = vmatmul.mubr.msk.bf16.vlgmr.msra.gmra.mrb[8].mxu1 %vm1338_vm2, %v6579_v48  ;;  %3557 = vrot.lane.b32.xlu0 %v6480_v15, %s6008_s13 }
 0x19f   : > { %1522 = vmatprep.mubr.bf16.mxu1 %v6004_v12 }
 0x1a1   : > { %3563 = vrot.lane.b32.xlu1 %v6488_v18, %s6008_s13 }
 0x1a2   : > { %3561 = vrot.lane.b32.xlu0 %v6482_v16, %s6008_s13 }
 0x1a5   : > { %4050 = vrot.lane.b32.xlu1 %v6466_v8, %s6009_s16 }
 0x1a6   : > { %4048 = vrot.lane.b32.xlu0 %v6460_v6, %s6009_s16 }
 0x1a9   : > { %4054 = vrot.lane.b32.xlu1 %v6470_v9, %s6009_s16 }
 0x1aa   : > { %4052 = vrot.lane.b32.xlu0 %v6462_v7, %s6009_s16 }
 0x1ad   : > { %4058 = vrot.lane.b32.xlu1 %v6486_v17, %s6009_s16 }
 0x1ae   : > { %4056 = vrot.lane.b32.xlu0 %v6480_v15, %s6009_s16 }
 0x1b1   : > { %4062 = vrot.lane.b32.xlu1 %v6488_v18, %s6009_s16 }
 0x1b2   : > { %4060 = vrot.lane.b32.xlu0 %v6482_v16, %s6009_s16 }
 0x1b5   : > { %4549 = vrot.lane.b32.xlu1 %v6466_v8, %s6010_s17 }
 0x1b6   : > { %4547 = vrot.lane.b32.xlu0 %v6460_v6, %s6010_s17 }
 0x1b9   : > { %4553 = vrot.lane.b32.xlu1 %v6470_v9, %s6010_s17 }
 0x1ba   : > { %4551 = vrot.lane.b32.xlu0 %v6462_v7, %s6010_s17 }
 0x1bd   : > { %4557 = vrot.lane.b32.xlu1 %v6486_v17, %s6010_s17 }
 0x1be   : > { %4555 = vrot.lane.b32.xlu0 %v6480_v15, %s6010_s17 }
 0x1c1   : > { %4561 = vrot.lane.b32.xlu1 %v6488_v18, %s6010_s17 }
 0x1c2   : > { %4559 = vrot.lane.b32.xlu0 %v6482_v16, %s6010_s17 }
 0x1c5   : > { %5048 = vrot.lane.b32.xlu1 %v6466_v8, %s6011_s20 }
 0x1c6   : > { %5046 = vrot.lane.b32.xlu0 %v6460_v6, %s6011_s20 }
 0x1c9   : > { %5052 = vrot.lane.b32.xlu1 %v6470_v9, %s6011_s20 }
 0x1ca   : > { %5050 = vrot.lane.b32.xlu0 %v6462_v7, %s6011_s20 }
 0x1cd   : > { %5056 = vrot.lane.b32.xlu1 %v6486_v17, %s6011_s20 }
 0x1ce   : > { %5054 = vrot.lane.b32.xlu0 %v6480_v15, %s6011_s20 }
 0x1cf   : > { %v1259_v52 = vpop.permute.xlu1 %1258 }
 0x1d0   : > { %v1265_v56 = vpop.permute.xlu0 %1264  ;;  %v1270_v2 = vsel %vm1266_vm0, %v6550_v37, %v1259_v52 }
 0x1d1   : > { %5060 = vrot.lane.b32.xlu1 %v6488_v18, %s6011_s20  ;;  %v1274_v59 = vsel %vm1266_vm0, %v1265_v56, %v6539_v32  ;;  %v1324_v14 = vmul.f32 %v1299_v62, %v1270_v2  ;;  %v1204_v32 = vrot.slane %v6633_v60, %v6533_v30 }
 0x1d2   : > { %v1320_v63 = vmul.f32 %v1283_v53, %v1274_v59  ;;  %5058 = vrot.lane.b32.xlu0 %v6482_v16, %s6011_s20 }
 0x1d3   : > { %v1263_v0 = vpop.permute.xlu1 %1262  ;;  %v6674_v33 = vpack.c.bf16 %v1324_v14, %v1324_v14 }
 0x1d4   : > { %v1267_v3 = vsel %vm1266_vm0, %v1263_v0, %v1265_v56  ;;  %v6649_v4 = vpack.c.bf16 %v1320_v63, %v1320_v63  ;;  %v1163_v10 = vpop.permute.xlu0 %1162 }
 0x1d5   : > { %v1327_v5 = vmul.f32 %v1311_v58, %v1267_v3  ;;  %v1356_v54 = vsel %vm1342_vm1, %v6674_v33, 0  ;;  %v1224_v58 = vrot.slane %v6633_v60, %v6613_v50 }
 0x1d6   : > { %v1344_v20 = vsel %vm1342_vm1, %v6649_v4, 0 }
 0x1d7   : > { %v6656_v19 = vpack.c.bf16 %v1327_v5, %v1327_v5  ;;  %v1165_v21 = vpop.permute.xlu1 %1164  ;;  %1368 = vmatpush1.bf16.msra.mxu0 %v1344_v20 }
 0x1d8   : > { %v1187_v23 = vsel %vm1180_vm3, %v1163_v10, %v1165_v21  ;;  %v1261_v24 = vpop.permute.xlu0 %1260 }
 0x1d9   : > { %5815 = vmatprep.subr.msk.bf16.mxu1 %vm1342_vm1, %v6656_v19  ;;  %v1268_v25 = vsel %vm1266_vm0, %v1261_v24, %v1263_v0  ;;  %v1269_v26 = vsel %vm1266_vm0, %v1259_v52, %v1261_v24  ;;  %v1234_v34 = vmul.f32 %v1200_v11, %v1187_v23  ;;  %v1216_v11 = vrot.slane %v6633_v60, %v6636_v61 }
 0x1da   : > { %v1325_v35 = vmul.f32 %v1303_v13, %v1269_v26  ;;  %v1326_v36 = vmul.f32 %v1307_v22, %v1268_v25  ;;  %5810 = vmatmul.mubr.msk.bf16.vlgmr.msra.gmra.mrb[8].mxu0 %vm1338_vm2, %v6579_v48  ;;  %v1220_v13 = vrot.slane %v6633_v60, %v6642_v1 }
 0x1db   : > { %v1169_v57 = vpop.permute.xlu1 %1168  ;;  %1481 = vmatprep.mubr.bf16.mxu0 %v6004_v12  ;;  %v6689_v43 = vpack.c.bf16 %v1234_v34, %v1234_v34 }
 0x1dc   : > { %v6679_v37 = vpack.c.bf16 %v1325_v35, %v1325_v35  ;;  %v6681_v38 = vpack.c.bf16 %v1326_v36, %v1326_v36  ;;  %v1167_v39 = vpop.permute.xlu0 %1166 }
 0x1dd   : > { %v1185_v40 = vsel %vm1180_vm3, %v1167_v39, %v1169_v57  ;;  %v1186_v41 = vsel %vm1180_vm3, %v1165_v21, %v1167_v39 }
 0x1de   : > { %v1235_v47 = vmul.f32 %v1204_v32, %v1186_v41  ;;  %v1236_v52 = vmul.f32 %v1208_v28, %v1185_v40  ;;  %5813 = vmatprep.subr.msk.bf16.mxu0 %vm1342_vm1, %v6679_v37  ;;  %v1362_v56 = vsel %vm1342_vm1, %v6681_v38, 0  ;;  %v1733_v40 = vrot.slane %v6566_v46, 2 }
 0x1df   : > { %v1171_v53 = vpop.permute.xlu1 %1170  ;;  %1450 = vmatpush1.bf16.msra.mxu0 %v1356_v54  ;;  %1491 = vmatpush1.bf16.msra.mxu1 %v1362_v56  ;;  %v1731_v41 = vrot.slane %v6561_v44, 2  ;;  %v1732_v44 = vrot.slane %v6563_v45, 2  ;;  %v1730_v46 = vrot.slane %v6649_v4, 2  ;;  %v1734_v45 = vrot.slane %v6674_v33, 2 }
 0x1e0   : > { %v6701_v59 = vpack.c.bf16 %v1235_v47, %v1235_v47  ;;  %v6703_v62 = vpack.c.bf16 %v1236_v52, %v1236_v52  ;;  %v1184_v63 = vsel %vm1180_vm3, %v1169_v57, %v1171_v53  ;;  %5817 = vmatprep.subr.msk.bf16.mxu0 %vm1342_vm1, %v6689_v43  ;;  %v1177_v0 = vpop.permute.xlu0 %1176  ;;  %v6748_v57 = vld [vmem:[%s7588_s2] sm:$0x3]  ;;  %v1737_v47 = vrot.slane %v6656_v19, 2  ;;  %v5842_v56 = vld [vmem:[%s7589_s3 + $0x2] ss:$8 sm:$0xf0] }
 0x1e1   : > { %v1188_v2 = vsel %vm1180_vm3, %v1177_v0, %v1163_v10  ;;  %v1237_v14 = vmul.f32 %v1212_v55, %v1184_v63  ;;  %v1735_v52 = vrot.slane %v6679_v37, 2  ;;  %v1745_v54 = vsel %vm1342_vm1, %v1732_v44, 0  ;;  %v5841_v55 = vld [vmem:[%s7589_s3 + $0x2] ss:$8 sm:$0xf] }
 0x1e2   : > { %v1233_v3 = vmul.f32 %v1196_v42, %v1188_v2  ;;  %5814 = vmatmul.mubr.msk.bf16.vlgmr.msra.gmra.mrb[12].mxu0 %vm1338_vm2, %v6579_v48  ;;  %5819 = vmatprep.subr.msk.bf16.mxu1 %vm1342_vm1, %v6703_v62  ;;  %v1541_v20 = vsel %vm1342_vm1, %v6701_v59, 0  ;;  %v1736_v4 = vrot.slane %v6681_v38, 2  ;;  %v1937_v63 = vrot.slane %v6703_v62, 2 }
 0x1e3   : > { %v1175_v5 = vpop.permute.xlu1 %1174  ;;  %5816 = vmatmul.mubr.msk.bf16.vlgmr.msra.gmra.mrb[12].mxu1 %vm1338_vm2, %v6579_v48  ;;  %1590 = vmatprep.mubr.bf16.mxu0 %v6004_v12  ;;  %v6735_v28 = vpack.c.bf16 %v1237_v14, %v1237_v14  ;;  %v1751_v33 = vsel %vm1342_vm1, %v1734_v45, 0  ;;  %v1936_v62 = vrot.slane %v6701_v59, 2 }
 0x1e4   : > { %v1181_v10 = vsel %vm1180_vm3, %v1175_v5, %v1177_v0  ;;  %v6726_v21 = vpack.c.bf16 %v1233_v3, %v1233_v3  ;;  %1600 = vmatpush1.bf16.msra.mxu1 %v1541_v20  ;;  %v1173_v23 = vpop.permute.xlu0 %1172  ;;  %1631 = vmatprep.mubr.bf16.mxu1 %v6004_v12  ;;  %v1757_v38 = vsel %vm1342_vm1, %v1736_v4, 0 }
 0x1e5   : > { %v1240_v22 = vmul.f32 %v1224_v58, %v1181_v10  ;;  %v1182_v60 = vsel %vm1180_vm3, %v1173_v23, %v1175_v5  ;;  %v1183_v24 = vsel %vm1180_vm3, %v1171_v53, %v1173_v23  ;;  %v1547_v42 = vsel %vm1342_vm1, %v6735_v28, 0 }
 0x1e6   : > { %v1238_v26 = vmul.f32 %v1216_v11, %v1183_v24  ;;  %v1239_v32 = vmul.f32 %v1220_v13, %v1182_v60  ;;  %v1535_v34 = vsel %vm1342_vm1, %v6726_v21, 0  ;;  %v1739_v53 = vsel %vm1342_vm1, %v1730_v46, 0 }
 0x1e7   : > { %v6733_v25 = vpack.c.bf16 %v1240_v22, %v1240_v22  ;;  %1559 = vmatpush1.bf16.msra.mxu0 %v1535_v34  ;;  %v2133_v19 = vpop.permute.xlu1 %2132  ;;  %v1935_v58 = vrot.slane %v6689_v43, 2  ;;  %v6798_v43 = vor.u32 %v5842_v56, %v5841_v55  ;;  %v1934_v3 = vrot.slane %v6726_v21, 2 }
 0x1e8   : > { %v6739_v35 = vpack.c.bf16 %v1238_v26, %v1238_v26  ;;  %v6741_v36 = vpack.c.bf16 %v1239_v32, %v1239_v32  ;;  %v2131_v37 = vpop.permute.xlu0 %2130  ;;  %v1949_v21 = vsel %vm1342_vm1, %v1936_v62, 0  ;;  %v1938_v60 = vrot.slane %v6735_v28, 2 }
 0x1e9   : > { %5823 = vmatprep.subr.msk.bf16.mxu1 %vm1342_vm1, %v6733_v25  ;;  %v2167_v5 = vrot.slane %v6798_v43, %v6530_v29  ;;  %v2175_v11 = vrot.slane %v6798_v43, %v6536_v31  ;;  %v1941_v13 = vrot.slane %v6733_v25, 2  ;;  %v1943_v59 = vsel %vm1342_vm1, %v1934_v3, 0 }
 0x1ea   : > { %5821 = vmatprep.subr.msk.bf16.mxu0 %vm1342_vm1, %v6739_v35  ;;  %v1553_v39 = vsel %vm1342_vm1, %v6741_v36, 0  ;;  %5818 = vmatmul.mubr.msk.bf16.vlgmr.msra.gmra.mrb[16].mxu0 %vm1338_vm2, %v6748_v57  ;;  %v1939_v14 = vrot.slane %v6739_v35, 2  ;;  %v2153_v22 = vsel %vm2146_vm4, %v2131_v37, %v2133_v19  ;;  %v2163_v24 = vrot.slane %v6798_v43, %v6609_v49 }
 0x1eb   : > { %5820 = vmatmul.mubr.msk.bf16.vlgmr.msra.gmra.mrb[16].mxu1 %vm1338_vm2, %v6748_v57  ;;  %1641 = vmatpush1.bf16.msra.mxu0 %v1547_v42  ;;  %v2137_v0 = vpop.permute.xlu1 %2136  ;;  %v1940_v25 = vrot.slane %v6741_v36, 2  ;;  %v2201_v26 = vmul.f32 %v2167_v5, %v2153_v22  ;;  %v2183_v42 = vrot.slane %v6798_v43, %v6636_v61  ;;  %v1955_v44 = vsel %vm1342_vm1, %v1938_v60, 0 }
 0x1ec   : > { %1682 = vmatpush1.bf16.msra.mxu1 %v1553_v39  ;;  %5825 = vmatprep.subr.msk.bf16.mxu0 %vm1342_vm1, %v1731_v41  ;;  %v2135_v2 = vpop.permute.xlu0 %2134  ;;  %v2191_v41 = vrot.slane %v6798_v43, %v6613_v50  ;;  %v2179_v4 = vrot.slane %v6798_v43, %v6616_v51 }
 0x1ed   : > { %5827 = vmatprep.subr.msk.bf16.mxu1 %vm1342_vm1, %v1733_v40  ;;  %1672 = vmatprep.mubr.bf16.mxu0 %v6004_v12  ;;  %v2151_v23 = vsel %vm2146_vm4, %v2135_v2, %v2137_v0  ;;  %v2152_v32 = vsel %vm2146_vm4, %v2133_v19, %v2135_v2  ;;  %v2209_v36 = vpack.c.bf16 %v2201_v26, %v2201_v26 }
 0x1ee   : > { %1713 = vmatprep.mubr.bf16.mxu1 %v6004_v12  ;;  %v2203_v34 = vmul.f32 %v2175_v11, %v2151_v23  ;;  %v2187_v19 = vrot.slane %v6798_v43, %v6642_v1 }
 0x1ef   : > { %v2139_v10 = vpop.permute.xlu1 %2138 }
 0x1f0   : > { %v2145_v20 = vpop.permute.xlu0 %2144  ;;  %v2211_v46 = vpack.c.bf16 %v2203_v34, %v2203_v34 }
 0x1f1   : > { %v2154_v28 = vsel %vm2146_vm4, %v2145_v20, %v2131_v37  ;;  %v2150_v37 = vsel %vm2146_vm4, %v2137_v0, %v2139_v10 }
 0x1f2   : > { %5822 = vmatmul.mubr.msk.bf16.vlgmr.msra.gmra.mrb[20].mxu0 %vm1338_vm2, %v6748_v57 }
 0x1f3   : > { %5824 = vmatmul.mubr.msk.bf16.vlgmr.msra.gmra.mrb[20].mxu1 %vm1338_vm2, %v6748_v57  ;;  %1763 = vmatpush1.bf16.msra.mxu0 %v1739_v53  ;;  %v2143_v35 = vpop.permute.xlu1 %2142 }
 0x1f4   : > { %1804 = vmatpush1.bf16.msra.mxu1 %v1745_v54  ;;  %5829 = vmatprep.subr.msk.bf16.mxu0 %vm1342_vm1, %v1735_v52  ;;  %v2141_v39 = vpop.permute.xlu0 %2140  ;;  %v1961_v52 = vsel %vm1342_vm1, %v1940_v25, 0  ;;  %v2147_v53 = vsel %vm2146_vm4, %v2143_v35, %v2145_v20  ;;  %v2426_v20 = vrot.slane %v2209_v36, 2 }
 0x1f5   : > { %5831 = vmatprep.subr.msk.bf16.mxu1 %vm1342_vm1, %v1737_v47  ;;  %1794 = vmatprep.mubr.bf16.mxu0 %v6004_v12  ;;  %v2200_v47 = vmul.f32 %v2163_v24, %v2154_v28  ;;  %v2149_v54 = vsel %vm2146_vm4, %v2139_v10, %v2141_v39  ;;  %v2207_v56 = vmul.f32 %v2191_v41, %v2147_v53  ;;  %v5861_v10 = vld [vmem:[%s7589_s3 + $0x3] ss:$8 sm:$0xf0] }
 0x1f6   : > { %1835 = vmatprep.mubr.bf16.mxu1 %v6004_v12 }
 0x1f7   : > { %v2208_v55 = vpack.c.bf16 %v2200_v47, %v2200_v47  ;;  %v2215_v2 = vpack.c.bf16 %v2207_v56, %v2207_v56  ;;  %v2632_v11 = vpop.permute.xlu1 %2631 }
 0x1f9   : > { %v2222_v0 = vsel %vm1342_vm1, %v2208_v55, 0  ;;  %v2425_v25 = vrot.slane %v2208_v55, 2  ;;  %v2432_v34 = vrot.slane %v2215_v2, 2 }
 0x1fa   : > { %5826 = vmatmul.mubr.msk.bf16.vlgmr.msra.gmra.mrb[24].mxu0 %vm1338_vm2, %v6579_v48 }
 0x1fb   : > { %5828 = vmatmul.mubr.msk.bf16.vlgmr.msra.gmra.mrb[24].mxu1 %vm1338_vm2, %v6579_v48  ;;  %1845 = vmatpush1.bf16.msra.mxu0 %v1751_v33  ;;  %v2204_v33 = vmul.f32 %v2179_v4, %v2150_v37  ;;  %v2636_v23 = vpop.permute.xlu1 %2635 }
 0x1fc   : > { %1886 = vmatpush1.bf16.msra.mxu1 %v1757_v38  ;;  %5833 = vmatprep.subr.msk.bf16.mxu0 %vm1342_vm1, %v1935_v58  ;;  %v2205_v58 = vmul.f32 %v2183_v42, %v2149_v54 }
 0x1fd   : > { %5835 = vmatprep.subr.msk.bf16.mxu1 %vm1342_vm1, %v1937_v63  ;;  %1876 = vmatprep.mubr.bf16.mxu0 %v6004_v12  ;;  %v2148_v63 = vsel %vm2146_vm4, %v2141_v39, %v2143_v35 }
 0x1fe   : > { %1917 = vmatprep.mubr.bf16.mxu1 %v6004_v12  ;;  %v2206_v62 = vmul.f32 %v2187_v19, %v2148_v63  ;;  %v2213_v3 = vpack.c.bf16 %v2205_v58, %v2205_v58 }
 0x1ff   : > { %v2638_v35 = vpop.permute.xlu1 %2637 }
 0x200   : > { %v2214_v5 = vpack.c.bf16 %v2206_v62, %v2206_v62  ;;  %v2430_v28 = vrot.slane %v2213_v3, 2 }
 0x202   : > { %5830 = vmatmul.mubr.msk.bf16.vlgmr.msra.gmra.mrb[28].mxu0 %vm1338_vm2, %v6579_v48  ;;  %v2240_v22 = vsel %vm1342_vm1, %v2214_v5, 0 }
 0x203   : > { %5832 = vmatmul.mubr.msk.bf16.vlgmr.msra.gmra.mrb[28].mxu1 %vm1338_vm2, %v6579_v48  ;;  %1967 = vmatpush1.bf16.msra.mxu0 %v1943_v59  ;;  %v2171_v48 = vrot.slane %v6798_v43, %v6533_v30  ;;  %v2212_v43 = vpack.c.bf16 %v2204_v33, %v2204_v33  ;;  %v2428_v59 = vrot.slane %v2211_v46, 2  ;;  %v2642_v19 = vpop.permute.xlu1 %2641 }
 0x204   : > { %2008 = vmatpush1.bf16.msra.mxu1 %v1949_v21  ;;  %5837 = vmatprep.subr.msk.bf16.mxu0 %vm1342_vm1, %v1939_v14  ;;  %v5860_v14 = vld [vmem:[%s7589_s3 + $0x3] ss:$8 sm:$0xf] }
 0x205   : > { %5839 = vmatprep.subr.msk.bf16.mxu1 %vm1342_vm1, %v1941_v13  ;;  %1998 = vmatprep.mubr.bf16.mxu0 %v6004_v12  ;;  %v2202_v40 = vmul.f32 %v2171_v48, %v2152_v32  ;;  %v2630_v13 = vpop.permute.xlu0 %2629  ;;  %v2234_v21 = vsel %vm1342_vm1, %v2212_v43, 0  ;;  %v6890_v48 = vor.u32 %v5861_v10, %v5860_v14 }
 0x206   : > { %2039 = vmatprep.mubr.bf16.mxu1 %v6004_v12  ;;  %v2652_v42 = vsel %vm2645_vm5, %v2630_v13, %v2632_v11 }
 0x207   : > { %v2210_v45 = vpack.c.bf16 %v2202_v40, %v2202_v40  ;;  %v2666_v26 = vrot.slane %v6890_v48, %v6530_v29  ;;  %v2674_v32 = vrot.slane %v6890_v48, %v6536_v31  ;;  %v2434_v40 = vsel %vm1342_vm1, %v2425_v25, 0 }
 0x208   : > { %v2662_v47 = vrot.slane %v6890_v48, %v6609_v49  ;;  %v2690_v56 = vrot.slane %v6890_v48, %v6613_v50  ;;  %v2682_v58 = vrot.slane %v6890_v48, %v6636_v61 }
 0x209   : > { %v2228_v38 = vsel %vm1342_vm1, %v2210_v45, 0  ;;  %v2634_v60 = vpop.permute.xlu0 %2633  ;;  %v2427_v24 = vrot.slane %v2210_v45, 2  ;;  %v2700_v53 = vmul.f32 %v2666_v26, %v2652_v42 }
 0x20a   : > { %5834 = vmatmul.mubr.msk.bf16.vlgmr.msra.gmra.mrb[32].mxu0 %vm1338_vm2, %v6748_v57  ;;  %v2651_v54 = vsel %vm2645_vm5, %v2632_v11, %v2634_v60  ;;  %v2686_v11 = vrot.slane %v6890_v48, %v6642_v1 }
 0x20b   : > { %5836 = vmatmul.mubr.msk.bf16.vlgmr.msra.gmra.mrb[32].mxu1 %vm1338_vm2, %v6748_v57  ;;  %2049 = vmatpush1.bf16.msra.mxu0 %v1955_v44  ;;  %v2440_v41 = vsel %vm1342_vm1, %v2427_v24, 0  ;;  %v2650_v44 = vsel %vm2645_vm5, %v2634_v60, %v2636_v23  ;;  %v2708_v33 = vpack.c.bf16 %v2700_v53, %v2700_v53 }
 0x20c   : > { %2090 = vmatpush1.bf16.msra.mxu1 %v1961_v52  ;;  %5844 = vmatprep.subr.msk.bf16.mxu0 %vm1342_vm1, %v2209_v36  ;;  %v2429_v36 = vrot.slane %v2212_v43, 2  ;;  %v2431_v52 = vrot.slane %v2214_v5, 2  ;;  %v2702_v45 = vmul.f32 %v2674_v32, %v2650_v44  ;;  %v2678_v5 = vrot.slane %v6890_v48, %v6616_v51  ;;  %v5862_v32 = vld [vmem:[%s7588_s2 + $0x6] sm:$0x3] }
 0x20d   : > { %5846 = vmatprep.subr.msk.bf16.mxu1 %vm1342_vm1, %v2211_v46  ;;  %2080 = vmatprep.mubr.bf16.mxu0 %v6004_v12  ;;  %v2644_v39 = vpop.permute.xlu0 %2643  ;;  %v2670_v46 = vrot.slane %v6890_v48, %v6533_v30 }
 0x20e   : > { %2121 = vmatprep.mubr.bf16.mxu1 %v6004_v12  ;;  %v2653_v4 = vsel %vm2645_vm5, %v2644_v39, %v2630_v13  ;;  %v2446_v63 = vsel %vm1342_vm1, %v2429_v36, 0  ;;  %v2452_v62 = vsel %vm1342_vm1, %v2431_v52, 0  ;;  %v2649_v13 = vsel %vm2645_vm5, %v2636_v23, %v2638_v35 }
 0x20f   : > { %v2701_v55 = vmul.f32 %v2670_v46, %v2651_v54  ;;  %v3129_v54 = vpack.c.bf16 %v6466_v8, %v6466_v8 }
 0x211   : > { %v2640_v37 = vpop.permute.xlu0 %2639  ;;  %v2709_v43 = vpack.c.bf16 %v2701_v55, %v2701_v55  ;;  %v3135_v55 = vpack.c.bf16 %v6488_v18, %v6488_v18  ;;  %v7013_v18 = vld [vmem:[%s7588_s2 + $0x8] sm:$0x3] }
 0x212   : > { %5838 = vmatmul.mubr.msk.bf16.vlgmr.msra.gmra.mrb[36].mxu0 %vm1338_vm2, %v6748_v57 }
 0x213   : > { %5840 = vmatmul.mubr.msk.bf16.vlgmr.msra.gmra.mrb[36].mxu1 %vm1338_vm2, %v6748_v57  ;;  %2246 = vmatpush1.bf16.msra.mxu0 %v2222_v0  ;;  %v6874_v57 = vld [vmem:[%s7588_s2 + $0x4] sm:$0x3]  ;;  %v2648_v0 = vsel %vm2645_vm5, %v2638_v35, %v2640_v37 }
 0x214   : > { %2287 = vmatpush1.bf16.msra.mxu1 %v2228_v38  ;;  %5848 = vmatprep.subr.msk.bf16.mxu0 %vm1342_vm1, %v2213_v3  ;;  %v2710_v38 = vpack.c.bf16 %v2702_v45, %v2702_v45  ;;  %v2646_v3 = vsel %vm2645_vm5, %v2642_v19, %v2644_v39  ;;  %v2926_v39 = vrot.slane %v2709_v43, 2  ;;  %v3131_v45 = vpack.c.bf16 %v6470_v9, %v6470_v9 }
 0x215   : > { %5850 = vmatprep.subr.msk.bf16.mxu1 %vm1342_vm1, %v2215_v2  ;;  %2277 = vmatprep.mubr.bf16.mxu0 %v6004_v12  ;;  %v2699_v2 = vmul.f32 %v2662_v47, %v2653_v4  ;;  %v2706_v10 = vmul.f32 %v2690_v56, %v2646_v3  ;;  %v3128_v4 = vpack.c.bf16 %v6460_v6, %v6460_v6  ;;  %v7000_v6 = vpop.permute.xlu0 %3549  ;;  %v5896_v3 = vld [vmem:[%s7589_s3 + $0x5] ss:$8 sm:$0xf] }
 0x216   : > { %2318 = vmatprep.mubr.bf16.mxu1 %v6004_v12  ;;  %v2939_v36 = vsel %vm1342_vm1, %v2926_v39, 0  ;;  %v3132_v56 = vpack.c.bf16 %v6480_v15, %v6480_v15  ;;  %v3346_v15 = vrot.slane %v3129_v54, 2 }
 0x217   : > { %v2707_v14 = vpack.c.bf16 %v2699_v2, %v2699_v2  ;;  %v2714_v60 = vpack.c.bf16 %v2706_v10, %v2706_v10  ;;  %v3142_v8 = vsel %vm1342_vm1, %v3128_v4, 0  ;;  %v3345_v2 = vrot.slane %v3128_v4, 2 }
 0x219   : > { %v2721_v23 = vsel %vm1342_vm1, %v2707_v14, 0 }
 0x21a   : > { %5845 = vmatmul.mubr.msk.bf16.vlgmr.msra.gmra.mrb[40].mxu0 %vm1338_vm2, %v6874_v57 }
 0x21b   : > { %5847 = vmatmul.mubr.msk.bf16.vlgmr.msra.gmra.mrb[40].mxu1 %vm1338_vm2, %v6874_v57  ;;  %2328 = vmatpush1.bf16.msra.mxu0 %v2234_v21  ;;  %v2703_v21 = vmul.f32 %v2678_v5, %v2649_v13 }
 0x21c   : > { %2369 = vmatpush1.bf16.msra.mxu1 %v2240_v22  ;;  %5852 = vmatprep.subr.msk.bf16.mxu0 %vm1342_vm1, %v2426_v20  ;;  %v2704_v20 = vmul.f32 %v2682_v58, %v2648_v0  ;;  %v2727_v22 = vsel %vm1342_vm1, %v2709_v43, 0  ;;  %v3554_v58 = vpop.permute.xlu0 %3553  ;;  %v5897_v0 = vld [vmem:[%s7589_s3 + $0x5] ss:$8 sm:$0xf0] }
 0x21d   : > { %5854 = vmatprep.subr.msk.bf16.mxu1 %vm1342_vm1, %v2428_v59  ;;  %2359 = vmatprep.mubr.bf16.mxu0 %v6004_v12  ;;  %v2647_v59 = vsel %vm2645_vm5, %v2640_v37, %v2642_v19  ;;  %v2711_v48 = vpack.c.bf16 %v2703_v21, %v2703_v21  ;;  %v3130_v19 = vpack.c.bf16 %v6462_v7, %v6462_v7  ;;  %v3552_v7 = vpop.permute.xlu1 %3551  ;;  %v3352_v21 = vrot.slane %v3135_v55, 2 }
 0x21e   : > { %2400 = vmatprep.mubr.bf16.mxu1 %v6004_v12  ;;  %v2705_v24 = vmul.f32 %v2686_v11, %v2647_v59  ;;  %v2712_v25 = vpack.c.bf16 %v2704_v20, %v2704_v20  ;;  %v3133_v37 = vpack.c.bf16 %v6486_v17, %v6486_v17  ;;  %v3134_v17 = vpack.c.bf16 %v6482_v16, %v6482_v16 }
 0x21f   : > { %v2928_v46 = vrot.slane %v2711_v48, 2  ;;  %v3148_v9 = vsel %vm1342_vm1, %v3130_v19, 0  ;;  %v7031_v43 = vor.u32 %v5897_v0, %v5896_v3  ;;  %v3354_v11 = vsel %vm1342_vm1, %v3345_v2, 0 }
 0x220   : > { %v2713_v26 = vpack.c.bf16 %v2705_v24, %v2705_v24  ;;  %v2929_v42 = vrot.slane %v2712_v25, 2  ;;  %v3558_v5 = vpop.permute.xlu0 %3557 }
 0x221   : > { %v2945_v52 = vsel %vm1342_vm1, %v2928_v46, 0  ;;  %v3556_v16 = vpop.permute.xlu1 %3555  ;;  %v3586_v10 = vrot.slane %v7031_v43, %v6530_v29  ;;  %v3594_v59 = vrot.slane %v7031_v43, %v6536_v31  ;;  %v3582_v24 = vrot.slane %v7031_v43, %v6609_v49 }
 0x222   : > { %5849 = vmatmul.mubr.msk.bf16.vlgmr.msra.gmra.mrb[44].mxu0 %vm1338_vm2, %v6874_v57  ;;  %v2739_v35 = vsel %vm1342_vm1, %v2713_v26, 0  ;;  %v2930_v47 = vrot.slane %v2713_v26, 2  ;;  %v3590_v26 = vrot.slane %v7031_v43, %v6533_v30  ;;  %v3606_v4 = vrot.slane %v7031_v43, %v6642_v1 }
 0x223   : > { %5851 = vmatmul.mubr.msk.bf16.vlgmr.msra.gmra.mrb[44].mxu1 %vm1338_vm2, %v6874_v57  ;;  %2458 = vmatpush1.bf16.msra.mxu0 %v2434_v40  ;;  %v2924_v40 = vrot.slane %v2707_v14, 2  ;;  %v3350_v14 = vrot.slane %v3133_v37, 2 }
 0x224   : > { %2499 = vmatpush1.bf16.msra.mxu1 %v2440_v41  ;;  %5856 = vmatprep.subr.msk.bf16.mxu0 %vm1342_vm1, %v2430_v28  ;;  %v2733_v28 = vsel %vm1342_vm1, %v2711_v48, 0  ;;  %v2931_v41 = vrot.slane %v2714_v60, 2  ;;  %v2951_v53 = vsel %vm1342_vm1, %v2930_v47, 0  ;;  %v3572_v48 = vsel %vm3565_vm6, %v7000_v6, %v3552_v7 }
 0x225   : > { %5858 = vmatprep.subr.msk.bf16.mxu1 %vm1342_vm1, %v2432_v34  ;;  %2489 = vmatprep.mubr.bf16.mxu0 %v6004_v12  ;;  %v2925_v34 = vrot.slane %v2708_v33, 2  ;;  %v2933_v44 = vsel %vm1342_vm1, %v2924_v40, 0  ;;  %v3560_v20 = vpop.permute.xlu1 %3559  ;;  %v3619_v39 = vmul.f32 %v3582_v24, %v3572_v48  ;;  %v3610_v40 = vrot.slane %v7031_v43, %v6613_v50 }
 0x226   : > { %2530 = vmatprep.mubr.bf16.mxu1 %v6004_v12 }
 0x22a   : > { %5853 = vmatmul.mubr.msk.bf16.vlgmr.msra.gmra.mrb[48].mxu0 %vm1338_vm2, %v6874_v57 }
 0x22b   : > { %5855 = vmatmul.mubr.msk.bf16.vlgmr.msra.gmra.mrb[48].mxu1 %vm1338_vm2, %v6874_v57  ;;  %2540 = vmatpush1.bf16.msra.mxu0 %v2446_v63  ;;  %v3154_v63 = vsel %vm1342_vm1, %v3132_v56, 0 }
 0x22c   : > { %2581 = vmatpush1.bf16.msra.mxu1 %v2452_v62  ;;  %5863 = vmatprep.subr.msk.bf16.mxu0 %vm1342_vm1, %v2708_v33  ;;  %v3160_v33 = vsel %vm1342_vm1, %v3134_v17, 0  ;;  %v3347_v62 = vrot.slane %v3130_v19, 2 }
 0x22d   : > { %5865 = vmatprep.subr.msk.bf16.mxu1 %vm1342_vm1, %v2710_v38  ;;  %2571 = vmatprep.mubr.bf16.mxu0 %v6004_v12 }
 0x22e   : > { %2612 = vmatprep.mubr.bf16.mxu1 %v6004_v12  ;;  %v3360_v13 = vsel %vm1342_vm1, %v3347_v62, 0 }
 0x232   : > { %5857 = vmatmul.mubr.msk.bf16.vlgmr.msra.gmra.mrb[52].mxu0 %vm1338_vm2, %v6874_v57 }
 0x233   : > { %5859 = vmatmul.mubr.msk.bf16.vlgmr.msra.gmra.mrb[52].mxu1 %vm1338_vm2, %v6874_v57  ;;  %2745 = vmatpush1.bf16.msra.mxu0 %v2721_v23  ;;  %v2927_v57 = vrot.slane %v2710_v38, 2  ;;  %v3348_v38 = vrot.slane %v3131_v45, 2  ;;  %v3351_v23 = vrot.slane %v3134_v17, 2 }
 0x234   : > { %2786 = vmatpush1.bf16.msra.mxu1 %v2727_v22  ;;  %5867 = vmatprep.subr.msk.bf16.mxu0 %vm1342_vm1, %v2712_v25  ;;  %v3571_v22 = vsel %vm3565_vm6, %v3552_v7, %v3554_v58  ;;  %v3349_v25 = vrot.slane %v3132_v56, 2 }
 0x235   : > { %5869 = vmatprep.subr.msk.bf16.mxu1 %vm1342_vm1, %v2714_v60  ;;  %2776 = vmatprep.mubr.bf16.mxu0 %v6004_v12  ;;  %v3569_v60 = vsel %vm3565_vm6, %v3556_v16, %v3558_v5  ;;  %v3372_v47 = vsel %vm1342_vm1, %v3351_v23, 0 }
 0x236   : > { %2817 = vmatprep.mubr.bf16.mxu1 %v6004_v12 }
 0x23a   : > { %5864 = vmatmul.mubr.msk.bf16.vlgmr.msra.gmra.mrb[56].mxu0 %vm1338_vm2, %v5862_v32 }
 0x23b   : > { %5866 = vmatmul.mubr.msk.bf16.vlgmr.msra.gmra.mrb[56].mxu1 %vm1338_vm2, %v5862_v32  ;;  %2827 = vmatpush1.bf16.msra.mxu0 %v2733_v28  ;;  %v3564_v28 = vpop.permute.xlu1 %3563 }
 0x23c   : > { %2868 = vmatpush1.bf16.msra.mxu1 %v2739_v35  ;;  %5871 = vmatprep.subr.msk.bf16.mxu0 %vm1342_vm1, %v2925_v34  ;;  %v3622_v34 = vmul.f32 %v3594_v59, %v3569_v60  ;;  %v3562_v35 = vpop.permute.xlu0 %3561 }
 0x23d   : > { %5873 = vmatprep.subr.msk.bf16.mxu1 %vm1342_vm1, %v2927_v57  ;;  %2858 = vmatprep.mubr.bf16.mxu0 %v6004_v12  ;;  %v3570_v57 = vsel %vm3565_vm6, %v3554_v58, %v3556_v16 }
 0x23e   : > { %2899 = vmatprep.mubr.bf16.mxu1 %v6004_v12  ;;  %v3630_v46 = vpack.c.bf16 %v3622_v34, %v3622_v34 }
 0x23f   : > { %v4051_v0 = vpop.permute.xlu1 %4050 }
 0x240   : > { %v7098_v2 = vpop.permute.xlu0 %4048 }
 0x242   : > { %5868 = vmatmul.mubr.msk.bf16.vlgmr.msra.gmra.mrb[60].mxu0 %vm1338_vm2, %v5862_v32 }
 0x243   : > { %5870 = vmatmul.mubr.msk.bf16.vlgmr.msra.gmra.mrb[60].mxu1 %vm1338_vm2, %v5862_v32  ;;  %2957 = vmatpush1.bf16.msra.mxu0 %v2933_v44  ;;  %v3621_v44 = vmul.f32 %v3590_v26, %v3570_v57  ;;  %v4055_v59 = vpop.permute.xlu1 %4054 }
 0x244   : > { %2998 = vmatpush1.bf16.msra.mxu1 %v2939_v36  ;;  %5875 = vmatprep.subr.msk.bf16.mxu0 %vm1342_vm1, %v2929_v42  ;;  %v3366_v42 = vsel %vm1342_vm1, %v3349_v25, 0 }
 0x245   : > { %5877 = vmatprep.subr.msk.bf16.mxu1 %vm1342_vm1, %v2931_v41  ;;  %2988 = vmatprep.mubr.bf16.mxu0 %v6004_v12  ;;  %v3602_v41 = vrot.slane %v7031_v43, %v6636_v61  ;;  %v3629_v19 = vpack.c.bf16 %v3621_v44, %v3621_v44  ;;  %v4071_v44 = vsel %vm4064_vm7, %v7098_v2, %v4051_v0 }
 0x246   : > { %3029 = vmatprep.mubr.bf16.mxu1 %v6004_v12 }
 0x24a   : > { %5872 = vmatmul.mubr.msk.bf16.vlgmr.msra.gmra.mrb[64].mxu0 %vm1338_vm2, %v5862_v32 }
 0x24b   : > { %5874 = vmatmul.mubr.msk.bf16.vlgmr.msra.gmra.mrb[64].mxu1 %vm1338_vm2, %v5862_v32  ;;  %3039 = vmatpush1.bf16.msra.mxu0 %v2945_v52  ;;  %v3573_v52 = vsel %vm3565_vm6, %v3564_v28, %v7000_v6 }
 0x24c   : > { %3080 = vmatpush1.bf16.msra.mxu1 %v2951_v53  ;;  %5880 = vmatprep.subr.msk.bf16.mxu0 %vm1342_vm1, %v3129_v54  ;;  %v3567_v53 = vsel %vm3565_vm6, %v3560_v20, %v3562_v35  ;;  %v3627_v54 = vpack.c.bf16 %v3619_v39, %v3619_v39 }
 0x24d   : > { %5882 = vmatprep.subr.msk.bf16.mxu1 %vm1342_vm1, %v3131_v45  ;;  %3070 = vmatprep.mubr.bf16.mxu0 %v6004_v12  ;;  %v3598_v45 = vrot.slane %v7031_v43, %v6616_v51 }
 0x24e   : > { %3111 = vmatprep.mubr.bf16.mxu1 %v6004_v12  ;;  %v3641_v17 = vsel %vm1342_vm1, %v3627_v54, 0 }
 0x252   : > { %5876 = vmatmul.mubr.msk.bf16.vlgmr.msra.gmra.mrb[68].mxu0 %vm1338_vm2, %v5862_v32 }
 0x253   : > { %5878 = vmatmul.mubr.msk.bf16.vlgmr.msra.gmra.mrb[68].mxu1 %vm1338_vm2, %v5862_v32  ;;  %3166 = vmatpush1.bf16.msra.mxu0 %v3142_v8  ;;  %v3620_v32 = vmul.f32 %v3586_v10, %v3571_v22  ;;  %v3568_v8 = vsel %vm3565_vm6, %v3558_v5, %v3560_v20  ;;  %v3847_v5 = vrot.slane %v3630_v46, 2  ;;  %v5915_v10 = vld [vmem:[%s7589_s3 + $0x6] ss:$8 sm:$0xf]  ;;  %v3846_v22 = vrot.slane %v3629_v19, 2 }
 0x254   : > { %3207 = vmatpush1.bf16.msra.mxu1 %v3148_v9  ;;  %5884 = vmatprep.subr.msk.bf16.mxu0 %vm1342_vm1, %v3133_v37  ;;  %v3626_v9 = vmul.f32 %v3610_v40, %v3573_v52  ;;  %v3624_v37 = vmul.f32 %v3602_v41, %v3567_v53  ;;  %v3623_v56 = vmul.f32 %v3598_v45, %v3568_v8  ;;  %v5916_v20 = vld [vmem:[%s7589_s3 + $0x6] ss:$8 sm:$0xf0] }
 0x255   : > { %5886 = vmatprep.subr.msk.bf16.mxu1 %vm1342_vm1, %v3135_v55  ;;  %3197 = vmatprep.mubr.bf16.mxu0 %v6004_v12  ;;  %v3628_v36 = vpack.c.bf16 %v3620_v32, %v3620_v32  ;;  %v3566_v55 = vsel %vm3565_vm6, %v3562_v35, %v3564_v28  ;;  %v4076_v60 = vor.u32 %v5916_v20, %v5915_v10  ;;  %v4059_v32 = vpop.permute.xlu1 %4058  ;;  %v3859_v57 = vsel %vm1342_vm1, %v3846_v22, 0 }
 0x256   : > { %3238 = vmatprep.mubr.bf16.mxu1 %v6004_v12  ;;  %v3631_v62 = vpack.c.bf16 %v3623_v56, %v3623_v56 }
 0x257   : > { %v3845_v43 = vrot.slane %v3628_v36, 2  ;;  %v4085_v25 = vrot.slane %v4076_v60, %v6530_v29  ;;  %v4093_v23 = vrot.slane %v4076_v60, %v6536_v31  ;;  %v4081_v40 = vrot.slane %v4076_v60, %v6609_v49 }
 0x258   : > { %v3848_v39 = vrot.slane %v3631_v62, 2  ;;  %v4089_v41 = vrot.slane %v4076_v60, %v6533_v30  ;;  %v4109_v45 = vrot.slane %v4076_v60, %v6613_v50 }
 0x259   : > { %v4063_v52 = vpop.permute.xlu1 %4062 }
 0x25a   : > { %5881 = vmatmul.mubr.msk.bf16.vlgmr.msra.gmra.mrb[72].mxu0 %vm1338_vm2, %v7013_v18  ;;  %v4072_v56 = vsel %vm4064_vm7, %v4063_v52, %v7098_v2 }
 0x25b   : > { %5883 = vmatmul.mubr.msk.bf16.vlgmr.msra.gmra.mrb[72].mxu1 %vm1338_vm2, %v7013_v18  ;;  %3248 = vmatpush1.bf16.msra.mxu0 %v3154_v63  ;;  %v3634_v63 = vpack.c.bf16 %v3626_v9, %v3626_v9 }
 0x25c   : > { %3289 = vmatpush1.bf16.msra.mxu1 %v3160_v33  ;;  %5888 = vmatprep.subr.msk.bf16.mxu0 %vm1342_vm1, %v3346_v15  ;;  %v3625_v33 = vmul.f32 %v3606_v4, %v3566_v55  ;;  %v3632_v15 = vpack.c.bf16 %v3624_v37, %v3624_v37  ;;  %v4101_v4 = vrot.slane %v4076_v60, %v6636_v61 }
 0x25d   : > { %5890 = vmatprep.subr.msk.bf16.mxu1 %vm1342_vm1, %v3348_v38  ;;  %3279 = vmatprep.mubr.bf16.mxu0 %v6004_v12  ;;  %v3647_v38 = vsel %vm1342_vm1, %v3629_v19, 0  ;;  %v3851_v48 = vrot.slane %v3634_v63, 2  ;;  %v3865_v19 = vsel %vm1342_vm1, %v3848_v39, 0  ;;  %v4550_v10 = vpop.permute.xlu1 %4549 }
 0x25e   : > { %3320 = vmatprep.mubr.bf16.mxu1 %v6004_v12  ;;  %v3633_v3 = vpack.c.bf16 %v3625_v33, %v3625_v33  ;;  %v3849_v26 = vrot.slane %v3632_v15, 2  ;;  %v4105_v33 = vrot.slane %v4076_v60, %v6642_v1 }
 0x262   : > { %5885 = vmatmul.mubr.msk.bf16.vlgmr.msra.gmra.mrb[76].mxu0 %vm1338_vm2, %v7013_v18 }
 0x263   : > { %5887 = vmatmul.mubr.msk.bf16.vlgmr.msra.gmra.mrb[76].mxu1 %vm1338_vm2, %v7013_v18  ;;  %3378 = vmatpush1.bf16.msra.mxu0 %v3354_v11  ;;  %v4053_v11 = vpop.permute.xlu0 %4052 }
 0x264   : > { %3419 = vmatpush1.bf16.msra.mxu1 %v3360_v13  ;;  %5892 = vmatprep.subr.msk.bf16.mxu0 %vm1342_vm1, %v3350_v14  ;;  %v3653_v13 = vsel %vm1342_vm1, %v3631_v62, 0  ;;  %v3659_v14 = vsel %vm1342_vm1, %v3633_v3, 0  ;;  %v4070_v28 = vsel %vm4064_vm7, %v4051_v0, %v4053_v11 }
 0x265   : > { %5894 = vmatprep.subr.msk.bf16.mxu1 %vm1342_vm1, %v3352_v21  ;;  %3409 = vmatprep.mubr.bf16.mxu0 %v6004_v12  ;;  %v3844_v21 = vrot.slane %v3627_v54, 2  ;;  %v4118_v54 = vmul.f32 %v4081_v40, %v4071_v44 }
 0x266   : > { %3450 = vmatprep.mubr.bf16.mxu1 %v6004_v12 }
 0x267   : > { %v4057_v24 = vpop.permute.xlu0 %4056  ;;  %v3853_v34 = vsel %vm1342_vm1, %v3844_v21, 0 }
 0x268   : > { %v4068_v35 = vsel %vm4064_vm7, %v4055_v59, %v4057_v24 }
 0x26a   : > { %5889 = vmatmul.mubr.msk.bf16.vlgmr.msra.gmra.mrb[80].mxu0 %vm1338_vm2, %v7013_v18 }
 0x26b   : > { %5891 = vmatmul.mubr.msk.bf16.vlgmr.msra.gmra.mrb[80].mxu1 %vm1338_vm2, %v7013_v18  ;;  %3460 = vmatpush1.bf16.msra.mxu0 %v3366_v42  ;;  %v3850_v42 = vrot.slane %v3633_v3, 2  ;;  %v4061_v53 = vpop.permute.xlu0 %4060 }
 0x26c   : > { %3501 = vmatpush1.bf16.msra.mxu1 %v3372_v47  ;;  %5899 = vmatprep.subr.msk.bf16.mxu0 %vm1342_vm1, %v3628_v36  ;;  %v4119_v36 = vmul.f32 %v4085_v25, %v4070_v28  ;;  %v4069_v47 = vsel %vm4064_vm7, %v4053_v11, %v4055_v59  ;;  %v4065_v62 = vsel %vm4064_vm7, %v4061_v53, %v4063_v52 }
 0x26d   : > { %5901 = vmatprep.subr.msk.bf16.mxu1 %vm1342_vm1, %v3630_v46  ;;  %3491 = vmatprep.mubr.bf16.mxu0 %v6004_v12  ;;  %v4121_v46 = vmul.f32 %v4093_v23, %v4068_v35  ;;  %v4120_v8 = vmul.f32 %v4089_v41, %v4069_v47  ;;  %v3871_v55 = vsel %vm1342_vm1, %v3850_v42, 0  ;;  %v4554_v23 = vpop.permute.xlu1 %4553 }
 0x26e   : > { %3532 = vmatprep.mubr.bf16.mxu1 %v6004_v12  ;;  %v4127_v9 = vpack.c.bf16 %v4119_v36, %v4119_v36 }
 0x26f   : > { %v4129_v37 = vpack.c.bf16 %v4121_v46, %v4121_v46 }
 0x270   : > { %v4344_v21 = vrot.slane %v4127_v9, 2 }
 0x271   : > { %v7088_v6 = vpop.f32.mrb[8].mxu1  ;;  %v4346_v22 = vrot.slane %v4129_v37, 2  ;;  %v4558_v39 = vpop.permute.xlu1 %4557 }
 0x272   : > { %v7090_v7 = vpop.f32.mrb[9].mxu1  ;;  %5893 = vmatmul.mubr.msk.bf16.vlgmr.msra.gmra.mrb[84].mxu0 %vm1338_vm2, %v7013_v18 }
 0x273   : > { %v1446_v58 = vpop.f32.mrb[10].mxu1  ;;  %5895 = vmatmul.mubr.msk.bf16.vlgmr.msra.gmra.mrb[84].mxu1 %vm1338_vm2, %v7013_v18  ;;  %3665 = vmatpush1.bf16.msra.mxu0 %v3641_v17  ;;  %v7107_v18 = vld [vmem:[%s7588_s2 + $0xa] sm:$0x3]  ;;  %v4066_v17 = vsel %vm4064_vm7, %v4059_v32, %v4061_v53 }
 0x274   : > { %v1447_v16 = vpop.f32.mrb[11].mxu1  ;;  %3706 = vmatpush1.bf16.msra.mxu1 %v3647_v38  ;;  %5903 = vmatprep.subr.msk.bf16.mxu0 %vm1342_vm1, %v3632_v15  ;;  %v4126_v58 = vpack.c.bf16 %v4118_v54, %v4118_v54  ;;  %v4128_v15 = vpack.c.bf16 %v4120_v8, %v4120_v8  ;;  %v4067_v38 = vsel %vm4064_vm7, %v4057_v24, %v4059_v32 }
 0x275   : > { %5905 = vmatprep.subr.msk.bf16.mxu1 %vm1342_vm1, %v3634_v63  ;;  %3696 = vmatprep.mubr.bf16.mxu0 %v6004_v12  ;;  %v4097_v63 = vrot.slane %v4076_v60, %v6616_v51  ;;  %v4125_v16 = vmul.f32 %v4109_v45, %v4072_v56  ;;  %v4123_v2 = vmul.f32 %v4101_v4, %v4066_v17 }
 0x276   : > { %3737 = vmatprep.mubr.bf16.mxu1 %v6004_v12  ;;  %v4140_v0 = vsel %vm1342_vm1, %v4126_v58, 0  ;;  %v4343_v32 = vrot.slane %v4126_v58, 2 }
 0x277   : > { %v4122_v3 = vmul.f32 %v4097_v63, %v4067_v38  ;;  %v4131_v11 = vpack.c.bf16 %v4123_v2, %v4123_v2 }
 0x278   : > { %v4352_v44 = vsel %vm1342_vm1, %v4343_v32, 0 }
 0x279   : > { %v4130_v20 = vpack.c.bf16 %v4122_v3, %v4122_v3  ;;  %v4348_v42 = vrot.slane %v4131_v11, 2 }
 0x27a   : > { %5900 = vmatmul.mubr.msk.bf16.vlgmr.msra.gmra.mrb[88].mxu0 %vm1338_vm2, %v7107_v18 }
 0x27b   : > { %5902 = vmatmul.mubr.msk.bf16.vlgmr.msra.gmra.mrb[88].mxu1 %vm1338_vm2, %v7107_v18  ;;  %3747 = vmatpush1.bf16.msra.mxu0 %v3653_v13  ;;  %v4146_v13 = vsel %vm1342_vm1, %v4128_v15, 0  ;;  %v4152_v24 = vsel %vm1342_vm1, %v4130_v20, 0  ;;  %v4347_v52 = vrot.slane %v4130_v20, 2 }
 0x27c   : > { %3788 = vmatpush1.bf16.msra.mxu1 %v3659_v14  ;;  %5907 = vmatprep.subr.msk.bf16.mxu0 %vm1342_vm1, %v3845_v43  ;;  %v4133_v43 = vpack.c.bf16 %v4125_v16, %v4125_v16  ;;  %v7178_v14 = vpop.permute.xlu0 %4547 }
 0x27d   : > { %5909 = vmatprep.subr.msk.bf16.mxu1 %vm1342_vm1, %v3847_v5  ;;  %3778 = vmatprep.mubr.bf16.mxu0 %v6004_v12  ;;  %v4124_v5 = vmul.f32 %v4105_v33, %v4065_v62  ;;  %v4570_v4 = vsel %vm4563_vm8, %v7178_v14, %v4550_v10  ;;  %v4364_v63 = vsel %vm1342_vm1, %v4347_v52, 0  ;;  %v7320_v52 = vld [vmem:[%s7588_s2 + $0xe] sm:$0x3] }
 0x27e   : > { %3819 = vmatprep.mubr.bf16.mxu1 %v6004_v12  ;;  %v4350_v41 = vrot.slane %v4133_v43, 2 }
 0x27f   : > { %v4132_v59 = vpack.c.bf16 %v4124_v5, %v4124_v5 }
 0x280   : > { %v4552_v60 = vpop.permute.xlu0 %4551 }
 0x281   : > { %v4158_v25 = vsel %vm1342_vm1, %v4132_v59, 0  ;;  %v4569_v46 = vsel %vm4563_vm8, %v4550_v10, %v4552_v60  ;;  %v4349_v45 = vrot.slane %v4132_v59, 2 }
 0x282   : > { %5904 = vmatmul.mubr.msk.bf16.vlgmr.msra.gmra.mrb[92].mxu0 %vm1338_vm2, %v7107_v18 }
 0x283   : > { %5906 = vmatmul.mubr.msk.bf16.vlgmr.msra.gmra.mrb[92].mxu1 %vm1338_vm2, %v7107_v18  ;;  %3877 = vmatpush1.bf16.msra.mxu0 %v3853_v34  ;;  %v4345_v34 = vrot.slane %v4128_v15, 2  ;;  %v4370_v16 = vsel %vm1342_vm1, %v4349_v45, 0 }
 0x284   : > { %3918 = vmatpush1.bf16.msra.mxu1 %v3859_v57  ;;  %5911 = vmatprep.subr.msk.bf16.mxu0 %vm1342_vm1, %v3849_v26  ;;  %v5935_v26 = vld [vmem:[%s7589_s3 + $0x7] ss:$8 sm:$0xf0]  ;;  %v4556_v28 = vpop.permute.xlu0 %4555 }
 0x285   : > { %5913 = vmatprep.subr.msk.bf16.mxu1 %vm1342_vm1, %v3851_v48  ;;  %3908 = vmatprep.mubr.bf16.mxu0 %v6004_v12  ;;  %v5934_v48 = vld [vmem:[%s7589_s3 + $0x7] ss:$8 sm:$0xf]  ;;  %v4358_v36 = vsel %vm1342_vm1, %v4345_v34, 0  ;;  %v4567_v47 = vsel %vm4563_vm8, %v4554_v23, %v4556_v28  ;;  %v4566_v10 = vsel %vm4563_vm8, %v4556_v28, %v4558_v39 }
 0x286   : > { %3949 = vmatprep.mubr.bf16.mxu1 %v6004_v12  ;;  %v7205_v57 = vor.u32 %v5935_v26, %v5934_v48 }
 0x288   : > { %v4584_v35 = vrot.slane %v7205_v57, %v6530_v29  ;;  %v4592_v40 = vrot.slane %v7205_v57, %v6536_v31  ;;  %v4580_v53 = vrot.slane %v7205_v57, %v6609_v49  ;;  %v4588_v54 = vrot.slane %v7205_v57, %v6533_v30 }
 0x289   : > { %v4608_v17 = vrot.slane %v7205_v57, %v6613_v50  ;;  %v4600_v58 = vrot.slane %v7205_v57, %v6636_v61  ;;  %v4604_v5 = vrot.slane %v7205_v57, %v6642_v1 }
 0x28a   : > { %5908 = vmatmul.mubr.msk.bf16.vlgmr.msra.gmra.mrb[96].mxu0 %vm1338_vm2, %v7107_v18  ;;  %v4620_v8 = vmul.f32 %v4592_v40, %v4567_v47  ;;  %v4617_v56 = vmul.f32 %v4580_v53, %v4570_v4 }
 0x28b   : > { %5910 = vmatmul.mubr.msk.bf16.vlgmr.msra.gmra.mrb[96].mxu1 %vm1338_vm2, %v7107_v18  ;;  %3959 = vmatpush1.bf16.msra.mxu0 %v3865_v19  ;;  %v4618_v19 = vmul.f32 %v4584_v35, %v4569_v46 }
 0x28c   : > { %4000 = vmatpush1.bf16.msra.mxu1 %v3871_v55  ;;  %5918 = vmatprep.subr.msk.bf16.mxu0 %vm1342_vm1, %v4127_v9  ;;  %v4568_v9 = vsel %vm4563_vm8, %v4552_v60, %v4554_v23  ;;  %v4560_v55 = vpop.permute.xlu0 %4559  ;;  %v7242_v38 = vpack.c.bf16 %v4620_v8, %v4620_v8  ;;  %v5953_v8 = vld [vmem:[%s7589_s3 + $0x40] ss:$8 sm:$0xf] }
 0x28d   : > { %5920 = vmatprep.subr.msk.bf16.mxu1 %vm1342_vm1, %v4129_v37  ;;  %3990 = vmatprep.mubr.bf16.mxu0 %v6004_v12  ;;  %v4562_v37 = vpop.permute.xlu1 %4561  ;;  %v4619_v33 = vmul.f32 %v4588_v54, %v4568_v9  ;;  %v7240_v15 = vpack.c.bf16 %v4618_v19, %v4618_v19  ;;  %v4565_v62 = vsel %vm4563_vm8, %v4558_v39, %v4560_v55  ;;  %v5954_v9 = vld [vmem:[%s7589_s3 + $0x40] ss:$8 sm:$0xf0] }
 0x28e   : > { %4031 = vmatprep.mubr.bf16.mxu1 %v6004_v12  ;;  %v4571_v2 = vsel %vm4563_vm8, %v4562_v37, %v7178_v14  ;;  %v4622_v59 = vmul.f32 %v4600_v58, %v4565_v62  ;;  %v4564_v60 = vsel %vm4563_vm8, %v4560_v55, %v4562_v37  ;;  %v4845_v45 = vrot.slane %v7242_v38, 2 }
 0x28f   : > { %v7272_v14 = vpack.c.bf16 %v4619_v33, %v4619_v33  ;;  %v4624_v20 = vmul.f32 %v4608_v17, %v4571_v2  ;;  %v4623_v32 = vmul.f32 %v4604_v5, %v4564_v60  ;;  %v4843_v54 = vrot.slane %v7240_v15, 2 }
 0x290   : > { %v7287_v34 = vpack.c.bf16 %v4622_v59, %v4622_v59  ;;  %v7354_v2 = vor.u32 %v5954_v9, %v5953_v8 }
 0x291   : > { %v7285_v26 = vpack.c.bf16 %v4624_v20, %v4624_v20 }
 0x292   : > { %5912 = vmatmul.mubr.msk.bf16.vlgmr.msra.gmra.mrb[100].mxu0 %vm1338_vm2, %v7107_v18  ;;  %v4847_v20 = vrot.slane %v7287_v34, 2  ;;  %v5079_v60 = vrot.slane %v7354_v2, %v6609_v49  ;;  %v5099_v8 = vrot.slane %v7354_v2, %v6636_v61 }
 0x293   : > { %5914 = vmatmul.mubr.msk.bf16.vlgmr.msra.gmra.mrb[100].mxu1 %vm1338_vm2, %v7107_v18  ;;  %4164 = vmatpush1.bf16.msra.mxu0 %v4140_v0  ;;  %v7187_v18 = vld [vmem:[%s7588_s2 + $0xc] sm:$0x3]  ;;  %v7260_v0 = vpack.c.bf16 %v4617_v56, %v4617_v56 }
 0x294   : > { %4205 = vmatpush1.bf16.msra.mxu1 %v4146_v13  ;;  %5922 = vmatprep.subr.msk.bf16.mxu0 %vm1342_vm1, %v4131_v11  ;;  %v7266_v11 = vpop.permute.xlu1 %5048 }
 0x295   : > { %5924 = vmatprep.subr.msk.bf16.mxu1 %vm1342_vm1, %v4133_v43  ;;  %4195 = vmatprep.mubr.bf16.mxu0 %v6004_v12  ;;  %v4596_v43 = vrot.slane %v7205_v57, %v6616_v51  ;;  %v4639_v48 = vsel %vm1342_vm1, %v7260_v0, 0  ;;  %v4645_v57 = vsel %vm1342_vm1, %v7272_v14, 0  ;;  %v4842_v58 = vrot.slane %v7260_v0, 2 }
 0x296   : > { %4236 = vmatprep.mubr.bf16.mxu1 %v6004_v12 }
 0x297   : > { %v4621_v23 = vmul.f32 %v4596_v43, %v4566_v10  ;;  %v4851_v59 = vsel %vm1342_vm1, %v4842_v58, 0 }
 0x298   : > { %v7295_v28 = vpop.permute.xlu1 %5052 }
 0x29a   : > { %5919 = vmatmul.mubr.msk.bf16.vlgmr.msra.gmra.mrb[104].mxu0 %vm1338_vm2, %v7187_v18 }
 0x29b   : > { %5921 = vmatmul.mubr.msk.bf16.vlgmr.msra.gmra.mrb[104].mxu1 %vm1338_vm2, %v7187_v18  ;;  %4246 = vmatpush1.bf16.msra.mxu0 %v4152_v24 }
 0x29c   : > { %4287 = vmatpush1.bf16.msra.mxu1 %v4158_v25  ;;  %5926 = vmatprep.subr.msk.bf16.mxu0 %vm1342_vm1, %v4344_v21  ;;  %v7276_v21 = vpop.permute.xlu0 %5046  ;;  %v5545_v25 = vld [vmem:[%s7590_s4] sm:$0xf]  ;;  %v7338_v37 = vpop.permute.xlu1 %5056 }
 0x29d   : > { %5928 = vmatprep.subr.msk.bf16.mxu1 %vm1342_vm1, %v4346_v22  ;;  %4277 = vmatprep.mubr.bf16.mxu0 %v6004_v12 }
 0x29e   : > { %4318 = vmatprep.mubr.bf16.mxu1 %v6004_v12  ;;  %5548 = vperm.xlu1 %5994, %v5545_v25  }
 0x2a0   : > { %v7297_v35 = vpop.permute.xlu0 %5050 }
 0x2a2   : > { %5923 = vmatmul.mubr.msk.bf16.vlgmr.msra.gmra.mrb[108].mxu0 %vm1338_vm2, %v7187_v18 }
 0x2a3   : > { %5925 = vmatmul.mubr.msk.bf16.vlgmr.msra.gmra.mrb[108].mxu1 %vm1338_vm2, %v7187_v18  ;;  %4376 = vmatpush1.bf16.msra.mxu0 %v4352_v44 }
 0x2a4   : > { %4417 = vmatpush1.bf16.msra.mxu1 %v4358_v36  ;;  %5930 = vmatprep.subr.msk.bf16.mxu0 %vm1342_vm1, %v4348_v42  ;;  %v7313_v42 = vpack.c.bf16 %v4623_v32, %v4623_v32  ;;  %v7340_v55 = vpop.permute.xlu0 %5054  ;;  %v5087_v32 = vrot.slane %v7354_v2, %v6533_v30  ;;  %v5067_v30 = vsel %vm5062_vm9, %v7297_v35, %v7295_v28 }
 0x2a5   : > { %5932 = vmatprep.subr.msk.bf16.mxu1 %vm1342_vm1, %v4350_v41  ;;  %4407 = vmatprep.mubr.bf16.mxu0 %v6004_v12  ;;  %v7311_v41 = vpack.c.bf16 %v4621_v23, %v4621_v23 }
 0x2a6   : > { %4448 = vmatprep.mubr.bf16.mxu1 %v6004_v12  ;;  %v4657_v19 = vsel %vm1342_vm1, %v7313_v42, 0 }
 0x2a7   : > { %v4651_v4 = vsel %vm1342_vm1, %v7311_v41, 0  ;;  %v4846_v23 = vrot.slane %v7311_v41, 2 }
 0x2a8   : > { %v5059_v25 = vpop.permute.xlu0 %5058 }
 0x2a9   : > { %v4863_v9 = vsel %vm1342_vm1, %v4846_v23, 0  ;;  %v5064_v61 = vsel %vm5062_vm9, %v7338_v37, %v5059_v25  ;;  %v7475_v23 = vld [vmem:[%s7588_s2 + $0x10] sm:$0x3] }
 0x2aa   : > { %5927 = vmatmul.mubr.msk.bf16.vlgmr.msra.gmra.mrb[112].mxu0 %vm1338_vm2, %v7187_v18 }
 0x2ab   : > { %5929 = vmatmul.mubr.msk.bf16.vlgmr.msra.gmra.mrb[112].mxu1 %vm1338_vm2, %v7187_v18  ;;  %4458 = vmatpush1.bf16.msra.mxu0 %v4364_v63  ;;  %v4844_v63 = vrot.slane %v7272_v14, 2 }
 0x2ac   : > { %4499 = vmatpush1.bf16.msra.mxu1 %v4370_v16  ;;  %5937 = vmatprep.subr.msk.bf16.mxu0 %vm1342_vm1, %v7240_v15 }
 0x2ad   : > { %5939 = vmatprep.subr.msk.bf16.mxu1 %vm1342_vm1, %v7242_v38  ;;  %v7258_v3 = vpop.f32.mrb[8].mxu0  ;;  %4489 = vmatprep.mubr.bf16.mxu0 %v6004_v12 }
 0x2ae   : > { %v7268_v13 = vpop.f32.mrb[9].mxu0  ;;  %4530 = vmatprep.mubr.bf16.mxu1 %v6004_v12 }
 0x2af   : > { %v1405_v22 = vpop.f32.mrb[10].mxu0 }
 0x2b0   : > { %v1406_v24 = vpop.f32.mrb[11].mxu0  ;;  %v4857_v22 = vsel %vm1342_vm1, %v4844_v63, 0 }
 0x2b1   : > { %v5061_v24 = vpop.permute.xlu1 %5060 }
 0x2b2   : > { %5931 = vmatmul.mubr.msk.bf16.vlgmr.msra.gmra.mrb[116].mxu0 %vm1338_vm2, %v7187_v18 }
 0x2b3   : > { %5933 = vmatmul.mubr.msk.bf16.vlgmr.msra.gmra.mrb[116].mxu1 %vm1338_vm2, %v7187_v18  ;;  %4663 = vmatpush1.bf16.msra.mxu0 %v4639_v48  ;;  %v4848_v48 = vrot.slane %v7313_v42, 2 }
 0x2b4   : > { %4704 = vmatpush1.bf16.msra.mxu1 %v4645_v57  ;;  %5941 = vmatprep.subr.msk.bf16.mxu0 %vm1342_vm1, %v7287_v34 }
 0x2b5   : > { %5943 = vmatprep.subr.msk.bf16.mxu1 %vm1342_vm1, %v7285_v26  ;;  %v7303_v39 = vpop.f32.mrb[12].mxu0  ;;  %4694 = vmatprep.mubr.bf16.mxu0 %v6004_v12 }
 0x2b6   : > { %v7305_v40 = vpop.f32.mrb[12].mxu1  ;;  %v7307_v18 = vpop.f32.mrb[13].mxu0  ;;  %4735 = vmatprep.mubr.bf16.mxu1 %v6004_v12 }
 0x2b7   : > { %v7315_v44 = vpop.f32.mrb[13].mxu1  ;;  %v1487_v36 = vpop.f32.mrb[14].mxu0 }
 0x2b8   : > { %v1528_v46 = vpop.f32.mrb[14].mxu1  ;;  %v1488_v47 = vpop.f32.mrb[15].mxu0 }
 0x2b9   : > { %v1529_v53 = vpop.f32.mrb[15].mxu1 }
 0x2ba   : > { %5938 = vmatmul.mubr.msk.bf16.vlgmr.msra.gmra.mrb[120].mxu0 %vm1338_vm2, %v7320_v52 }
 0x2bb   : > { %5940 = vmatmul.mubr.msk.bf16.vlgmr.msra.gmra.mrb[120].mxu1 %vm1338_vm2, %v7320_v52  ;;  %4745 = vmatpush1.bf16.msra.mxu0 %v4651_v4 }
 0x2bc   : > { %4786 = vmatpush1.bf16.msra.mxu1 %v4657_v19  ;;  %5945 = vmatprep.subr.msk.bf16.mxu0 %vm1342_vm1, %v4843_v54 }
 0x2bd   : > { %5947 = vmatprep.subr.msk.bf16.mxu1 %vm1342_vm1, %v4845_v45  ;;  %v1592_v56 = vpop.f32.mrb[16].mxu0  ;;  %4776 = vmatprep.mubr.bf16.mxu0 %v6004_v12 }
 0x2be   : > { %v1633_v17 = vpop.f32.mrb[16].mxu1  ;;  %4817 = vmatprep.mubr.bf16.mxu1 %v6004_v12  ;;  %v7349_v33 = vadd.f32 %v1592_v56, %v7258_v3  ;;  %v1594_v38 = vpop.f32.mrb[17].mxu0  ;;  %v5559_v3 = vld [vmem:[%s7590_s4 + $0x4] sm:$0xf] }
 0x2bf   : > { %v7352_v15 = vadd.f32 %v1633_v17, %v7088_v6  ;;  %v1635_v16 = vpop.f32.mrb[17].mxu1  ;;  %v7357_v62 = vadd.f32 %v1594_v38, %v7268_v13  ;;  %v1596_v5 = vpop.f32.mrb[18].mxu0  ;;  %5562 = vperm.xlu0 %5993, %v5559_v3   ;;  %v5083_v6 = vrot.slane %v7354_v2, %v6530_v29  ;;  %v5091_v13 = vrot.slane %v7354_v2, %v6536_v31 }
 0x2c0   : > { %v7360_v43 = vadd.f32 %v1635_v16, %v7090_v7  ;;  %v1637_v0 = vpop.f32.mrb[18].mxu1  ;;  %v1597_v14 = vpop.f32.mrb[19].mxu0  ;;  %v4849_v7 = vrot.slane %v7285_v26, 2  ;;  %v5068_v29 = vsel %vm5062_vm9, %v7266_v11, %v7297_v35  ;;  %v5066_v31 = vsel %vm5062_vm9, %v7295_v28, %v7340_v55 }
 0x2c1   : > { %v1638_v10 = vpop.f32.mrb[19].mxu1  ;;  %v5069_v26 = vsel %vm5062_vm9, %v7276_v21, %v7266_v11  ;;  %v5117_v57 = vmul.f32 %v5083_v6, %v5068_v29  ;;  %v5119_v36 = vmul.f32 %v5091_v13, %v5066_v31  ;;  %v5118_v28 = vmul.f32 %v5087_v32, %v5067_v30 }
 0x2c2   : > { %5942 = vmatmul.mubr.msk.bf16.vlgmr.msra.gmra.mrb[124].mxu0 %vm1338_vm2, %v7320_v52  ;;  %v5116_v19 = vmul.f32 %v5079_v60, %v5069_v26  ;;  %v5095_v17 = vrot.slane %v7354_v2, %v6616_v51  ;;  %v5065_v16 = vsel %vm5062_vm9, %v7340_v55, %v7338_v37  ;;  %v5121_v0 = vmul.f32 %v5099_v8, %v5064_v61 }
 0x2c3   : > { %5944 = vmatmul.mubr.msk.bf16.vlgmr.msra.gmra.mrb[124].mxu1 %vm1338_vm2, %v7320_v52  ;;  %4875 = vmatpush1.bf16.msra.mxu0 %v4851_v59  ;;  %v7421_v35 = vpack.c.bf16 %v5117_v57, %v5117_v57  ;;  %v7448_v38 = vpack.c.bf16 %v5118_v28, %v5118_v28 }
 0x2c4   : > { %4916 = vmatpush1.bf16.msra.mxu1 %v4857_v22  ;;  %5949 = vmatprep.subr.msk.bf16.mxu0 %vm1342_vm1, %v4847_v20  ;;  %v7440_v56 = vpack.c.bf16 %v5116_v19, %v5116_v19  ;;  %v5120_v13 = vmul.f32 %v5095_v17, %v5065_v16  ;;  %v5129_v22 = vpack.c.bf16 %v5121_v0, %v5121_v0 }
 0x2c5   : > { %5951 = vmatprep.subr.msk.bf16.mxu1 %vm1342_vm1, %v4849_v7  ;;  %v1674_v34 = vpop.f32.mrb[20].mxu0  ;;  %4906 = vmatprep.mubr.bf16.mxu0 %v6004_v12  ;;  %v5144_v27 = vsel %vm1342_vm1, %v7448_v38, 0  ;;  %v5342_v32 = vrot.slane %v7421_v35, 2  ;;  %v5343_v30 = vrot.slane %v7448_v38, 2 }
 0x2c6   : > { %v1715_v49 = vpop.f32.mrb[20].mxu1  ;;  %4947 = vmatprep.mubr.bf16.mxu1 %v6004_v12  ;;  %v7401_v41 = vadd.f32 %v1674_v34, %v7303_v39  ;;  %v1676_v46 = vpop.f32.mrb[21].mxu0  ;;  %v5138_v7 = vsel %vm1342_vm1, %v7440_v56, 0  ;;  %v7468_v29 = vpack.c.bf16 %v5120_v13, %v5120_v13 }
 0x2c7   : > { %v7404_v42 = vadd.f32 %v1715_v49, %v7305_v40  ;;  %v1717_v47 = vpop.f32.mrb[21].mxu1  ;;  %v7411_v11 = vadd.f32 %v1676_v46, %v7307_v18  ;;  %v1678_v54 = vpop.f32.mrb[22].mxu0  ;;  %v5107_v40 = vrot.slane %v7354_v2, %v6613_v50  ;;  %v7423_v18 = vpack.c.bf16 %v5119_v36, %v5119_v36 }
 0x2c8   : > { %v7414_v53 = vadd.f32 %v1717_v47, %v7315_v44  ;;  %v1719_v45 = vpop.f32.mrb[22].mxu1  ;;  %v1679_v39 = vpop.f32.mrb[23].mxu0  ;;  %v4869_v44 = vsel %vm1342_vm1, %v4848_v48, 0  ;;  %v5070_v50 = vsel %vm5062_vm9, %v5061_v24, %v7276_v21  ;;  %v5103_v21 = vrot.slane %v7354_v2, %v6642_v1 }
 0x2c9   : > { %v1720_v4 = vpop.f32.mrb[23].mxu1  ;;  %v5123_v5 = vmul.f32 %v5107_v40, %v5070_v50  ;;  %v5063_v1 = vsel %vm5062_vm9, %v5059_v25, %v5061_v24  ;;  %v5344_v34 = vrot.slane %v7423_v18, 2  ;;  %v5150_v49 = vsel %vm1342_vm1, %v7468_v29, 0 }
 0x2ca   : > { %5946 = vmatmul.mubr.msk.bf16.vlgmr.msra.gmra.mrb[128].mxu0 %vm1338_vm2, %v7320_v52  ;;  %v5122_v59 = vmul.f32 %v5103_v21, %v5063_v1  ;;  %v5341_v47 = vrot.slane %v7440_v56, 2  ;;  %v5356_v61 = vsel %vm1342_vm1, %v5343_v30, 0  ;;  %v5345_v21 = vrot.slane %v7468_v29, 2 }
 0x2cb   : > { %5948 = vmatmul.mubr.msk.bf16.vlgmr.msra.gmra.mrb[128].mxu1 %vm1338_vm2, %v7320_v52  ;;  %4957 = vmatpush1.bf16.msra.mxu0 %v4863_v9  ;;  %v5131_v20 = vpack.c.bf16 %v5123_v5, %v5123_v5 }
 0x2cc   : > { %4998 = vmatpush1.bf16.msra.mxu1 %v4869_v44  ;;  %5956 = vmatprep.subr.msk.bf16.mxu0 %vm1342_vm1, %v7421_v35  ;;  %v7470_v31 = vpack.c.bf16 %v5122_v59, %v5122_v59  ;;  %v5346_v44 = vrot.slane %v5129_v22, 2  ;;  %v5350_v50 = vsel %vm1342_vm1, %v5341_v47, 0 }
 0x2cd   : > { %5958 = vmatprep.subr.msk.bf16.mxu1 %vm1342_vm1, %v7423_v18  ;;  %v1796_v58 = vpop.f32.mrb[24].mxu0  ;;  %4988 = vmatprep.mubr.bf16.mxu0 %v6004_v12  ;;  %v5348_v18 = vrot.slane %v5131_v20, 2 }
 0x2ce   : > { %v1837_v63 = vpop.f32.mrb[24].mxu1  ;;  %5029 = vmatprep.mubr.bf16.mxu1 %v6004_v12  ;;  %v1798_v3 = vpop.f32.mrb[25].mxu0  ;;  %v5156_v57 = vsel %vm1342_vm1, %v7470_v31, 0 }
 0x2cf   : > { %v1839_v51 = vpop.f32.mrb[25].mxu1  ;;  %v1800_v2 = vpop.f32.mrb[26].mxu0 }
 0x2d0   : > { %v1841_v14 = vpop.f32.mrb[26].mxu1  ;;  %v1801_v10 = vpop.f32.mrb[27].mxu0 }
 0x2d1   : > { %v1842_v6 = vpop.f32.mrb[27].mxu1  ;;  %v5362_v10 = vsel %vm1342_vm1, %v5345_v21, 0 }
 0x2d2   : > { %5950 = vmatmul.mubr.msk.bf16.vlgmr.msra.gmra.mrb[132].mxu0 %vm1338_vm2, %v7320_v52 }
 0x2d3   : > { %5952 = vmatmul.mubr.msk.bf16.vlgmr.msra.gmra.mrb[132].mxu1 %vm1338_vm2, %v7320_v52  ;;  %5162 = vmatpush1.bf16.msra.mxu0 %v5138_v7 }
 0x2d4   : > { %5203 = vmatpush1.bf16.msra.mxu1 %v5144_v27  ;;  %5960 = vmatprep.subr.msk.bf16.mxu0 %vm1342_vm1, %v5129_v22 }
 0x2d5   : > { %5962 = vmatprep.subr.msk.bf16.mxu1 %vm1342_vm1, %v5131_v20  ;;  %v1878_v37 = vpop.f32.mrb[28].mxu0  ;;  %5193 = vmatprep.mubr.bf16.mxu0 %v6004_v12 }
 0x2d6   : > { %v1919_v55 = vpop.f32.mrb[28].mxu1  ;;  %5234 = vmatprep.mubr.bf16.mxu1 %v6004_v12  ;;  %v1880_v52 = vpop.f32.mrb[29].mxu0 }
 0x2d7   : > { %v1921_v60 = vpop.f32.mrb[29].mxu1  ;;  %v1882_v24 = vpop.f32.mrb[30].mxu0 }
 0x2d8   : > { %v1923_v25 = vpop.f32.mrb[30].mxu1  ;;  %v1883_v48 = vpop.f32.mrb[31].mxu0 }
 0x2d9   : > { %v1924_v26 = vpop.f32.mrb[31].mxu1 }
 0x2da   : > { %5957 = vmatmul.mubr.msk.bf16.vlgmr.msra.gmra.mrb[136].mxu0 %vm1338_vm2, %v7475_v23 }
 0x2db   : > { %5959 = vmatmul.mubr.msk.bf16.vlgmr.msra.gmra.mrb[136].mxu1 %vm1338_vm2, %v7475_v23  ;;  %5244 = vmatpush1.bf16.msra.mxu0 %v5150_v49 }
 0x2dc   : > { %5285 = vmatpush1.bf16.msra.mxu1 %v5156_v57  ;;  %5964 = vmatprep.subr.msk.bf16.mxu0 %vm1342_vm1, %v5342_v32 }
 0x2dd   : > { %5966 = vmatprep.subr.msk.bf16.mxu1 %vm1342_vm1, %v5344_v34  ;;  %v2000_v36 = vpop.f32.mrb[32].mxu0  ;;  %5275 = vmatprep.mubr.bf16.mxu0 %v6004_v12 }
 0x2de   : > { %v2041_v46 = vpop.f32.mrb[32].mxu1  ;;  %5316 = vmatprep.mubr.bf16.mxu1 %v6004_v12  ;;  %v7493_v54 = vadd.f32 %v2000_v36, %v1796_v58  ;;  %v2002_v39 = vpop.f32.mrb[33].mxu0  ;;  %v5347_v58 = vrot.slane %v7470_v31, 2 }
 0x2df   : > { %v7495_v45 = vadd.f32 %v2041_v46, %v1837_v63  ;;  %v2043_v4 = vpop.f32.mrb[33].mxu1  ;;  %v7497_v19 = vadd.f32 %v2002_v39, %v1798_v3  ;;  %v2004_v8 = vpop.f32.mrb[34].mxu0 }
 0x2e0   : > { %v7499_v40 = vadd.f32 %v2043_v4, %v1839_v51  ;;  %v2045_v9 = vpop.f32.mrb[34].mxu1  ;;  %v2005_v28 = vpop.f32.mrb[35].mxu0  ;;  %v5368_v6 = vsel %vm1342_vm1, %v5347_v58, 0 }
 0x2e1   : > { %v2046_v35 = vpop.f32.mrb[35].mxu1 }
 0x2e2   : > { %5961 = vmatmul.mubr.msk.bf16.vlgmr.msra.gmra.mrb[140].mxu0 %vm1338_vm2, %v7475_v23 }
 0x2e3   : > { %5963 = vmatmul.mubr.msk.bf16.vlgmr.msra.gmra.mrb[140].mxu1 %vm1338_vm2, %v7475_v23  ;;  %5374 = vmatpush1.bf16.msra.mxu0 %v5350_v50 }
 0x2e4   : > { %5415 = vmatpush1.bf16.msra.mxu1 %v5356_v61  ;;  %5968 = vmatprep.subr.msk.bf16.mxu0 %vm1342_vm1, %v5346_v44 }
 0x2e5   : > { %5970 = vmatprep.subr.msk.bf16.mxu1 %vm1342_vm1, %v5348_v18  ;;  %v2082_v56 = vpop.f32.mrb[36].mxu0  ;;  %5405 = vmatprep.mubr.bf16.mxu0 %v6004_v12 }
 0x2e6   : > { %v2123_v17 = vpop.f32.mrb[36].mxu1  ;;  %5446 = vmatprep.mubr.bf16.mxu1 %v6004_v12  ;;  %v2083_v63 = vadd.f32 %v2082_v56, %v1878_v37  ;;  %v2084_v16 = vpop.f32.mrb[37].mxu0 }
 0x2e7   : > { %v2124_v38 = vadd.f32 %v2123_v17, %v1919_v55  ;;  %v2125_v5 = vpop.f32.mrb[37].mxu1  ;;  %v2085_v0 = vadd.f32 %v2084_v16, %v1880_v52  ;;  %v2086_v51 = vpop.f32.mrb[38].mxu0 }
 0x2e8   : > { %v2126_v3 = vadd.f32 %v2125_v5, %v1921_v60  ;;  %v2127_v1 = vpop.f32.mrb[38].mxu1  ;;  %v2087_v2 = vpop.f32.mrb[39].mxu0 }
 0x2e9   : > { %v2128_v14 = vpop.f32.mrb[39].mxu1 }
 0x2ea   : > { %5965 = vmatmul.mubr.msk.bf16.vlgmr.msra.gmra.mrb[144].mxu0 %vm1338_vm2, %v7475_v23 }
 0x2eb   : > { %5967 = vmatmul.mubr.msk.bf16.vlgmr.msra.gmra.mrb[144].mxu1 %vm1338_vm2, %v7475_v23  ;;  %5456 = vmatpush1.bf16.msra.mxu0 %v5362_v10 }
 0x2ec   : > { %5497 = vmatpush1.bf16.msra.mxu1 %v5368_v6  ;;  %5487 = vmatprep.mubr.bf16.mxu0 %v6004_v12 }
 0x2ed   : > { %5528 = vmatprep.mubr.bf16.mxu1 %v6004_v12  ;;  %v2279_v13 = vpop.f32.mrb[40].mxu0 }
 0x2ee   : > { %v2320_v7 = vpop.f32.mrb[40].mxu1  ;;  %v2409_v20 = vadd.f32 %v2279_v13, %v7349_v33  ;;  %v2281_v22 = vpop.f32.mrb[41].mxu0 }
 0x2ef   : > { %v2411_v59 = vadd.f32 %v2320_v7, %v7352_v15  ;;  %v2322_v27 = vpop.f32.mrb[41].mxu1  ;;  %v2410_v37 = vadd.f32 %v2281_v22, %v7357_v62  ;;  %v2283_v29 = vpop.f32.mrb[42].mxu0 }
 0x2f0   : > { %v2412_v55 = vadd.f32 %v2322_v27, %v7360_v43  ;;  %v2324_v31 = vpop.f32.mrb[42].mxu1  ;;  %v2284_v52 = vpop.f32.mrb[43].mxu0 }
 0x2f1   : > { %v2325_v60 = vpop.f32.mrb[43].mxu1 }
 0x2f2   : > { %5969 = vmatmul.mubr.msk.bf16.vlgmr.msra.gmra.mrb[148].mxu0 %vm1338_vm2, %v7475_v23 }
 0x2f3   : > { %5971 = vmatmul.mubr.msk.bf16.vlgmr.msra.gmra.mrb[148].mxu1 %vm1338_vm2, %v7475_v23 }
 0x2f5   : > { %v2361_v12 = vpop.f32.mrb[44].mxu0 }
 0x2f6   : > { %v2402_v33 = vpop.f32.mrb[44].mxu1  ;;  %v2413_v15 = vadd.f32 %v2361_v12, %v7401_v41  ;;  %v2363_v25 = vpop.f32.mrb[45].mxu0 }
 0x2f7   : > { %v2415_v24 = vadd.f32 %v2402_v33, %v7404_v42  ;;  %v2404_v62 = vpop.f32.mrb[45].mxu1  ;;  %v2414_v43 = vadd.f32 %v2363_v25, %v7411_v11  ;;  %v2365_v26 = vpop.f32.mrb[46].mxu0 }
 0x2f8   : > { %v2416_v48 = vadd.f32 %v2404_v62, %v7414_v53  ;;  %v2406_v32 = vpop.f32.mrb[46].mxu1  ;;  %v2366_v34 = vpop.f32.mrb[47].mxu0 }
 0x2f9   : > { %v2407_v49 = vpop.f32.mrb[47].mxu1 }
 0x2fd   : > { %v2491_v57 = vpop.f32.mrb[48].mxu0 }
 0x2fe   : > { %v2532_v36 = vpop.f32.mrb[48].mxu1  ;;  %v2621_v23 = vadd.f32 %v2491_v57, %v7493_v54  ;;  %v2493_v47 = vpop.f32.mrb[49].mxu0 }
 0x2ff   : > { %v2623_v46 = vadd.f32 %v2532_v36, %v7495_v45  ;;  %v2534_v41 = vpop.f32.mrb[49].mxu1  ;;  %v2622_v42 = vadd.f32 %v2493_v47, %v7497_v19  ;;  %v2495_v39 = vpop.f32.mrb[50].mxu0 }
 0x300   : > { %v2624_v30 = vadd.f32 %v2534_v41, %v7499_v40  ;;  %v2536_v11 = vpop.f32.mrb[50].mxu1  ;;  %v2496_v4 = vpop.f32.mrb[51].mxu0 }
 0x301   : > { %v2537_v53 = vpop.f32.mrb[51].mxu1 }
 0x305   : > { %v2573_v8 = vpop.f32.mrb[52].mxu0 }
 0x306   : > { %v2614_v9 = vpop.f32.mrb[52].mxu1  ;;  %v2625_v28 = vadd.f32 %v2573_v8, %v2083_v63  ;;  %v2575_v18 = vpop.f32.mrb[53].mxu0 }
 0x307   : > { %v2627_v35 = vadd.f32 %v2614_v9, %v2124_v38  ;;  %v2616_v44 = vpop.f32.mrb[53].mxu1  ;;  %v2626_v50 = vadd.f32 %v2575_v18, %v2085_v0  ;;  %v2577_v61 = vpop.f32.mrb[54].mxu0 }
 0x308   : > { %v2628_v54 = vadd.f32 %v2616_v44, %v2126_v3  ;;  %v2618_v45 = vpop.f32.mrb[54].mxu1  ;;  %v2578_v56 = vpop.f32.mrb[55].mxu0 }
 0x309   : > { %v2619_v17 = vpop.f32.mrb[55].mxu1 }
 0x30d   : > { %v2778_v21 = vpop.f32.mrb[56].mxu0 }
 0x30e   : > { %v2819_v19 = vpop.f32.mrb[56].mxu1  ;;  %v2908_v58 = vadd.f32 %v2778_v21, %v2409_v20  ;;  %v2780_v16 = vpop.f32.mrb[57].mxu0 }
 0x30f   : > { %v2910_v40 = vadd.f32 %v2819_v19, %v2411_v59  ;;  %v2821_v5 = vpop.f32.mrb[57].mxu1  ;;  %v2909_v51 = vadd.f32 %v2780_v16, %v2410_v37  ;;  %v2782_v2 = vpop.f32.mrb[58].mxu0 }
 0x310   : > { %v2911_v1 = vadd.f32 %v2821_v5, %v2412_v55  ;;  %v2823_v14 = vpop.f32.mrb[58].mxu1  ;;  %v2783_v63 = vpop.f32.mrb[59].mxu0 }
 0x311   : > { %v2824_v38 = vpop.f32.mrb[59].mxu1 }
 0x315   : > { %v2860_v10 = vpop.f32.mrb[60].mxu0 }
 0x316   : > { %v2901_v6 = vpop.f32.mrb[60].mxu1  ;;  %v2912_v0 = vadd.f32 %v2860_v10, %v2413_v15  ;;  %v2862_v13 = vpop.f32.mrb[61].mxu0 }
 0x317   : > { %v2914_v3 = vadd.f32 %v2901_v6, %v2415_v24  ;;  %v2903_v7 = vpop.f32.mrb[61].mxu1  ;;  %v2913_v22 = vadd.f32 %v2862_v13, %v2414_v43  ;;  %v2864_v29 = vpop.f32.mrb[62].mxu0 }
 0x318   : > { %v2915_v27 = vadd.f32 %v2903_v7, %v2416_v48  ;;  %v2905_v31 = vpop.f32.mrb[62].mxu1  ;;  %v2865_v20 = vpop.f32.mrb[63].mxu0 }
 0x319   : > { %v2906_v59 = vpop.f32.mrb[63].mxu1 }
 0x31d   : > { %v2990_v52 = vpop.f32.mrb[64].mxu0 }
 0x31e   : > { %v3031_v60 = vpop.f32.mrb[64].mxu1  ;;  %v3120_v37 = vadd.f32 %v2990_v52, %v2621_v23  ;;  %v2992_v12 = vpop.f32.mrb[65].mxu0 }
 0x31f   : > { %v3122_v55 = vadd.f32 %v3031_v60, %v2623_v46  ;;  %v3033_v33 = vpop.f32.mrb[65].mxu1  ;;  %v3121_v25 = vadd.f32 %v2992_v12, %v2622_v42  ;;  %v2994_v26 = vpop.f32.mrb[66].mxu0 }
 0x320   : > { %v3123_v62 = vadd.f32 %v3033_v33, %v2624_v30  ;;  %v3035_v32 = vpop.f32.mrb[66].mxu1  ;;  %v2995_v15 = vpop.f32.mrb[67].mxu0 }
 0x321   : > { %v3036_v24 = vpop.f32.mrb[67].mxu1 }
 0x325   : > { %v3072_v34 = vpop.f32.mrb[68].mxu0 }
 0x326   : > { %v3113_v49 = vpop.f32.mrb[68].mxu1  ;;  %v3124_v43 = vadd.f32 %v3072_v34, %v2625_v28  ;;  %v3074_v57 = vpop.f32.mrb[69].mxu0 }
 0x327   : > { %v3126_v48 = vadd.f32 %v3113_v49, %v2627_v35  ;;  %v3115_v36 = vpop.f32.mrb[69].mxu1  ;;  %v3125_v47 = vadd.f32 %v3074_v57, %v2626_v50  ;;  %v3076_v39 = vpop.f32.mrb[70].mxu0 }
 0x328   : > { %v3127_v41 = vadd.f32 %v3115_v36, %v2628_v54  ;;  %v3117_v11 = vpop.f32.mrb[70].mxu1  ;;  %v3077_v23 = vpop.f32.mrb[71].mxu0 }
 0x329   : > { %v3118_v46 = vpop.f32.mrb[71].mxu1 }
 0x32d   : > { %v3199_v4 = vpop.f32.mrb[72].mxu0 }
 0x32e   : > { %v3240_v53 = vpop.f32.mrb[72].mxu1  ;;  %v3329_v42 = vadd.f32 %v3199_v4, %v2908_v58  ;;  %v3201_v8 = vpop.f32.mrb[73].mxu0 }
 0x32f   : > { %v3331_v30 = vadd.f32 %v3240_v53, %v2910_v40  ;;  %v3242_v9 = vpop.f32.mrb[73].mxu1  ;;  %v3330_v18 = vadd.f32 %v3201_v8, %v2909_v51  ;;  %v3203_v61 = vpop.f32.mrb[74].mxu0 }
 0x330   : > { %v3332_v44 = vadd.f32 %v3242_v9, %v2911_v1  ;;  %v3244_v45 = vpop.f32.mrb[74].mxu1  ;;  %v3204_v28 = vpop.f32.mrb[75].mxu0 }
 0x331   : > { %v3245_v35 = vpop.f32.mrb[75].mxu1 }
 0x335   : > { %v3281_v56 = vpop.f32.mrb[76].mxu0 }
 0x336   : > { %v3322_v17 = vpop.f32.mrb[76].mxu1  ;;  %v3333_v50 = vadd.f32 %v3281_v56, %v2912_v0  ;;  %v3283_v21 = vpop.f32.mrb[77].mxu0 }
 0x337   : > { %v3335_v54 = vadd.f32 %v3322_v17, %v2914_v3  ;;  %v3324_v19 = vpop.f32.mrb[77].mxu1  ;;  %v3334_v16 = vadd.f32 %v3283_v21, %v2913_v22  ;;  %v3285_v2 = vpop.f32.mrb[78].mxu0 }
 0x338   : > { %v3336_v5 = vadd.f32 %v3324_v19, %v2915_v27  ;;  %v3326_v14 = vpop.f32.mrb[78].mxu1  ;;  %v3286_v58 = vpop.f32.mrb[79].mxu0 }
 0x339   : > { %v3327_v40 = vpop.f32.mrb[79].mxu1 }
 0x33d   : > { %v3411_v63 = vpop.f32.mrb[80].mxu0 }
 0x33e   : > { %v3452_v38 = vpop.f32.mrb[80].mxu1  ;;  %v3541_v51 = vadd.f32 %v3411_v63, %v3120_v37  ;;  %v3413_v10 = vpop.f32.mrb[81].mxu0 }
 0x33f   : > { %v3543_v1 = vadd.f32 %v3452_v38, %v3122_v55  ;;  %v3454_v6 = vpop.f32.mrb[81].mxu1  ;;  %v3542_v13 = vadd.f32 %v3413_v10, %v3121_v25  ;;  %v3415_v29 = vpop.f32.mrb[82].mxu0 }
 0x340   : > { %v3544_v7 = vadd.f32 %v3454_v6, %v3123_v62  ;;  %v3456_v31 = vpop.f32.mrb[82].mxu1  ;;  %v3416_v0 = vpop.f32.mrb[83].mxu0 }
 0x341   : > { %v3457_v3 = vpop.f32.mrb[83].mxu1 }
 0x345   : > { %v3493_v20 = vpop.f32.mrb[84].mxu0 }
 0x346   : > { %v3534_v59 = vpop.f32.mrb[84].mxu1  ;;  %v3545_v22 = vadd.f32 %v3493_v20, %v3124_v43  ;;  %v3495_v52 = vpop.f32.mrb[85].mxu0 }
 0x347   : > { %v3547_v27 = vadd.f32 %v3534_v59, %v3126_v48  ;;  %v3536_v60 = vpop.f32.mrb[85].mxu1  ;;  %v3546_v12 = vadd.f32 %v3495_v52, %v3125_v47  ;;  %v3497_v26 = vpop.f32.mrb[86].mxu0 }
 0x348   : > { %v3548_v33 = vadd.f32 %v3536_v60, %v3127_v41  ;;  %v3538_v32 = vpop.f32.mrb[86].mxu1  ;;  %v3498_v37 = vpop.f32.mrb[87].mxu0 }
 0x349   : > { %v3539_v55 = vpop.f32.mrb[87].mxu1 }
 0x34d   : > { %v3698_v15 = vpop.f32.mrb[88].mxu0 }
 0x34e   : > { %v3739_v24 = vpop.f32.mrb[88].mxu1  ;;  %v3828_v25 = vadd.f32 %v3698_v15, %v3329_v42  ;;  %v3700_v34 = vpop.f32.mrb[89].mxu0 }
 0x34f   : > { %v3830_v62 = vadd.f32 %v3739_v24, %v3331_v30  ;;  %v3741_v49 = vpop.f32.mrb[89].mxu1  ;;  %v3829_v57 = vadd.f32 %v3700_v34, %v3330_v18  ;;  %v3702_v39 = vpop.f32.mrb[90].mxu0 }
 0x350   : > { %v3831_v36 = vadd.f32 %v3741_v49, %v3332_v44  ;;  %v3743_v11 = vpop.f32.mrb[90].mxu1  ;;  %v3703_v43 = vpop.f32.mrb[91].mxu0 }
 0x351   : > { %v3744_v48 = vpop.f32.mrb[91].mxu1 }
 0x355   : > { %v3780_v23 = vpop.f32.mrb[92].mxu0 }
 0x356   : > { %v3821_v46 = vpop.f32.mrb[92].mxu1  ;;  %v3832_v47 = vadd.f32 %v3780_v23, %v3333_v50  ;;  %v3782_v4 = vpop.f32.mrb[93].mxu0 }
 0x357   : > { %v3834_v41 = vadd.f32 %v3821_v46, %v3335_v54  ;;  %v3823_v53 = vpop.f32.mrb[93].mxu1  ;;  %v3833_v8 = vadd.f32 %v3782_v4, %v3334_v16  ;;  %v3784_v61 = vpop.f32.mrb[94].mxu0 }
 0x358   : > { %v3835_v9 = vadd.f32 %v3823_v53, %v3336_v5  ;;  %v3825_v45 = vpop.f32.mrb[94].mxu1  ;;  %v3785_v42 = vpop.f32.mrb[95].mxu0 }
 0x359   : > { %v3826_v30 = vpop.f32.mrb[95].mxu1 }
 0x35d   : > { %v3910_v28 = vpop.f32.mrb[96].mxu0 }
 0x35e   : > { %v3951_v35 = vpop.f32.mrb[96].mxu1  ;;  %v4040_v18 = vadd.f32 %v3910_v28, %v3541_v51  ;;  %v3912_v56 = vpop.f32.mrb[97].mxu0 }
 0x35f   : > { %v4042_v44 = vadd.f32 %v3951_v35, %v3543_v1  ;;  %v3953_v17 = vpop.f32.mrb[97].mxu1  ;;  %v4041_v21 = vadd.f32 %v3912_v56, %v3542_v13  ;;  %v3914_v2 = vpop.f32.mrb[98].mxu0 }
 0x360   : > { %v4043_v19 = vadd.f32 %v3953_v17, %v3544_v7  ;;  %v3955_v14 = vpop.f32.mrb[98].mxu1  ;;  %v3915_v50 = vpop.f32.mrb[99].mxu0 }
 0x361   : > { %v3956_v54 = vpop.f32.mrb[99].mxu1 }
 0x365   : > { %v3992_v58 = vpop.f32.mrb[100].mxu0 }
 0x366   : > { %v4033_v40 = vpop.f32.mrb[100].mxu1  ;;  %v4044_v16 = vadd.f32 %v3992_v58, %v3545_v22  ;;  %v3994_v63 = vpop.f32.mrb[101].mxu0 }
 0x367   : > { %v4046_v5 = vadd.f32 %v4033_v40, %v3547_v27  ;;  %v4035_v38 = vpop.f32.mrb[101].mxu1  ;;  %v4045_v10 = vadd.f32 %v3994_v63, %v3546_v12  ;;  %v3996_v29 = vpop.f32.mrb[102].mxu0 }
 0x368   : > { %v4047_v6 = vadd.f32 %v4035_v38, %v3548_v33  ;;  %v4037_v31 = vpop.f32.mrb[102].mxu1  ;;  %v3997_v51 = vpop.f32.mrb[103].mxu0 }
 0x369   : > { %v4038_v1 = vpop.f32.mrb[103].mxu1 }
 0x36d   : > { %v4197_v0 = vpop.f32.mrb[104].mxu0 }
 0x36e   : > { %v4238_v3 = vpop.f32.mrb[104].mxu1  ;;  %v4327_v13 = vadd.f32 %v4197_v0, %v3828_v25  ;;  %v4199_v20 = vpop.f32.mrb[105].mxu0 }
 0x36f   : > { %v4329_v7 = vadd.f32 %v4238_v3, %v3830_v62  ;;  %v4240_v59 = vpop.f32.mrb[105].mxu1  ;;  %v4328_v52 = vadd.f32 %v4199_v20, %v3829_v57  ;;  %v4201_v26 = vpop.f32.mrb[106].mxu0 }
 0x370   : > { %v4330_v60 = vadd.f32 %v4240_v59, %v3831_v36  ;;  %v4242_v32 = vpop.f32.mrb[106].mxu1  ;;  %v4202_v22 = vpop.f32.mrb[107].mxu0 }
 0x371   : > { %v4243_v27 = vpop.f32.mrb[107].mxu1 }
 0x375   : > { %v4279_v37 = vpop.f32.mrb[108].mxu0 }
 0x376   : > { %v4320_v55 = vpop.f32.mrb[108].mxu1  ;;  %v4331_v12 = vadd.f32 %v4279_v37, %v3832_v47  ;;  %v4281_v15 = vpop.f32.mrb[109].mxu0 }
 0x377   : > { %v4333_v33 = vadd.f32 %v4320_v55, %v3834_v41  ;;  %v4322_v24 = vpop.f32.mrb[109].mxu1  ;;  %v4332_v34 = vadd.f32 %v4281_v15, %v3833_v8  ;;  %v4283_v39 = vpop.f32.mrb[110].mxu0 }
 0x378   : > { %v4334_v49 = vadd.f32 %v4322_v24, %v3835_v9  ;;  %v4324_v11 = vpop.f32.mrb[110].mxu1  ;;  %v4284_v25 = vpop.f32.mrb[111].mxu0 }
 0x379   : > { %v4325_v62 = vpop.f32.mrb[111].mxu1 }
 0x37d   : > { %v4409_v43 = vpop.f32.mrb[112].mxu0 }
 0x37e   : > { %v4450_v48 = vpop.f32.mrb[112].mxu1  ;;  %v4539_v57 = vadd.f32 %v4409_v43, %v4040_v18  ;;  %v4411_v23 = vpop.f32.mrb[113].mxu0 }
 0x37f   : > { %v4541_v36 = vadd.f32 %v4450_v48, %v4042_v44  ;;  %v4452_v46 = vpop.f32.mrb[113].mxu1  ;;  %v4540_v4 = vadd.f32 %v4411_v23, %v4041_v21  ;;  %v4413_v61 = vpop.f32.mrb[114].mxu0 }
 0x380   : > { %v4542_v53 = vadd.f32 %v4452_v46, %v4043_v19  ;;  %v4454_v45 = vpop.f32.mrb[114].mxu1  ;;  %v4414_v47 = vpop.f32.mrb[115].mxu0 }
 0x381   : > { %v4455_v41 = vpop.f32.mrb[115].mxu1 }
 0x385   : > { %v4491_v42 = vpop.f32.mrb[116].mxu0 }
 0x386   : > { %v4532_v30 = vpop.f32.mrb[116].mxu1  ;;  %v4543_v8 = vadd.f32 %v4491_v42, %v4044_v16  ;;  %v4493_v28 = vpop.f32.mrb[117].mxu0 }
 0x387   : > { %v4545_v9 = vadd.f32 %v4532_v30, %v4046_v5  ;;  %v4534_v35 = vpop.f32.mrb[117].mxu1  ;;  %v4544_v56 = vadd.f32 %v4493_v28, %v4045_v10  ;;  %v4495_v2 = vpop.f32.mrb[118].mxu0 }
 0x388   : > { %v4546_v17 = vadd.f32 %v4534_v35, %v4047_v6  ;;  %v4536_v14 = vpop.f32.mrb[118].mxu1  ;;  %v4496_v18 = vpop.f32.mrb[119].mxu0 }
 0x389   : > { %v4537_v44 = vpop.f32.mrb[119].mxu1 }
 0x38d   : > { %v4696_v50 = vpop.f32.mrb[120].mxu0 }
 0x38e   : > { %v4737_v54 = vpop.f32.mrb[120].mxu1  ;;  %v4826_v21 = vadd.f32 %v4696_v50, %v4327_v13  ;;  %v4698_v58 = vpop.f32.mrb[121].mxu0 }
 0x38f   : > { %v4828_v19 = vadd.f32 %v4737_v54, %v4329_v7  ;;  %v4739_v40 = vpop.f32.mrb[121].mxu1  ;;  %v4827_v63 = vadd.f32 %v4698_v58, %v4328_v52  ;;  %v4700_v29 = vpop.f32.mrb[122].mxu0 }
 0x390   : > { %v4829_v38 = vadd.f32 %v4739_v40, %v4330_v60  ;;  %v4741_v31 = vpop.f32.mrb[122].mxu1  ;;  %v4701_v16 = vpop.f32.mrb[123].mxu0 }
 0x391   : > { %v4742_v5 = vpop.f32.mrb[123].mxu1  ;;  %v5549_v29 = vpop.permute.xlu1 %5548 }
 0x392   : > { %v5563_v31 = vpop.permute.xlu0 %5562 }
 0x395   : > { %v4778_v51 = vpop.f32.mrb[124].mxu0 }
 0x396   : > { %v4819_v1 = vpop.f32.mrb[124].mxu1  ;;  %v4830_v10 = vadd.f32 %v4778_v51, %v4331_v12  ;;  %v4780_v0 = vpop.f32.mrb[125].mxu0 }
 0x397   : > { %v4832_v6 = vadd.f32 %v4819_v1, %v4333_v33  ;;  %v4821_v3 = vpop.f32.mrb[125].mxu1  ;;  %v4831_v20 = vadd.f32 %v4780_v0, %v4332_v34  ;;  %v4782_v26 = vpop.f32.mrb[126].mxu0 }
 0x398   : > { %v4833_v59 = vadd.f32 %v4821_v3, %v4334_v49  ;;  %v4823_v32 = vpop.f32.mrb[126].mxu1  ;;  %v4783_v13 = vpop.f32.mrb[127].mxu0 }
 0x399   : > { %v4824_v7 = vpop.f32.mrb[127].mxu1 }
 0x39d   : > { %v4908_v22 = vpop.f32.mrb[128].mxu0 }
 0x39e   : > { %v4949_v27 = vpop.f32.mrb[128].mxu1  ;;  %v5038_v52 = vadd.f32 %v4908_v22, %v4539_v57  ;;  %v4910_v37 = vpop.f32.mrb[129].mxu0 }
 0x39f   : > { %v5040_v60 = vadd.f32 %v4949_v27, %v4541_v36  ;;  %v4951_v55 = vpop.f32.mrb[129].mxu1  ;;  %v5039_v15 = vadd.f32 %v4910_v37, %v4540_v4  ;;  %v4912_v39 = vpop.f32.mrb[130].mxu0 }
 0x3a0   : > { %v5041_v24 = vadd.f32 %v4951_v55, %v4542_v53  ;;  %v4953_v11 = vpop.f32.mrb[130].mxu1  ;;  %v4913_v12 = vpop.f32.mrb[131].mxu0 }
 0x3a1   : > { %v4954_v33 = vpop.f32.mrb[131].mxu1 }
 0x3a5   : > { %v4990_v25 = vpop.f32.mrb[132].mxu0 }
 0x3a6   : > { %v5031_v62 = vpop.f32.mrb[132].mxu1  ;;  %v7537_v34 = vadd.f32 %v4990_v25, %v4543_v8  ;;  %v4992_v43 = vpop.f32.mrb[133].mxu0 }
 0x3a7   : > { %v7539_v49 = vadd.f32 %v5031_v62, %v4545_v9  ;;  %v5033_v48 = vpop.f32.mrb[133].mxu1  ;;  %v7541_v23 = vadd.f32 %v4992_v43, %v4544_v56  ;;  %v4994_v36 = vpop.f32.mrb[134].mxu0 }
 0x3a8   : > { %v7543_v57 = vadd.f32 %v5033_v48, %v4546_v17  ;;  %v5035_v46 = vpop.f32.mrb[134].mxu1  ;;  %v4995_v4 = vpop.f32.mrb[135].mxu0 }
 0x3a9   : > { %v5036_v53 = vpop.f32.mrb[135].mxu1 }
 0x3ad   : > { %v5195_v61 = vpop.f32.mrb[136].mxu0 }
 0x3ae   : > { %v5236_v45 = vpop.f32.mrb[136].mxu1  ;;  %v5325_v47 = vadd.f32 %v5195_v61, %v4826_v21  ;;  %v5197_v42 = vpop.f32.mrb[137].mxu0 }
 0x3af   : > { %v5327_v41 = vadd.f32 %v5236_v45, %v4828_v19  ;;  %v5238_v30 = vpop.f32.mrb[137].mxu1  ;;  %v5326_v8 = vadd.f32 %v5197_v42, %v4827_v63  ;;  %v5199_v9 = vpop.f32.mrb[138].mxu0 }
 0x3b0   : > { %v5328_v28 = vadd.f32 %v5238_v30, %v4829_v38  ;;  %v5240_v35 = vpop.f32.mrb[138].mxu1  ;;  %v5200_v2 = vpop.f32.mrb[139].mxu0 }
 0x3b1   : > { %v5241_v14 = vpop.f32.mrb[139].mxu1 }
 0x3b5   : > { %v5277_v56 = vpop.f32.mrb[140].mxu0 }
 0x3b6   : > { %v5318_v18 = vpop.f32.mrb[140].mxu1  ;;  %v7545_v17 = vadd.f32 %v5277_v56, %v4830_v10  ;;  %v5279_v50 = vpop.f32.mrb[141].mxu0 }
 0x3b7   : > { %v7547_v44 = vadd.f32 %v5318_v18, %v4832_v6  ;;  %v5320_v54 = vpop.f32.mrb[141].mxu1  ;;  %v7549_v58 = vadd.f32 %v5279_v50, %v4831_v20  ;;  %v5281_v19 = vpop.f32.mrb[142].mxu0 }
 0x3b8   : > { %v7551_v21 = vadd.f32 %v5320_v54, %v4833_v59  ;;  %v5322_v40 = vpop.f32.mrb[142].mxu1  ;;  %v5282_v63 = vpop.f32.mrb[143].mxu0 }
 0x3b9   : > { %v5323_v38 = vpop.f32.mrb[143].mxu1 }
 0x3ba   : > { %v5558_v14 = vadd.f32 %v5549_v29, %v7551_v21 }
 0x3bd   : > { %v5407_v16 = vpop.f32.mrb[144].mxu0 }
 0x3be   : > { %v5448_v5 = vpop.f32.mrb[144].mxu1  ;;  %v5537_v51 = vadd.f32 %v5407_v16, %v5038_v52  ;;  %v5409_v10 = vpop.f32.mrb[145].mxu0  ;;  %v5551_v52 = vadd.f32 %v5549_v29, %v5325_v47 }
 0x3bf   : > { %v5539_v1 = vadd.f32 %v5448_v5, %v5040_v60  ;;  %v5450_v6 = vpop.f32.mrb[145].mxu1  ;;  %v5538_v0 = vadd.f32 %v5409_v10, %v5039_v15  ;;  %v5411_v26 = vpop.f32.mrb[146].mxu0  ;;  %v5553_v60 = vadd.f32 %v5549_v29, %v5327_v41  ;;  %v5552_v15 = vadd.f32 %v5549_v29, %v5326_v8 }
 0x3c0   : > { %v5540_v3 = vadd.f32 %v5450_v6, %v5041_v24  ;;  %v5452_v20 = vpop.f32.mrb[146].mxu1  ;;  %v5565_v32 = vadd.f32 %v5563_v31, %v5537_v51  ;;  %v5412_v13 = vpop.f32.mrb[147].mxu0  ;;  %v5554_v24 = vadd.f32 %v5549_v29, %v5328_v28 }
 0x3c1   : > { %v5567_v59 = vadd.f32 %v5563_v31, %v5539_v1  ;;  %v5453_v7 = vpop.f32.mrb[147].mxu1  ;;  %v5566_v22 = vadd.f32 %v5563_v31, %v5538_v0 }
 0x3c2   : > { %v5568_v27 = vadd.f32 %v5563_v31, %v5540_v3  ;;  %v5581_v37 = vrot.slane %v5565_v32, 4 }
 0x3c3   : > { %v5583_v55 = vrot.slane %v5567_v59, 4  ;;  %v5582_v39 = vrot.slane %v5566_v22, 4 }
 0x3c4   : > { %v5584_v11 = vrot.slane %v5568_v27, 4  ;;  %v5598_v12 = vsel %vm5597_vm10, %v5551_v52, %v5581_v37 }
 0x3c5   : > { %v5600_v33 = vsel %vm5597_vm10, %v5553_v60, %v5583_v55  ;;  %v5599_v25 = vsel %vm5597_vm10, %v5552_v15, %v5582_v39  ;;  %5606 = vst [vmem:[%s7557_s26] sm:$0xff] %v5598_v12  ;;  %v5489_v43 = vpop.f32.mrb[148].mxu0 }
 0x3c6   : > { %v5601_v62 = vsel %vm5597_vm10, %v5554_v24, %v5584_v11  ;;  %5608 = vst [vmem:[%s7557_s26 + $0x10] sm:$0xff] %v5600_v33  ;;  %v5530_v48 = vpop.f32.mrb[148].mxu1  ;;  %5607 = vst [vmem:[%s7557_s26 + $0x8] sm:$0xff] %v5599_v25  ;;  %v5541_v36 = vadd.f32 %v5489_v43, %v7537_v34  ;;  %v5491_v4 = vpop.f32.mrb[149].mxu0  ;;  %v5555_v34 = vadd.f32 %v5549_v29, %v7545_v17 }
 0x3c7   : > { %5609 = vst [vmem:[%s7557_s26 + $0x18] sm:$0xff] %v5601_v62  ;;  %v5543_v46 = vadd.f32 %v5530_v48, %v7539_v49  ;;  %v5532_v53 = vpop.f32.mrb[149].mxu1  ;;  %v5542_v61 = vadd.f32 %v5491_v4, %v7541_v23  ;;  %v5493_v47 = vpop.f32.mrb[150].mxu0  ;;  %v5557_v49 = vadd.f32 %v5549_v29, %v7547_v44 }
 0x3c8   : > { %v5544_v45 = vadd.f32 %v5532_v53, %v7543_v57  ;;  %v5534_v41 = vpop.f32.mrb[150].mxu1  ;;  %v5569_v42 = vadd.f32 %v5563_v31, %v5541_v36  ;;  %v5494_v8 = vpop.f32.mrb[151].mxu0  ;;  %v5556_v57 = vadd.f32 %v5549_v29, %v7549_v58 }
 0x3c9   : > { %v5571_v30 = vadd.f32 %v5563_v31, %v5543_v46  ;;  %v5535_v28 = vpop.f32.mrb[151].mxu1  ;;  %v5570_v9 = vadd.f32 %v5563_v31, %v5542_v61 }
 0x3ca   : > { %v5572_v35 = vadd.f32 %v5563_v31, %v5544_v45  ;;  %v5585_v2 = vrot.slane %v5569_v42, 4 }
 0x3cb   : > { %v5587_v23 = vrot.slane %v5571_v30, 4  ;;  %v5586_v56 = vrot.slane %v5570_v9, 4 }
 0x3cc   : > { %v5588_v18 = vrot.slane %v5572_v35, 4  ;;  %v5602_v50 = vsel %vm5597_vm10, %v5555_v34, %v5585_v2 }
 0x3cd   : > { %v5604_v54 = vsel %vm5597_vm10, %v5557_v49, %v5587_v23  ;;  %5610 = vst [vmem:[%s7557_s26 + $0x20] sm:$0xff] %v5602_v50  ;;  %v5603_v19 = vsel %vm5597_vm10, %v5556_v57, %v5586_v56 }
 0x3ce   : > { %5612 = vst [vmem:[%s7557_s26 + $0x30] sm:$0xff] %v5604_v54  ;;  %v5605_v17 = vsel %vm5597_vm10, %v5558_v14, %v5588_v18  ;;  %5611 = vst [vmem:[%s7557_s26 + $0x28] sm:$0xff] %v5603_v19 }
 0x3cf   : > { %5613 = vst [vmem:[%s7557_s26 + $0x38] sm:$0xff] %v5605_v17 }
 0x3d0 PF: > { %s15_s18 = sadd.s32 1, %s6001_s18  }
 0x3d1   : > { %p12_p4 = scmp.ge.s32.totalorder %s15_s18, 5  }
 0x3d3   :  { %14 = sbr.rel (!%p12_p4) target bundleno = 1 (0x1), region = 85 }

</bundles_post_ra>
